<compile_context>
chip_gen: v6e
topology: v6e:2x2x1
jax: 0.10.0
libtpu: 0.0.40
codegen_flags: <defaults>
</compile_context>

<pallas_src>
import functools

import jax
import jax.numpy as jnp
from jax.experimental import pallas as pl
from jax.experimental.pallas import tpu as pltpu

BN_EPS = 1e-5


# ---------------------------------------------------------------------------
# VMEM budget / tiling helpers (generation aware)
# ---------------------------------------------------------------------------
@functools.lru_cache(maxsize=None)
def _vmem_limit_bytes():
    """~75% of physical VMEM (v7x: 64 MiB, v5e/v6e: 128 MiB); 64 MiB fallback."""
    cap = None
    try:
        cap = getattr(pltpu.get_tpu_info(), "vmem_capacity_bytes", None)
    except Exception:
        cap = None
    if not cap:
        cap = 64 * 1024 * 1024
    return int(cap) * 3 // 4


def _pick_row_tile(ho, wo, cin, cout, k):
    """Pick TH so (input window + patch slab + f32 result + out block) fits."""
    if ho <= 32:
        return ho                                   # small maps: single tile
    budget = _vmem_limit_bytes() // 2               # headroom for double buffers
    per_row = (wo * (k * k * cin * 2                # bf16 patch slab
                     + cout * 4                     # f32 dot result
                     + 2 * cout * 2)                # bf16 out block (x2 buffers)
               + 2 * (wo + k - 1) * cin * 2)        # bf16 input window (x2)
    th = budget // max(per_row, 1)
    th = int(max(8, min(64, th)))
    return (th // 8) * 8


# ---------------------------------------------------------------------------
# Pallas kernels
# ---------------------------------------------------------------------------
def _conv_direct_kernel(*refs, k, th, wo, relu, relu_channels,
                        has_residual, has_halo):
    """Tap-folded, im2col-in-VMEM stride-1 conv over one (image, row-tile).

    refs (in order):
      x_ref   : (1, th [+k-1 if single tile], Wp, Cin)  padded input rows (bf16)
      xh_ref? : (1, 8, Wp, Cin)                         next-rows halo (bf16)
      w_ref   : (k*k*Cin, Cout)                         BN-folded weights (bf16)
      b_ref   : (1, Cout)                               folded bias (f32)
      res_ref?: (1, th, Wo, Cout)                       residual branch
      o_ref   : (1, th, Wo, Cout)
    """
    it = iter(refs)
    x_ref = next(it)
    xh_ref = next(it) if has_halo else None
    w_ref = next(it)
    b_ref = next(it)
    res_ref = next(it) if has_residual else None
    o_ref = next(it)

    win = x_ref[0]                                    # (rows, Wp, Cin)
    if has_halo:
        win = jnp.concatenate([win, xh_ref[0][:k - 1]], axis=0)
    cin = win.shape[-1]
    cout = o_ref.shape[-1]
    m = th * wo

    # (th*wo, k*k*cin) patch slab via static slices, then ONE MXU contraction
    # with K = k^2*Cin (e.g. 5*5*64 = 1600) instead of k^2 dots with K = Cin.
    cols = [win[di:di + th, dj:dj + wo, :].reshape(m, cin)
            for di in range(k) for dj in range(k)]
    slab = cols[0] if len(cols) == 1 else jnp.concatenate(cols, axis=-1)
    y = jnp.dot(slab, w_ref[...], preferred_element_type=jnp.float32)
    y = y + b_ref[...]                                # folded-BN bias

    if relu == "all":
        y = jnp.maximum(y, 0.0)
    elif relu == "prefix":                            # static channel-slice ReLU
        y = jnp.concatenate(
            [jnp.maximum(y[:, :relu_channels], 0.0), y[:, relu_channels:]],
            axis=-1)

    y = y.reshape(th, wo, cout)
    if has_residual:                                  # fused add + ReLU
        y = jnp.maximum(y + res_ref[0].astype(jnp.float32), 0.0)
    o_ref[0] = y.astype(o_ref.dtype)


def _mm_bias_kernel(a_ref, w_ref, b_ref, o_ref, *, apply_relu):
    # (TM, K) @ (K, C) on the MXU (bf16 operands, f32 acc) + bias (+ReLU).
    y = jnp.dot(a_ref[...], w_ref[...],
                preferred_element_type=jnp.float32) + b_ref[...]
    if apply_relu:
        y = jnp.maximum(y, 0.0)
    o_ref[...] = y.astype(o_ref.dtype)


# ---------------------------------------------------------------------------
# Conv wrappers
# ---------------------------------------------------------------------------
def conv2d_direct(x, w, bias, *, pad, relu="none", relu_channels=0,
                  residual=None, out_dtype=jnp.bfloat16, row_tile=None):
    """Stride-1 Conv2d + folded-BN bias (+ReLU / prefix-ReLU / residual+ReLU).

    Spatially tiled over output rows; the (k-1)-row halo comes from a second
    row-shifted BlockSpec view of the same padded input array.
    """
    N, H, W, Cin = x.shape
    k = w.shape[0]
    Cout = w.shape[-1]
    Ho = H + 2 * pad - k + 1
    Wo = W + 2 * pad - k + 1
    Wp = Wo + k - 1
    assert not (relu == "prefix" and residual is not None), \
        "prefix-ReLU and residual epilogues are mutually exclusive"
    if relu == "prefix":
        assert 0 < relu_channels <= Cout

    TH = (min(row_tile, Ho) if row_tile is not None
          else _pick_row_tile(Ho, Wo, Cin, Cout, k))
    if TH >= Ho:
        TH, n_th = Ho, 1
    else:
        TH = max(8, (TH // 8) * 8)
        n_th = -(-Ho // TH)
    has_halo = (n_th > 1) and (k > 1)
    Ho_pad = n_th * TH
    halo_rows = 8 if has_halo else (k - 1 if n_th == 1 else 0)
    Hp_total = Ho_pad + halo_rows

    pad_bottom = Hp_total - H - pad
    assert pad_bottom >= 0
    xb = x.astype(jnp.bfloat16)
    if pad or pad_bottom:
        # TODO(synk): fuse zero-padding / edge-tile masking into the kernel to
        # drop this extra HBM round trip for the input.
        xb = jnp.pad(xb, ((0, 0), (pad, pad_bottom), (pad, pad), (0, 0)))
    w_flat = w.astype(jnp.bfloat16).reshape(k * k * Cin, Cout)
    b2 = bias.astype(jnp.float32).reshape(1, Cout)

    cur_rows = TH + (k - 1) if n_th == 1 else TH
    in_specs = [pl.BlockSpec((1, cur_rows, Wp, Cin), lambda n, i: (n, i, 0, 0))]
    args = [xb]
    if has_halo:
        step = TH // 8
        in_specs.append(
            pl.BlockSpec((1, 8, Wp, Cin), lambda n, i: (n, (i + 1) * step, 0, 0)))
        args.append(xb)                       # same array, row-shifted window
    # TODO(synk): single-buffer the constant-index weight/bias operands
    # (pipeline_mode=pl.Buffered(1)) to reclaim VMEM headroom on v7x.
    in_specs += [pl.BlockSpec((k * k * Cin, Cout), lambda n, i: (0, 0)),
                 pl.BlockSpec((1, Cout), lambda n, i: (0, 0))]
    args += [w_flat, b2]
    if residual is not None:
        assert residual.shape == (N, Ho, Wo, Cout)
        res = residual
        if Ho_pad != Ho:
            res = jnp.pad(res, ((0, 0), (0, Ho_pad - Ho), (0, 0), (0, 0)))
        in_specs.append(pl.BlockSpec((1, TH, Wo, Cout), lambda n, i: (n, i, 0, 0)))
        args.append(res)

    out = pl.pallas_call(
        functools.partial(_conv_direct_kernel, k=k, th=TH, wo=Wo, relu=relu,
                          relu_channels=relu_channels,
                          has_residual=residual is not None,
                          has_halo=has_halo),
        out_shape=jax.ShapeDtypeStruct((N, Ho_pad, Wo, Cout), out_dtype),
        grid=(N, n_th),
        in_specs=in_specs,
        out_specs=pl.BlockSpec((1, TH, Wo, Cout), lambda n, i: (n, i, 0, 0)),
        compiler_params=pltpu.CompilerParams(
            dimension_semantics=("parallel", "parallel"),
            vmem_limit_bytes=_vmem_limit_bytes()),
    )(*args)
    if Ho_pad != Ho:
        out = out[:, :Ho]
    return out


def matmul_bias(a, w, bias, apply_relu, out_dtype=jnp.bfloat16):
    """out = relu?(a @ w + bias), bf16 operands, f32 accumulation."""
    M, K = a.shape
    Kw, C = w.shape
    assert K == Kw
    TM = min(512, ((M + 7) // 8) * 8)
    Mp = ((M + TM - 1) // TM) * TM
    a_p = jnp.pad(a.astype(jnp.bfloat16), ((0, Mp - M), (0, 0)))
    b2 = bias.astype(jnp.float32).reshape(1, C)

    out = pl.pallas_call(
        functools.partial(_mm_bias_kernel, apply_relu=apply_relu),
        out_shape=jax.ShapeDtypeStruct((Mp, C), out_dtype),
        grid=(Mp // TM,),
        in_specs=[
            pl.BlockSpec((TM, K), lambda i: (i, 0)),
            pl.BlockSpec((K, C), lambda i: (0, 0)),
            pl.BlockSpec((1, C), lambda i: (0, 0)),
        ],
        out_specs=pl.BlockSpec((TM, C), lambda i: (i, 0)),
        compiler_params=pltpu.CompilerParams(
            dimension_semantics=("parallel",),
            vmem_limit_bytes=_vmem_limit_bytes()),
    )(a_p, w.astype(jnp.bfloat16), b2)
    return out[:M]


def _extract_patches(x, k, stride, pad):
    N, H, W, C = x.shape
    xp = jnp.pad(x, ((0, 0), (pad, pad), (pad, pad), (0, 0)))
    Ho = (H + 2 * pad - k) // stride + 1
    Wo = (W + 2 * pad - k) // stride + 1
    cols = []
    for di in range(k):
        for dj in range(k):
            cols.append(xp[:, di:di + stride * Ho:stride,
                           dj:dj + stride * Wo:stride, :])
    return jnp.concatenate(cols, axis=-1)


def conv2d_strided(x, w, bias, *, stride, pad, relu):
    # TODO(synk): strided convs (synthetic encoder only) still use a small
    # XLA-side im2col; every stride-1 conv uses the fused direct-conv kernel.
    N = x.shape[0]
    k = w.shape[0]
    cout = w.shape[-1]
    patches = _extract_patches(x, k, stride, pad)
    Ho, Wo = patches.shape[1], patches.shape[2]
    a = patches.reshape(N * Ho * Wo, -1)
    y = matmul_bias(a, w.reshape(-1, cout), bias, relu)
    return y.reshape(N, Ho, Wo, cout)


def bilinear_resize(x, size):
    # matches F.upsample(mode='bilinear', align_corners=False); all resizes in
    # this network are upsamplings, so no antialias-filter divergence.
    return jax.image.resize(
        x, (x.shape[0], size[0], size[1], x.shape[3]), method="bilinear")


# ---------------------------------------------------------------------------
# Parameters (deterministic, synthetic) — BN scale folded into the weights
# ---------------------------------------------------------------------------
def _he(key, k, cin, cout):
    fan_in = k * k * cin
    return (jax.random.normal(key, (k, k, cin, cout), jnp.float32)
            * jnp.sqrt(2.0 / fan_in))


def _conv_bn(key, k, cin, cout):
    w = _he(key, k, cin, cout)
    gamma = jnp.ones((cout,), jnp.float32)
    beta = jnp.zeros((cout,), jnp.float32)
    mean = jnp.zeros((cout,), jnp.float32)
    var = jnp.ones((cout,), jnp.float32)
    scale = gamma / jnp.sqrt(var + BN_EPS)
    bias = beta - mean * scale
    w_folded = (w * scale[None, None, None, :]).astype(jnp.bfloat16)
    return w_folded, bias


def _make_up(keys, cin, cout):
    # _UpProjection: conv1(5x5)+bn1+relu ; conv1_2(3x3)+bn1_2 ; conv2(5x5)+bn2
    return {
        "conv1":   _conv_bn(next(keys), 5, cin, cout),
        "conv1_2": _conv_bn(next(keys), 3, cout, cout),
        "conv2":   _conv_bn(next(keys), 5, cin, cout),
    }


def make_params(key, block_channel):
    keys = iter(jax.random.split(key, 64))
    bc = block_channel
    nf = bc[3]  # num_features for D

    E = {
        "c1": _conv_bn(next(keys), 3, 3, bc[0]),
        "c2": _conv_bn(next(keys), 3, bc[0], bc[1]),
        "c3": _conv_bn(next(keys), 3, bc[1], bc[2]),
        "c4": _conv_bn(next(keys), 3, bc[2], bc[3]),
    }
    D = {
        "conv": _conv_bn(next(keys), 1, nf, nf // 2),
        "up1": _make_up(keys, nf // 2, nf // 4),
        "up2": _make_up(keys, nf // 4, nf // 8),
        "up3": _make_up(keys, nf // 8, nf // 16),
        "up4": _make_up(keys, nf // 16, nf // 32),
    }
    MFF = {
        "up1": _make_up(keys, bc[0], 16),
        "up2": _make_up(keys, bc[1], 16),
        "up3": _make_up(keys, bc[2], 16),
        "up4": _make_up(keys, bc[3], 16),
        "conv": _conv_bn(next(keys), 5, 64, 64),
    }
    nfr = 64 + bc[3] // 32
    R = {
        "conv0": _conv_bn(next(keys), 5, nfr, nfr),
        "conv1": _conv_bn(next(keys), 5, nfr, nfr),
        "conv2_w": _he(next(keys), 5, nfr, 1).astype(jnp.bfloat16),
        "conv2_b": jnp.zeros((1,), jnp.float32),
    }
    return {"E": E, "D": D, "MFF": MFF, "R": R}


# ---------------------------------------------------------------------------
# Module forward passes
# ---------------------------------------------------------------------------
def _up_projection(x, size, p):
    """_UpProjection with conv1||conv2 fused (shared resized input, lane-dense
    2*Cout output) and the branch add + ReLU fused into conv1_2's epilogue."""
    x = bilinear_resize(x, size)
    w1, b1 = p["conv1"]
    w2, b2 = p["conv2"]
    cout = w1.shape[-1]
    w_cat = jnp.concatenate([w1, w2], axis=-1)            # (5,5,cin,2*cout)
    b_cat = jnp.concatenate([b1, b2], axis=0)
    # static channel-slice ReLU on the conv1 half only
    y = conv2d_direct(x, w_cat, b_cat, pad=2, relu="prefix", relu_channels=cout)
    x_conv1 = y[..., :cout]                                # relu(bn1(conv1(x)))
    bran2 = y[..., cout:]                                  # bn2(conv2(x))
    w12, b12 = p["conv1_2"]
    # relu(bn1_2(conv1_2(x_conv1)) + bran2), single fused kernel
    return conv2d_direct(x_conv1, w12, b12, pad=1, relu="none", residual=bran2)


def encoder_fwd(x, p):
    # synthetic stand-in for the injected Encoder: 4 strided conv+BN+ReLU stages
    w, b = p["c1"]; b1 = conv2d_strided(x, w, b, stride=2, pad=1, relu=True)
    w, b = p["c2"]; b2 = conv2d_strided(b1, w, b, stride=2, pad=1, relu=True)
    w, b = p["c3"]; b3 = conv2d_strided(b2, w, b, stride=2, pad=1, relu=True)
    w, b = p["c4"]; b4 = conv2d_strided(b3, w, b, stride=2, pad=1, relu=True)
    return b1, b2, b3, b4


def decoder_fwd(b1, b2, b3, b4, p):
    w, b = p["conv"]
    x_d0 = conv2d_direct(b4, w, b, pad=0, relu="all")
    x_d1 = _up_projection(x_d0, (b3.shape[1], b3.shape[2]), p["up1"])
    x_d2 = _up_projection(x_d1, (b2.shape[1], b2.shape[2]), p["up2"])
    x_d3 = _up_projection(x_d2, (b1.shape[1], b1.shape[2]), p["up3"])
    x_d4 = _up_projection(x_d3, (b1.shape[1] * 2, b1.shape[2] * 2), p["up4"])
    return x_d4


def mff_fwd(b1, b2, b3, b4, size, p):
    # TODO(synk): batch the four 16-channel up-projections into one lane-dense
    # call (requires channel padding / block-diagonal weights).
    m1 = _up_projection(b1, size, p["up1"])
    m2 = _up_projection(b2, size, p["up2"])
    m3 = _up_projection(b3, size, p["up3"])
    m4 = _up_projection(b4, size, p["up4"])
    x = jnp.concatenate([m1, m2, m3, m4], axis=-1)
    w, b = p["conv"]
    return conv2d_direct(x, w, b, pad=2, relu="all")


def refine_fwd(x, p, depth=None, epoch=None):
    # plain modules.R; depth / epoch accepted but unused (eval path)
    w, b = p["conv0"]
    x0 = conv2d_direct(x, w, b, pad=2, relu="all")
    w, b = p["conv1"]
    x1 = conv2d_direct(x0, w, b, pad=2, relu="all")
    # Final 1-channel conv: pad Cout 1 -> 8 for a denser store, slice after.
    w2 = jnp.pad(p["conv2_w"], ((0, 0), (0, 0), (0, 0), (0, 7)))
    b2 = jnp.pad(p["conv2_b"], (0, 7))
    x2 = conv2d_direct(x1, w2, b2, pad=2, relu="none", out_dtype=jnp.float32)
    return x2[..., :1]


def model_forward(x_nchw, params, depth=None, epoch=None):
    x = jnp.transpose(x_nchw, (0, 2, 3, 1)).astype(jnp.bfloat16)  # NCHW -> NHWC
    b1, b2, b3, b4 = encoder_fwd(x, params["E"])
    x_dec = decoder_fwd(b1, b2, b3, b4, params["D"])
    x_mff = mff_fwd(b1, b2, b3, b4,
                    (x_dec.shape[1], x_dec.shape[2]), params["MFF"])
    out = refine_fwd(jnp.concatenate([x_dec, x_mff], axis=-1),
                     params["R"], depth, epoch)
    return jnp.transpose(out, (0, 3, 1, 2)).astype(jnp.float32)   # [N,1,H,W]


# ---------------------------------------------------------------------------
if __name__ == "__main__":
    key = jax.random.PRNGKey(0)
    k_x, k_p, k_tx, k_tw = jax.random.split(key, 4)

    # --- self-check: spatially tiled (halo) conv path vs. XLA reference -----
    xt = jax.random.normal(k_tx, (1, 40, 24, 8), jnp.float32)
    wt = jax.random.normal(k_tw, (3, 3, 8, 16), jnp.float32) * 0.1
    bt = jnp.zeros((16,), jnp.float32)
    got = conv2d_direct(xt, wt, bt, pad=1, relu="none", row_tile=16,
                        out_dtype=jnp.float32)
    ref = jax.lax.conv_general_dilated(
        xt.astype(jnp.bfloat16).astype(jnp.float32),
        wt.astype(jnp.bfloat16).astype(jnp.float32),
        window_strides=(1, 1), padding=((1, 1), (1, 1)),
        dimension_numbers=("NHWC", "HWIO", "NHWC"))
    err = float(jnp.max(jnp.abs(got - ref)))
    assert err < 5e-2, f"tiled direct-conv mismatch vs reference: {err}"

    # --- full model forward --------------------------------------------------
    block_channel = [16, 32, 64, 128]        # small synthetic channel config
    N, H, W = 2, 32, 32
    x = jax.random.normal(k_x, (N, 3, H, W), jnp.float32)   # NCHW input

    params = make_params(k_p, block_channel)

    fwd = jax.jit(model_forward)
    out = fwd(x, params)
    jax.block_until_ready(out)

    assert out.shape == (N, 1, H, W), out.shape
    assert bool(jnp.all(jnp.isfinite(out)))
    print("KERNEL_OK")
</pallas_src>

<mosaic_0001>
module attributes {stable_mosaic.version = 11 : i64} {
  func.func @_conv_direct_kernel(%arg0: i32, %arg1: i32, %arg2: memref<1x16x26x8xbf16, #tpu.memory_space<vmem>>, %arg3: memref<1x8x26x8xbf16, #tpu.memory_space<vmem>>, %arg4: memref<72x16xbf16, #tpu.memory_space<vmem>>, %arg5: memref<1x16xf32, #tpu.memory_space<vmem>>, %arg6: memref<1x16x24x16xf32, #tpu.memory_space<vmem>>) attributes {dimension_semantics = [#tpu.dimension_semantics<parallel>, #tpu.dimension_semantics<parallel>], iteration_bounds = array<i64: 1, 3>, scalar_prefetch = 0 : i64, scratch_operands = 0 : i64, tpu.core_type = #tpu.core_type<tc>, window_params = [{transform_indices = @transform_0, window_bounds = array<i64: 1, 16, 26, 8>}, {transform_indices = @transform_1, window_bounds = array<i64: 1, 8, 26, 8>}, {pipeline_mode = #tpu.pipeline_mode<synchronous>, transform_indices = @transform_2, window_bounds = array<i64: 72, 16>}, {pipeline_mode = #tpu.pipeline_mode<synchronous>, transform_indices = @transform_3, window_bounds = array<i64: 1, 16>}, {transform_indices = @transform_4, window_bounds = array<i64: 1, 16, 24, 16>}]} {
    %c0 = arith.constant 0 : index
    %c0_0 = arith.constant 0 : index
    %c0_1 = arith.constant 0 : index
    %c0_2 = arith.constant 0 : index
    %0 = vector.load %arg2[%c0, %c0_0, %c0_1, %c0_2] : memref<1x16x26x8xbf16, #tpu.memory_space<vmem>>, vector<1x16x26x8xbf16>
    %1 = vector.shape_cast %0 : vector<1x16x26x8xbf16> to vector<16x26x8xbf16>
    %c0_3 = arith.constant 0 : index
    %c0_4 = arith.constant 0 : index
    %c0_5 = arith.constant 0 : index
    %c0_6 = arith.constant 0 : index
    %2 = vector.load %arg3[%c0_3, %c0_4, %c0_5, %c0_6] : memref<1x8x26x8xbf16, #tpu.memory_space<vmem>>, vector<1x8x26x8xbf16>
    %3 = vector.shape_cast %2 : vector<1x8x26x8xbf16> to vector<8x26x8xbf16>
    %4 = vector.extract_strided_slice %3 {offsets = [0, 0, 0], sizes = [2, 26, 8], strides = [1, 1, 1]} : vector<8x26x8xbf16> to vector<2x26x8xbf16>
    %5 = tpu.concatenate %1, %4 in 0 : vector<16x26x8xbf16>, vector<2x26x8xbf16> -> vector<18x26x8xbf16>
    %6 = vector.extract_strided_slice %5 {offsets = [0, 0, 0], sizes = [16, 24, 8], strides = [1, 1, 1]} : vector<18x26x8xbf16> to vector<16x24x8xbf16>
    %7 = vector.shape_cast %6 : vector<16x24x8xbf16> to vector<384x8xbf16>
    %8 = vector.extract_strided_slice %5 {offsets = [0, 1, 0], sizes = [16, 24, 8], strides = [1, 1, 1]} : vector<18x26x8xbf16> to vector<16x24x8xbf16>
    %9 = vector.shape_cast %8 : vector<16x24x8xbf16> to vector<384x8xbf16>
    %10 = vector.extract_strided_slice %5 {offsets = [0, 2, 0], sizes = [16, 24, 8], strides = [1, 1, 1]} : vector<18x26x8xbf16> to vector<16x24x8xbf16>
    %11 = vector.shape_cast %10 : vector<16x24x8xbf16> to vector<384x8xbf16>
    %12 = vector.extract_strided_slice %5 {offsets = [1, 0, 0], sizes = [16, 24, 8], strides = [1, 1, 1]} : vector<18x26x8xbf16> to vector<16x24x8xbf16>
    %13 = vector.shape_cast %12 : vector<16x24x8xbf16> to vector<384x8xbf16>
    %14 = vector.extract_strided_slice %5 {offsets = [1, 1, 0], sizes = [16, 24, 8], strides = [1, 1, 1]} : vector<18x26x8xbf16> to vector<16x24x8xbf16>
    %15 = vector.shape_cast %14 : vector<16x24x8xbf16> to vector<384x8xbf16>
    %16 = vector.extract_strided_slice %5 {offsets = [1, 2, 0], sizes = [16, 24, 8], strides = [1, 1, 1]} : vector<18x26x8xbf16> to vector<16x24x8xbf16>
    %17 = vector.shape_cast %16 : vector<16x24x8xbf16> to vector<384x8xbf16>
    %18 = vector.extract_strided_slice %5 {offsets = [2, 0, 0], sizes = [16, 24, 8], strides = [1, 1, 1]} : vector<18x26x8xbf16> to vector<16x24x8xbf16>
    %19 = vector.shape_cast %18 : vector<16x24x8xbf16> to vector<384x8xbf16>
    %20 = vector.extract_strided_slice %5 {offsets = [2, 1, 0], sizes = [16, 24, 8], strides = [1, 1, 1]} : vector<18x26x8xbf16> to vector<16x24x8xbf16>
    %21 = vector.shape_cast %20 : vector<16x24x8xbf16> to vector<384x8xbf16>
    %22 = vector.extract_strided_slice %5 {offsets = [2, 2, 0], sizes = [16, 24, 8], strides = [1, 1, 1]} : vector<18x26x8xbf16> to vector<16x24x8xbf16>
    %23 = vector.shape_cast %22 : vector<16x24x8xbf16> to vector<384x8xbf16>
    %24 = tpu.concatenate %7, %9, %11, %13, %15, %17, %19, %21, %23 in 1 : vector<384x8xbf16>, vector<384x8xbf16>, vector<384x8xbf16>, vector<384x8xbf16>, vector<384x8xbf16>, vector<384x8xbf16>, vector<384x8xbf16>, vector<384x8xbf16>, vector<384x8xbf16> -> vector<384x72xbf16>
    %c0_7 = arith.constant 0 : index
    %c0_8 = arith.constant 0 : index
    %25 = vector.load %arg4[%c0_7, %c0_8] : memref<72x16xbf16, #tpu.memory_space<vmem>>, vector<72x16xbf16>
    %cst = arith.constant dense<0.000000e+00> : vector<384x16xf32>
    %26 = tpu.matmul %24, %25, %cst {dimension_numbers = #tpu.dot_dimension_numbers<[1], [0], [0], [1], [0, 0, 1, 1], [], []>} : vector<384x72xbf16>, vector<72x16xbf16>, vector<384x16xf32> -> vector<384x16xf32>
    %c0_9 = arith.constant 0 : index
    %c0_10 = arith.constant 0 : index
    %27 = vector.load %arg5[%c0_9, %c0_10] : memref<1x16xf32, #tpu.memory_space<vmem>>, vector<1x16xf32>
    %28 = vector.broadcast %27 : vector<1x16xf32> to vector<384x16xf32>
    %29 = arith.addf %26, %28 : vector<384x16xf32>
    %30 = vector.shape_cast %29 : vector<384x16xf32> to vector<16x24x16xf32>
    %c0_11 = arith.constant 0 : index
    %c0_12 = arith.constant 0 : index
    %c0_13 = arith.constant 0 : index
    %c0_14 = arith.constant 0 : index
    %31 = vector.load %arg6[%c0_11, %c0_12, %c0_13, %c0_14] : memref<1x16x24x16xf32, #tpu.memory_space<vmem>>, vector<1x16x24x16xf32>
    %32 = vector.shape_cast %31 : vector<1x16x24x16xf32> to vector<16x24x16xf32>
    %33 = vector.shape_cast %30 : vector<16x24x16xf32> to vector<1x16x24x16xf32>
    tpu.vector_store %arg6[%c0_11, %c0_12, %c0_13, %c0_14], %33 {strides = array<i32>} : memref<1x16x24x16xf32, #tpu.memory_space<vmem>>, vector<1x16x24x16xf32>,
    return
  }
  func.func @transform_0(%arg0: i32, %arg1: i32) -> (i32, i32, i32, i32) {
    %c0_i32 = arith.constant 0 : i32
    %c0_i32_0 = arith.constant 0 : i32
    %c0_i32_1 = arith.constant 0 : i32
    return %arg0, %arg1, %c0_i32, %c0_i32_0 : i32, i32, i32, i32
  }
  func.func @transform_1(%arg0: i32, %arg1: i32) -> (i32, i32, i32, i32) {
    %c1_i32 = arith.constant 1 : i32
    %0 = arith.addi %arg1, %c1_i32 : i32
    %c2_i32 = arith.constant 2 : i32
    %1 = arith.muli %0, %c2_i32 : i32
    %c0_i32 = arith.constant 0 : i32
    %c0_i32_0 = arith.constant 0 : i32
    %c0_i32_1 = arith.constant 0 : i32
    return %arg0, %1, %c0_i32, %c0_i32_0 : i32, i32, i32, i32
  }
  func.func @transform_2(%arg0: i32, %arg1: i32) -> (i32, i32) {
    %c0_i32 = arith.constant 0 : i32
    %c0_i32_0 = arith.constant 0 : i32
    %c0_i32_1 = arith.constant 0 : i32
    return %c0_i32, %c0_i32_0 : i32, i32
  }
  func.func @transform_3(%arg0: i32, %arg1: i32) -> (i32, i32) {
    %c0_i32 = arith.constant 0 : i32
    %c0_i32_0 = arith.constant 0 : i32
    %c0_i32_1 = arith.constant 0 : i32
    return %c0_i32, %c0_i32_0 : i32, i32
  }
  func.func @transform_4(%arg0: i32, %arg1: i32) -> (i32, i32, i32, i32) {
    %c0_i32 = arith.constant 0 : i32
    %c0_i32_0 = arith.constant 0 : i32
    %c0_i32_1 = arith.constant 0 : i32
    return %arg0, %arg1, %c0_i32, %c0_i32_0 : i32, i32, i32, i32
  }
}

</mosaic_0001>

<bundles_post_ra>
// kernel: tpu_custom_call.1
= control target key start
LH: loop header
LB: loop body
LE: loop exit
PB: predicated region body
PF: predicated region fallthrough
CT: control target
= control target key end

     0   :  { %s3379_s15 = smov 0   ;;  %s3381_s16 = smov 0   ;;  %s5700_s0 = inlined_call_operand.vmem [shape: bf16[1,56,26,8], index: 0, kind: input, shape index: {}]   ;;  %s5701_s1 = inlined_call_operand.vmem [shape: bf16[1,56,26,8], index: 1, kind: input, shape index: {}]   ;;  %s5702_s2 = inlined_call_operand.vmem [shape: bf16[72,16], index: 2, kind: input, shape index: {}]   ;;  %s5703_s3 = inlined_call_operand.vmem [shape: f32[1,16], index: 3, kind: input, shape index: {}]   ;;  %s5704_s4 = inlined_call_operand.vmem [shape: f32[1,48,24,16], index: 4, kind: output, shape index: {}]  }
   0x1   :  { %s3383_s17 = smov 0  }
   0x2 LB: > { %s23_s18 = sadd.s32 1, %s3340_s16  ;;  %p2870_p0 = scmp.ge.s32.totalorder %s3344_s17, 1  ;;  %s3344_s17 = sphi %s3383_s17, %s14_s17   ;;  %s3340_s16 = sphi %s3381_s16, %s6105_s16   ;;  %s3336_s15 = sphi %s3379_s15, %s6104_s15  }
   0x3   : > { %p24_p1 = scmp.ge.s32.totalorder %s23_s18, 3  ;;  %p220_p2 = scmp.lt.s32.totalorder %s3344_s17, 4 }
   0x5   : > { %s6107_s18 = smov (%p24_p1, %s23_s18), 0  ;;  %p221_p3 = pnand %p2870_p0, %p220_p2 }
   0x7   : > { %224 = sbr.rel (%p221_p3) target bundleno = 779 (0x30b), region = 36 }
   0xc   : > { %s3397_s19 = sshll.u32 %s3336_s15, 4  ;;  %vm393_vm0 = vsmask.f32 3328  ;;  %vm394_vm1 = vsmask.f32 7440  ;;  %v5821_v26 = vmov 0 }
   0xd   : > { %p281_p4 = scmp.lt.s32.totalorder %s3397_s19, 55  ;;  %vm3436_vm2 = vmor %vm393_vm0, %vm394_vm1  ;;  %s3346_s25 = smov 8   ;;  %vm1004_vm3 = vcmask 1042432   ;;  %vm1005_vm4 = vcmask 1046532   ;;  %vm2470_vm6 = vcmask 1043456   ;;  %vm1962_vm7 = vcmask 64512  }
   0xe   : > { %v5822_v26 = vsel %vm3436_vm2, 4294967295, %v5821_v26  ;;  %vm4049_vm5 = vmor %vm1004_vm3, %vm1005_vm4  ;;  %s3347_s26 = smov 16   ;;  %s3348_s27 = smov 24   ;;  %vm2035_vm8 = vcmask 130048   ;;  %vm2084_vm9 = vcmask 195584   ;;  %vm2133_vm10 = vcmask 261120  }
   0xf   : > { %s282_s20 = scalar_select %p281_p4, %s3397_s19, 55  ;;  %5823 = vst [vmem:[#allocation2_spill] sm:$0xff] %v5822_v26  ;;  %vm2182_vm11 = vcmask 326656   ;;  %vm2231_vm12 = vcmask 392192   ;;  %vm2280_vm13 = vcmask 457728   ;;  %vm2329_vm14 = vcmask 523264  }
  0x10   : > { %s3349_s28 = smov 32   ;;  %s3350_s29 = smov 40   ;;  %vm2421_vm15 = vcmask 588800  }
  0x11   : > { %s3087_s21 = sshll.u32 %s282_s20, 4  ;;  %s3351_s8 = smov 48  }
  0x12   : > { %s3404_s24 = scalar_lea.vmem %s5700_s0, %s3087_s21  ;;  %s3352_s13 = smov 56  }
  0x13   : > { %v3407_v0 = vld [vmem:[%s3404_s24 + $0x14] sm:$0xf]  ;;  %v327_v1 = vld [vmem:[%s3404_s24 + $0x18] sm:$0xf]  ;;  %v328_v2 = vld [vmem:[%s3404_s24 + $0x1c] sm:$0x1] }
  0x14   : > { %v3412_v3 = vld [vmem:[%s3404_s24 + $0x20] sm:$0xf]  ;;  %v3415_v4 = vld [vmem:[%s3404_s24 + $0x24] sm:$0xf]  ;;  %v440_v5 = vshll.u32 %v3407_v0, 16  ;;  %v444_v6 = vshrl.u32 %v3407_v0, 16 }
  0x15   : > { %v450_v7 = vshll.u32 %v327_v1, 16  ;;  %v454_v8 = vshrl.u32 %v327_v1, 16  ;;  %v460_v9 = vshll.u32 %v328_v2, 16  ;;  %v465_v10 = vshrl.u32 %v3412_v3, 16  ;;  %v3421_v11 = vld [vmem:[%s3404_s24 + $0x10] sm:$0xf] }
  0x16   : > { %v442_v12 = vrot.slane %v440_v5, 5  ;;  %v446_v13 = vrot.slane %v444_v6, 4  ;;  %v468_v14 = vshll.u32 %v3412_v3, 16  ;;  %v474_v15 = vshll.u32 %v3415_v4, 16  ;;  %v3426_v16 = vld [vmem:[%s3404_s24] sm:$0xf] }
  0x17   : > { %v452_v17 = vrot.slane %v450_v7, 5  ;;  %v456_v18 = vrot.slane %v454_v8, 4  ;;  %v462_v19 = vrot.slane %v460_v9, 5  ;;  %v467_v20 = vrot.slane %v465_v10, 4  ;;  %v3429_v21 = vld [vmem:[%s3404_s24 + $0x4] sm:$0xf] }
  0x18   : > { %v447_v22 = vor.u32 %v446_v13, %v442_v12  ;;  %v470_v23 = vrot.slane %v468_v14, 5  ;;  %v3431_v24 = vrot.slane %v474_v15, 5  ;;  %v431_v25 = vshrl.u32 %v3421_v11, 16  ;;  %v3444_v34 = vld [vmem:[%s3404_s24 + $0x8] sm:$0xf]  ;;  %s3353_s20 = smov 64  }
  0x19   : > { %v457_v27 = vor.u32 %v456_v18, %v452_v17  ;;  %v434_v28 = vshll.u32 %v3421_v11, 16  ;;  %v397_v29 = vshrl.u32 %v3426_v16, 16  ;;  %v400_v30 = vshll.u32 %v3426_v16, 16  ;;  %v3458_v48 = vld [vmem:[%s3404_s24 + $0x28] sm:$0xf]  ;;  %s3093_s21 = sadd.s32 16, %s3397_s19 }
  0x1a   : > { %v448_v31 = vrot.slane %v447_v22, 4  ;;  %v471_v32 = vor.u32 %v470_v23, %v467_v20  ;;  %v433_v33 = vrot.slane %v431_v25, 4  ;;  %v406_v35 = vshll.u32 %v3429_v21, 16  ;;  %v3469_v53 = vld [vmem:[%s3404_s24 + $0xc] sm:$0x1]  ;;  %p4970_p5 = scmp.lt.s32.totalorder %s3093_s21, 55 }
  0x1b   : > { %v458_v36 = vrot.slane %v457_v27, 4  ;;  %v436_v37 = vrot.slane %v434_v28, 5  ;;  %v399_v38 = vrot.slane %v397_v29, 4  ;;  %v402_v39 = vrot.slane %v400_v30, 5  ;;  %v3472_v54 = vld [vmem:[%s3404_s24 + $0x34] sm:$0xf] }
  0x1c   : > { %v3449_v40 = vsel %vm3436_vm2, %v448_v31, %v452_v17  ;;  %v472_v41 = vrot.slane %v471_v32, 4  ;;  %v408_v42 = vrot.slane %v406_v35, 5  ;;  %v410_v43 = vshrl.u32 %v3429_v21, 16  ;;  %v3487_v5 = vld [vmem:[%s3404_s24 + $0x38] sm:$0xf]  ;;  %s6109_s21 = smov (!%p4970_p5, %s3093_s21), 55 }
  0x1d   : > { %5824 = vst [vmem:[#allocation3_spill] sm:$0xff] %v3449_v40  ;;  %v3454_v44 = vsel %vm3436_vm2, %v458_v36, %v462_v19  ;;  %v437_v45 = vor.u32 %v436_v37, %v433_v33  ;;  %v403_v46 = vor.u32 %v402_v39, %v399_v38  ;;  %v416_v47 = vshll.u32 %v3444_v34, 16  ;;  %v3493_v13 = vld [vmem:[%s3404_s24 + $0x3c] sm:$0x1]  ;;  %v3503_v23 = vld [vmem:[%s3404_s24 + $0x2c] sm:$0x1] }
  0x1e   : > { %5825 = vst [vmem:[#allocation4_spill] sm:$0xff] %v3454_v44  ;;  %v3463_v49 = vsel %vm3436_vm2, %v472_v41, %v3431_v24  ;;  %v2924_v50 = vcombine.low %v3449_v40, %v3454_v44  ;;  %v412_v51 = vrot.slane %v410_v43, 4  ;;  %v420_v52 = vshrl.u32 %v3444_v34, 16  ;;  %v3508_v30 = vld [vmem:[%s3404_s24 + $0x30] sm:$0xf]  ;;  %s3091_s23 = sshll.u32 %s6109_s21, 4 }
  0x1f   : > { %5826 = vst [vmem:[#allocation5_spill] sm:$0xff] %v3463_v49  ;;  %v438_v56 = vrot.slane %v437_v45, 4  ;;  %v404_v57 = vrot.slane %v403_v46, 4  ;;  %v418_v58 = vrot.slane %v416_v47, 5  ;;  %v478_v61 = vshrl.u32 %v3415_v4, 16  ;;  %s5045_s5 = scalar_lea.vmem %s5701_s1, %s3091_s23  ;;  %p312_p6 = scmp.lt.s32.totalorder %s3397_s19, 47 }
  0x20   : > { %1411 = vrot.lane.b32.xlu1 %v2924_v50, %s3346_s25  ;;  %v413_v59 = vor.u32 %v412_v51, %v408_v42  ;;  %v422_v60 = vrot.slane %v420_v52, 4  ;;  %v484_v62 = vshll.u32 %v3458_v48, 16  ;;  %v426_v2 = vshll.u32 %v3469_v53, 16  ;;  %v3517_v39 = vld [vmem:[%s3404_s24 + $0x48] sm:$0xf] }
  0x21   : > { %v3481_v63 = vsel %vm3436_vm2, %v438_v56, %v442_v12  ;;  %v409_v1 = vsel %vm3436_vm2, %v404_v57, %v408_v42  ;;  %v508_v6 = vshll.u32 %v3472_v54, 16  ;;  %v480_v10 = vrot.slane %v478_v61, 4  ;;  %v3531_v52 = vld [vmem:[%s3404_s24 + $0x4c] sm:$0x1]  ;;  %v3534_v56 = vld [vmem:[%s3404_s24 + $0x50] sm:$0xf] }
  0x22   : > { %5827 = vst [vmem:[#allocation6_spill] sm:$0xff] %v3481_v63  ;;  %v414_v8 = vrot.slane %v413_v59, 4  ;;  %v423_v9 = vor.u32 %v422_v60, %v418_v58  ;;  %v486_v12 = vrot.slane %v484_v62, 5  ;;  %v428_v14 = vrot.slane %v426_v2, 5  ;;  %s6111_s19 = smov (!%p312_p6, %s3397_s19), 47 }
  0x23   : > { %v3495_v15 = vrot.slane %v508_v6, 5  ;;  %v512_v17 = vshrl.u32 %v3472_v54, 16  ;;  %v481_v19 = vor.u32 %v480_v10, %v3431_v24  ;;  %v518_v22 = vshll.u32 %v3487_v5, 16 }
  0x24   : > { %v419_v18 = vsel %vm3436_vm2, %v414_v8, %v418_v58  ;;  %v424_v20 = vrot.slane %v423_v9, 4  ;;  %v522_v28 = vshrl.u32 %v3487_v5, 16  ;;  %v528_v29 = vshll.u32 %v3493_v13, 16  ;;  %v3546_v8 = vld [vmem:[%s3404_s24 + $0x54] sm:$0xf] }
  0x25   : > { %v2922_v25 = vcombine.low %v409_v1, %v419_v18  ;;  %v514_v27 = vrot.slane %v512_v17, 4  ;;  %v482_v31 = vrot.slane %v481_v19, 4  ;;  %v520_v33 = vrot.slane %v518_v22, 5  ;;  %v3561_v22 = vld [vmem:[%s3404_s24 + $0x44] sm:$0xf] }
  0x26   : > { %v429_v32 = vsel %vm3436_vm2, %v424_v20, %v428_v14  ;;  %v488_v24 = vshrl.u32 %v3458_v48, 16  ;;  %v524_v37 = vrot.slane %v522_v28, 4  ;;  %v530_v38 = vrot.slane %v528_v29, 5  ;;  %v3558_v20 = vld [vmem:[%s3404_s24 + $0x40] sm:$0xf] }
  0x27   : > { %1407 = vrot.lane.b32.xlu0 %v2922_v25, %s3346_s25  ;;  %v2923_v35 = vcombine.low %v429_v32, %v3481_v63  ;;  %v515_v36 = vor.u32 %v514_v27, %v3495_v15  ;;  %v3521_v41 = vsel %vm3436_vm2, %v482_v31, %v486_v12  ;;  %v494_v43 = vshll.u32 %v3503_v23, 16  ;;  %v3842_v63 = vld [vmem:[%s3404_s24 + $0xbc] sm:$0x1] }
  0x28   : > { %5828 = vst [vmem:[#allocation7_spill] sm:$0xff] %v3521_v41  ;;  %v490_v42 = vrot.slane %v488_v24, 4  ;;  %v499_v45 = vshrl.u32 %v3508_v30, 16  ;;  %v3527_v46 = vcombine.low %v3463_v49, %v3521_v41  ;;  %v525_v50 = vor.u32 %v524_v37, %v520_v33  ;;  %v3732_v41 = vld [vmem:[%s3404_s24 + $0x80] sm:$0xf]  ;;  %5869 = vst [vmem:[#allocation48_spill] sm:$0xff] %v3842_v63 }
  0x29   : > { %v516_v47 = vrot.slane %v515_v36, 4  ;;  %v502_v51 = vshll.u32 %v3508_v30, 16  ;;  %v496_v58 = vrot.slane %v494_v43, 5  ;;  %v552_v60 = vshll.u32 %v3517_v39, 16 }
  0x2a   : > { %5829 = vst [vmem:[#allocation8_spill] sm:$0xff] %v3527_v46  ;;  %v491_v57 = vor.u32 %v490_v42, %v486_v12  ;;  %v501_v59 = vrot.slane %v499_v45, 4  ;;  %1413 = vrot.lane.b32.xlu1 %v3527_v46, %s3346_s25  ;;  %v526_v62 = vrot.slane %v525_v50, 4  ;;  %v556_v2 = vshrl.u32 %v3517_v39, 16  ;;  %v3580_v42 = vld [vmem:[%s3404_s24 + $0x60] sm:$0xf] }
  0x2b   : > { %1409 = vrot.lane.b32.xlu0 %v2923_v35, %s3346_s25  ;;  %v3542_v61 = vsel %vm3436_vm2, %v516_v47, %v520_v33  ;;  %v504_v1 = vrot.slane %v502_v51, 5  ;;  %v3548_v9 = vrot.slane %v552_v60, 5  ;;  %v562_v10 = vshll.u32 %v3531_v52, 16  ;;  %v3588_v51 = vld [vmem:[%s3404_s24 + $0x64] sm:$0xf] }
  0x2c   : > { %5830 = vst [vmem:[#allocation9_spill] sm:$0xff] %v3542_v61  ;;  %v492_v6 = vrot.slane %v491_v57, 4  ;;  %v567_v12 = vshrl.u32 %v3534_v56, 16  ;;  %v3554_v14 = vsel %vm3436_vm2, %v526_v62, %v530_v38  ;;  %v558_v18 = vrot.slane %v556_v2, 4  ;;  %v3595_v62 = vld [vmem:[%s3404_s24 + $0x68] sm:$0xf] }
  0x2d   : > { %5831 = vst [vmem:[#allocation10_spill] sm:$0xff] %v3554_v14  ;;  %v505_v17 = vor.u32 %v504_v1, %v501_v59  ;;  %v570_v19 = vshll.u32 %v3534_v56, 16  ;;  %v3565_v25 = vcombine.low %v3542_v61, %v3554_v14  ;;  %v564_v28 = vrot.slane %v562_v10, 5 }
  0x2e   : > { %v3569_v27 = vsel %vm3436_vm2, %v492_v6, %v496_v58  ;;  %v569_v29 = vrot.slane %v567_v12, 4  ;;  %v559_v32 = vor.u32 %v558_v18, %v3548_v9  ;;  %v576_v24 = vshll.u32 %v3546_v8, 16 }
  0x2f   : > { %5832 = vst [vmem:[#allocation11_spill] sm:$0xff] %v3565_v25  ;;  %5833 = vst [vmem:[#allocation12_spill] sm:$0xff] %v3569_v27  ;;  %v506_v31 = vrot.slane %v505_v17, 4  ;;  %v572_v33 = vrot.slane %v570_v19, 5  ;;  %1417 = vrot.lane.b32.xlu1 %v3565_v25, %s3346_s25  ;;  %v533_v35 = vshrl.u32 %v3558_v20, 16  ;;  %v536_v36 = vshll.u32 %v3558_v20, 16 }
  0x30   : > { %v542_v37 = vshll.u32 %v3561_v22, 16  ;;  %v546_v38 = vshrl.u32 %v3561_v22, 16  ;;  %v560_v45 = vrot.slane %v559_v32, 4  ;;  %v578_v50 = vrot.slane %v576_v24, 5  ;;  %v3613_v32 = vld [vmem:[%s3404_s24 + $0x58] sm:$0xf] }
  0x31   : > { %v3585_v43 = vsel %vm3436_vm2, %v506_v31, %v3495_v15  ;;  %v573_v47 = vor.u32 %v572_v33, %v569_v29  ;;  %v535_v58 = vrot.slane %v533_v35, 4  ;;  %v538_v59 = vrot.slane %v536_v36, 5 }
  0x32   : > { %5834 = vst [vmem:[#allocation13_spill] sm:$0xff] %v3585_v43  ;;  %v3592_v57 = vcombine.low %v3569_v27, %v3585_v43  ;;  %v544_v60 = vrot.slane %v542_v37, 5  ;;  %v3599_v1 = vsel %vm3436_vm2, %v560_v45, %v564_v28  ;;  %v548_v2 = vrot.slane %v546_v38, 4  ;;  %v3620_v37 = vld [vmem:[%s3404_s24 + $0x5c] sm:$0x1] }
  0x33   : > { %5836 = vst [vmem:[#allocation15_spill] sm:$0xff] %v3599_v1  ;;  %v574_v15 = vrot.slane %v573_v47, 4  ;;  %v601_v6 = vshrl.u32 %v3580_v42, 16  ;;  %v539_v10 = vor.u32 %v538_v59, %v535_v58  ;;  %v604_v12 = vshll.u32 %v3580_v42, 16  ;;  %v3712_v43 = vld [vmem:[%s3404_s24 + $0x90] sm:$0xf] }
  0x34   : > { %5835 = vst [vmem:[#allocation14_spill] sm:$0xff] %v3592_v57  ;;  %1415 = vrot.lane.b32.xlu0 %v3592_v57, %s3346_s25  ;;  %v610_v17 = vshll.u32 %v3588_v51, 16  ;;  %v614_v18 = vshrl.u32 %v3588_v51, 16  ;;  %v549_v28 = vor.u32 %v548_v2, %v544_v60  ;;  %v620_v31 = vshll.u32 %v3595_v62, 16 }
  0x35   : > { %v3609_v19 = vsel %vm3436_vm2, %v574_v15, %v578_v50  ;;  %v603_v29 = vrot.slane %v601_v6, 4  ;;  %v540_v24 = vrot.slane %v539_v10, 4  ;;  %v606_v35 = vrot.slane %v604_v12, 5  ;;  %v3634_v10 = vld [vmem:[%s3404_s24 + $0x74] sm:$0xf] }
  0x36   : > { %5837 = vst [vmem:[#allocation16_spill] sm:$0xff] %v3609_v19  ;;  %v3617_v33 = vcombine.low %v3599_v1, %v3609_v19  ;;  %v612_v36 = vrot.slane %v610_v17, 5  ;;  %v550_v38 = vrot.slane %v549_v28, 4  ;;  %v616_v45 = vrot.slane %v614_v18, 4  ;;  %v3682_v1 = vld [vmem:[%s3404_s24 + $0x70] sm:$0xf] }
  0x37   : > { %v3622_v47 = vrot.slane %v620_v31, 5  ;;  %v580_v58 = vshrl.u32 %v3546_v8, 16  ;;  %v3629_v59 = vsel %vm3436_vm2, %v540_v24, %v544_v60  ;;  %v607_v15 = vor.u32 %v606_v35, %v603_v29  ;;  %v3643_v31 = vld [vmem:[%s3404_s24 + $0x78] sm:$0xf] }
  0x38   : > { %5838 = vst [vmem:[#allocation17_spill] sm:$0xff] %v3617_v33  ;;  %1421 = vrot.lane.b32.xlu1 %v3617_v33, %s3346_s25  ;;  %5839 = vst [vmem:[#allocation18_spill] sm:$0xff] %v3629_v59  ;;  %v586_v2 = vshll.u32 %v3613_v32, 16  ;;  %v590_v6 = vshrl.u32 %v3613_v32, 16  ;;  %v3639_v12 = vsel %vm3436_vm2, %v550_v38, %v3548_v9  ;;  %v617_v17 = vor.u32 %v616_v45, %v612_v36 }
  0x39   : > { %5840 = vst [vmem:[#allocation19_spill] sm:$0xff] %v3639_v12  ;;  %v582_v18 = vrot.slane %v580_v58, 4  ;;  %v596_v28 = vshll.u32 %v3620_v37, 16  ;;  %v3647_v60 = vcombine.low %v3629_v59, %v3639_v12  ;;  %v608_v29 = vrot.slane %v607_v15, 4  ;;  %v3657_v58 = vld [vmem:[%s3404_s24 + $0x7c] sm:$0x1] }
  0x3a   : > { %v588_v24 = vrot.slane %v586_v2, 5  ;;  %v592_v35 = vrot.slane %v590_v6, 4  ;;  %v618_v55 = vrot.slane %v617_v17, 4  ;;  %v644_v9 = vshll.u32 %v3634_v10, 16 }
  0x3b   : > { %5841 = vst [vmem:[#allocation20_spill] sm:$0xff] %v3647_v60  ;;  %v583_v7 = vor.u32 %v582_v18, %v578_v50  ;;  %v598_v33 = vrot.slane %v596_v28, 5  ;;  %1419 = vrot.lane.b32.xlu0 %v3647_v60, %s3346_s25  ;;  %v3654_v38 = vsel %vm3436_vm2, %v608_v29, %v612_v36  ;;  %v648_v15 = vshrl.u32 %v3634_v10, 16  ;;  %v3670_v36 = vld [vmem:[%s3404_s24 + $0x6c] sm:$0x1] }
  0x3c   : > { %5842 = vst [vmem:[#allocation21_spill] sm:$0xff] %v3654_v38  ;;  %v593_v45 = vor.u32 %v592_v35, %v588_v24  ;;  %v654_v2 = vshll.u32 %v3643_v31, 16  ;;  %v3664_v50 = vsel %vm3436_vm2, %v618_v55, %v3622_v47  ;;  %v3666_v17 = vrot.slane %v644_v9, 5 }
  0x3d   : > { %5843 = vst [vmem:[#allocation22_spill] sm:$0xff] %v3664_v50  ;;  %v584_v6 = vrot.slane %v583_v7, 4  ;;  %v658_v18 = vshrl.u32 %v3643_v31, 16  ;;  %v3674_v28 = vcombine.low %v3654_v38, %v3664_v50  ;;  %v650_v35 = vrot.slane %v648_v15, 4 }
  0x3e   : > { %v594_v29 = vrot.slane %v593_v45, 4  ;;  %v656_v12 = vrot.slane %v654_v2, 5  ;;  %v664_v9 = vshll.u32 %v3657_v58, 16  ;;  %v624_v14 = vshrl.u32 %v3595_v62, 16 }
  0x3f   : > { %5844 = vst [vmem:[#allocation23_spill] sm:$0xff] %v3674_v28  ;;  %v3678_v55 = vsel %vm3436_vm2, %v584_v6, %v588_v24  ;;  %v660_v7 = vrot.slane %v658_v18, 4  ;;  %1425 = vrot.lane.b32.xlu1 %v3674_v28, %s3346_s25  ;;  %v651_v24 = vor.u32 %v650_v35, %v3666_v17  ;;  %v630_v2 = vshll.u32 %v3670_v36, 16  ;;  %v3696_v6 = vld [vmem:[%s3404_s24 + $0x88] sm:$0xf] }
  0x40   : > { %5845 = vst [vmem:[#allocation24_spill] sm:$0xff] %v3678_v55  ;;  %v3689_v45 = vsel %vm3436_vm2, %v594_v29, %v598_v33  ;;  %v666_v33 = vrot.slane %v664_v9, 5  ;;  %v3705_v29 = vld [vmem:[%s3404_s24 + $0x8c] sm:$0x1]  ;;  %v626_v19 = vrot.slane %v624_v14, 4  ;;  %v635_v35 = vshrl.u32 %v3682_v1, 16 }
  0x41   : > { %5846 = vst [vmem:[#allocation25_spill] sm:$0xff] %v3689_v45  ;;  %v3700_v18 = vcombine.low %v3678_v55, %v3689_v45  ;;  %v661_v59 = vor.u32 %v660_v7, %v656_v12  ;;  %v652_v15 = vrot.slane %v651_v24, 4  ;;  %v632_v60 = vrot.slane %v630_v2, 5  ;;  %v3722_v28 = vld [vmem:[%s3404_s24 + $0x94] sm:$0xf] }
  0x42   : > { %v638_v55 = vshll.u32 %v3682_v1, 16  ;;  %v688_v7 = vshll.u32 %v3696_v6, 16  ;;  %v692_v9 = vshrl.u32 %v3696_v6, 16  ;;  %v627_v14 = vor.u32 %v626_v19, %v3622_v47 }
  0x43   : > { %5847 = vst [vmem:[#allocation26_spill] sm:$0xff] %v3700_v18  ;;  %1423 = vrot.lane.b32.xlu0 %v3700_v18, %s3346_s25  ;;  %v662_v25 = vrot.slane %v661_v59, 4  ;;  %v3718_v24 = vsel %vm3436_vm2, %v652_v15, %v656_v12  ;;  %v637_v2 = vrot.slane %v635_v35, 4  ;;  %v698_v59 = vshll.u32 %v3705_v29, 16 }
  0x44   : > { %5848 = vst [vmem:[#allocation27_spill] sm:$0xff] %v3718_v24  ;;  %v640_v45 = vrot.slane %v638_v55, 5  ;;  %v3729_v18 = vrot.slane %v688_v7, 5  ;;  %v694_v61 = vrot.slane %v692_v9, 4  ;;  %v628_v19 = vrot.slane %v627_v14, 4 }
  0x45   : > { %v3727_v38 = vsel %vm3436_vm2, %v662_v25, %v666_v33  ;;  %v700_v47 = vrot.slane %v698_v59, 5  ;;  %v703_v15 = vshrl.u32 %v3712_v43, 16  ;;  %v706_v25 = vshll.u32 %v3712_v43, 16  ;;  %v3743_v33 = vld [vmem:[%s3404_s24 + $0x84] sm:$0xf] }
  0x46   : > { %5849 = vst [vmem:[#allocation28_spill] sm:$0xff] %v3727_v38  ;;  %v3736_v12 = vcombine.low %v3718_v24, %v3727_v38  ;;  %v641_v35 = vor.u32 %v640_v45, %v637_v2  ;;  %v695_v27 = vor.u32 %v694_v61, %v3729_v18  ;;  %v712_v55 = vshll.u32 %v3722_v28, 16  ;;  %5851 = vst [vmem:[#allocation30_spill] sm:$0xff] %v3743_v33  ;;  %v3835_v38 = vld [vmem:[%s3404_s24 + $0xb8] sm:$0xf] }
  0x47   : > { %v3749_v7 = vsel %vm3436_vm2, %v628_v19, %v632_v60  ;;  %v705_v9 = vrot.slane %v703_v15, 4  ;;  %v669_v45 = vshrl.u32 %v3732_v41, 16  ;;  %v672_v61 = vshll.u32 %v3732_v41, 16  ;;  %v3759_v19 = vld [vmem:[%s3404_s24 + $0xa0] sm:$0xf]  ;;  %5867 = vst [vmem:[#allocation46_spill] sm:$0xff] %v3835_v38 }
  0x48   : > { %5850 = vst [vmem:[#allocation29_spill] sm:$0xff] %v3736_v12  ;;  %1429 = vrot.lane.b32.xlu1 %v3736_v12, %s3346_s25  ;;  %5852 = vst [vmem:[#allocation31_spill] sm:$0xff] %v3749_v7  ;;  %v642_v14 = vrot.slane %v641_v35, 4  ;;  %v696_v59 = vrot.slane %v695_v27, 4  ;;  %v708_v57 = vrot.slane %v706_v25, 5  ;;  %v3755_v46 = vrot.slane %v712_v55, 5 }
  0x49   : > { %v671_v12 = vrot.slane %v669_v45, 4  ;;  %v674_v49 = vrot.slane %v672_v61, 5  ;;  %v678_v60 = vshll.u32 %v3743_v33, 16  ;;  %5853 = vst [vmem:[#allocation32_spill] sm:$0xff] %v3759_v19  ;;  %v682_v27 = vshrl.u32 %v3743_v33, 16 }
  0x4a   : > { %v3764_v15 = vsel %vm3436_vm2, %v642_v14, %v3666_v17  ;;  %v3768_v35 = vsel %vm3436_vm2, %v696_v59, %v700_v47  ;;  %v709_v2 = vor.u32 %v708_v57, %v705_v9  ;;  %v3772_v25 = vld [vmem:[%s3404_s24 + $0xa4] sm:$0xf]  ;;  %v3775_v55 = vld [vmem:[%s3404_s24 + $0xa8] sm:$0xf]  ;;  %v737_v57 = vshrl.u32 %v3759_v19, 16 }
  0x4b   : > { %5854 = vst [vmem:[#allocation33_spill] sm:$0xff] %v3764_v15  ;;  %5855 = vst [vmem:[#allocation34_spill] sm:$0xff] %v3768_v35  ;;  %v3779_v45 = vcombine.low %v3749_v7, %v3764_v15  ;;  %v675_v17 = vor.u32 %v674_v49, %v671_v12  ;;  %v680_v14 = vrot.slane %v678_v60, 5  ;;  %v684_v47 = vrot.slane %v682_v27, 4  ;;  %v3796_v27 = vld [vmem:[%s3404_s24 + $0x98] sm:$0xf] }
  0x4c   : > { %5856 = vst [vmem:[#allocation35_spill] sm:$0xff] %v3772_v25  ;;  %5857 = vst [vmem:[#allocation36_spill] sm:$0xff] %v3775_v55  ;;  %v710_v50 = vrot.slane %v709_v2, 4  ;;  %v740_v9 = vshll.u32 %v3759_v19, 16  ;;  %v746_v7 = vshll.u32 %v3772_v25, 16  ;;  %v750_v44 = vshrl.u32 %v3772_v25, 16 }
  0x4d   : > { %5858 = vst [vmem:[#allocation37_spill] sm:$0xff] %v3779_v45  ;;  %1427 = vrot.lane.b32.xlu0 %v3779_v45, %s3346_s25  ;;  %v676_v59 = vrot.slane %v675_v17, 4  ;;  %v756_v61 = vshll.u32 %v3775_v55, 16  ;;  %v685_v12 = vor.u32 %v684_v47, %v680_v14  ;;  %v739_v2 = vrot.slane %v737_v57, 4  ;;  %5860 = vst [vmem:[#allocation39_spill] sm:$0xff] %v3796_v27 }
  0x4e   : > { %v3793_v49 = vsel %vm3436_vm2, %v710_v50, %v3755_v46  ;;  %v742_v60 = vrot.slane %v740_v9, 5  ;;  %v748_v15 = vrot.slane %v746_v7, 5  ;;  %v752_v45 = vrot.slane %v750_v44, 4  ;;  %v3807_v25 = vld [vmem:[%s3404_s24 + $0x9c] sm:$0x1] }
  0x4f   : > { %5859 = vst [vmem:[#allocation38_spill] sm:$0xff] %v3793_v49  ;;  %v3800_v24 = vcombine.low %v3768_v35, %v3793_v49  ;;  %v3804_v17 = vsel %vm3436_vm2, %v676_v59, %v680_v14  ;;  %5863 = vst [vmem:[#allocation42_spill] sm:$0xff] %v3807_v25  ;;  %v3810_v19 = vld [vmem:[%s3404_s24 + $0xb4] sm:$0xf]  ;;  %v686_v50 = vrot.slane %v685_v12, 4  ;;  %v3814_v9 = vrot.slane %v756_v61, 5 }
  0x50   : > { %5862 = vst [vmem:[#allocation41_spill] sm:$0xff] %v3804_v17  ;;  %5864 = vst [vmem:[#allocation43_spill] sm:$0xff] %v3810_v19  ;;  %v743_v57 = vor.u32 %v742_v60, %v739_v2  ;;  %v753_v49 = vor.u32 %v752_v45, %v748_v15  ;;  %v716_v14 = vshrl.u32 %v3722_v28, 16  ;;  %v722_v44 = vshll.u32 %v3796_v27, 16 }
  0x51   : > { %5861 = vst [vmem:[#allocation40_spill] sm:$0xff] %v3800_v24  ;;  %1433 = vrot.lane.b32.xlu1 %v3800_v24, %s3346_s25  ;;  %v726_v7 = vshrl.u32 %v3796_v27, 16  ;;  %v3824_v59 = vsel %vm3436_vm2, %v686_v50, %v3729_v18  ;;  %v732_v61 = vshll.u32 %v3807_v25, 16  ;;  %v780_v2 = vshll.u32 %v3810_v19, 16  ;;  %v3944_v25 = vld [vmem:[%s3404_s24 + $0xe8] sm:$0xf] }
  0x52   : > { %5865 = vst [vmem:[#allocation44_spill] sm:$0xff] %v3824_v59  ;;  %v744_v12 = vrot.slane %v743_v57, 4  ;;  %v3830_v45 = vcombine.low %v3804_v17, %v3824_v59  ;;  %v754_v47 = vrot.slane %v753_v49, 4  ;;  %v718_v24 = vrot.slane %v716_v14, 4 }
  0x53   : > { %v724_v50 = vrot.slane %v722_v44, 5  ;;  %v728_v57 = vrot.slane %v726_v7, 4  ;;  %v734_v40 = vrot.slane %v732_v61, 5  ;;  %v3852_v60 = vrot.slane %v780_v2, 5  ;;  %v3856_v44 = vld [vmem:[%s3404_s24 + $0xac] sm:$0x1] }
  0x54   : > { %5866 = vst [vmem:[#allocation45_spill] sm:$0xff] %v3830_v45  ;;  %v3839_v18 = vsel %vm3436_vm2, %v744_v12, %v748_v15  ;;  %1431 = vrot.lane.b32.xlu0 %v3830_v45, %s3346_s25  ;;  %v3849_v49 = vsel %vm3436_vm2, %v754_v47, %v3814_v9  ;;  %v719_v14 = vor.u32 %v718_v24, %v3755_v46  ;;  %v784_v15 = vshrl.u32 %v3810_v19, 16  ;;  %v3866_v24 = vld [vmem:[%s3404_s24 + $0xb0] sm:$0xf]  ;;  %v3878_v19 = vld [vmem:[%s3404_s24 + $0xc8] sm:$0xf] }
  0x55   : > { %5868 = vst [vmem:[#allocation47_spill] sm:$0xff] %v3839_v18  ;;  %5870 = vst [vmem:[#allocation49_spill] sm:$0xff] %v3849_v49  ;;  %v3860_v7 = vcombine.low %v3839_v18, %v3849_v49  ;;  %v729_v12 = vor.u32 %v728_v57, %v724_v50  ;;  %v790_v61 = vshll.u32 %v3835_v38, 16  ;;  %v794_v35 = vshrl.u32 %v3835_v38, 16 }
  0x56   : > { %5871 = vst [vmem:[#allocation50_spill] sm:$0xff] %v3856_v44  ;;  %v720_v47 = vrot.slane %v719_v14, 4  ;;  %v786_v59 = vrot.slane %v784_v15, 4  ;;  %v800_v46 = vshll.u32 %v3842_v63, 16  ;;  %5873 = vst [vmem:[#allocation52_spill] sm:$0xff] %v3866_v24  ;;  %v760_v2 = vshrl.u32 %v3775_v55, 16 }
  0x57   : > { %5872 = vst [vmem:[#allocation51_spill] sm:$0xff] %v3860_v7  ;;  %1437 = vrot.lane.b32.xlu1 %v3860_v7, %s3346_s25  ;;  %v730_v17 = vrot.slane %v729_v12, 4  ;;  %v792_v45 = vrot.slane %v790_v61, 5  ;;  %v796_v57 = vrot.slane %v794_v35, 4  ;;  %v766_v49 = vshll.u32 %v3856_v44, 16  ;;  %5875 = vst [vmem:[#allocation54_spill] sm:$0xff] %v3878_v19 }
  0x58   : > { %v3874_v14 = vsel %vm3436_vm2, %v720_v47, %v724_v50  ;;  %v787_v15 = vor.u32 %v786_v59, %v3852_v60  ;;  %v802_v63 = vrot.slane %v800_v46, 5  ;;  %v762_v38 = vrot.slane %v760_v2, 4  ;;  %v3886_v44 = vld [vmem:[%s3404_s24 + $0xcc] sm:$0x1]  ;;  %v3895_v2 = vld [vmem:[%s3404_s24 + $0xd0] sm:$0xf] }
  0x59   : > { %5874 = vst [vmem:[#allocation53_spill] sm:$0xff] %v3874_v14  ;;  %v3882_v7 = vsel %vm3436_vm2, %v730_v17, %v734_v40  ;;  %v797_v12 = vor.u32 %v796_v57, %v792_v45  ;;  %v768_v35 = vrot.slane %v766_v49, 5  ;;  %v771_v61 = vshrl.u32 %v3866_v24, 16  ;;  %5877 = vst [vmem:[#allocation56_spill] sm:$0xff] %v3886_v44  ;;  %v3898_v49 = vld [vmem:[%s3404_s24 + $0xd4] sm:$0xf] }
  0x5a   : > { %5876 = vst [vmem:[#allocation55_spill] sm:$0xff] %v3882_v7  ;;  %v3890_v50 = vcombine.low %v3874_v14, %v3882_v7  ;;  %v788_v59 = vrot.slane %v787_v15, 4  ;;  %v763_v47 = vor.u32 %v762_v38, %v3814_v9  ;;  %v774_v46 = vshll.u32 %v3866_v24, 16  ;;  %5879 = vst [vmem:[#allocation58_spill] sm:$0xff] %v3895_v2  ;;  %v3910_v7 = vld [vmem:[%s3404_s24 + $0xc0] sm:$0xf] }
  0x5b   : > { %v798_v40 = vrot.slane %v797_v12, 4  ;;  %v773_v17 = vrot.slane %v771_v61, 4  ;;  %5880 = vst [vmem:[#allocation59_spill] sm:$0xff] %v3898_v49  ;;  %v824_v57 = vshll.u32 %v3878_v19, 16  ;;  %v828_v55 = vshrl.u32 %v3878_v19, 16  ;;  %5882 = vst [vmem:[#allocation61_spill] sm:$0xff] %v3910_v7 }
  0x5c   : > { %5878 = vst [vmem:[#allocation57_spill] sm:$0xff] %v3890_v50  ;;  %1435 = vrot.lane.b32.xlu0 %v3890_v50, %s3346_s25  ;;  %v3906_v15 = vsel %vm3436_vm2, %v788_v59, %v792_v45  ;;  %v764_v38 = vrot.slane %v763_v47, 4  ;;  %v776_v9 = vrot.slane %v774_v46, 5  ;;  %v834_v24 = vshll.u32 %v3886_v44, 16  ;;  %v3918_v50 = vld [vmem:[%s3404_s24 + $0xc4] sm:$0xf] }
  0x5d   : > { %5881 = vst [vmem:[#allocation60_spill] sm:$0xff] %v3906_v15  ;;  %v3914_v12 = vsel %vm3436_vm2, %v798_v40, %v802_v63  ;;  %v826_v61 = vrot.slane %v824_v57, 5  ;;  %v830_v18 = vrot.slane %v828_v55, 4  ;;  %v839_v19 = vshrl.u32 %v3895_v2, 16  ;;  %5884 = vst [vmem:[#allocation63_spill] sm:$0xff] %v3918_v50 }
  0x5e   : > { %5883 = vst [vmem:[#allocation62_spill] sm:$0xff] %v3914_v12  ;;  %v3922_v45 = vcombine.low %v3906_v15, %v3914_v12  ;;  %v3926_v59 = vsel %vm3436_vm2, %v764_v38, %v768_v35  ;;  %v777_v47 = vor.u32 %v776_v9, %v773_v17  ;;  %v836_v46 = vrot.slane %v834_v24, 5  ;;  %v377_v17 = vld [vmem:[%s3404_s24 + $0xe0] sm:$0xf]  ;;  %v378_v9 = vld [vmem:[%s3404_s24 + $0xe4] sm:$0xf] }
  0x5f   : > { %5886 = vst [vmem:[#allocation65_spill] sm:$0xff] %v3926_v59  ;;  %v831_v63 = vor.u32 %v830_v18, %v826_v61  ;;  %v841_v40 = vrot.slane %v839_v19, 4  ;;  %v842_v55 = vshll.u32 %v3895_v2, 16  ;;  %v848_v57 = vshll.u32 %v3898_v49, 16  ;;  %v5943_v26 = vld [vmem:[#allocation51_spill] sm:$0xff] }
  0x60   : > { %5885 = vst [vmem:[#allocation64_spill] sm:$0xff] %v3922_v45  ;;  %1441 = vrot.lane.b32.xlu1 %v3922_v45, %s3346_s25  ;;  %v778_v44 = vrot.slane %v777_v47, 4  ;;  %v805_v12 = vshrl.u32 %v3910_v7, 16  ;;  %v808_v15 = vshll.u32 %v3910_v7, 16  ;;  %v814_v35 = vshll.u32 %v3918_v50, 16 }
  0x61   : > { %v832_v38 = vrot.slane %v831_v63, 4  ;;  %v844_v24 = vrot.slane %v842_v55, 5  ;;  %v850_v18 = vrot.slane %v848_v57, 5  ;;  %v818_v19 = vshrl.u32 %v3918_v50, 16 }
  0x62   : > { %v3941_v2 = vsel %vm3436_vm2, %v778_v44, %v3852_v60  ;;  %v807_v45 = vrot.slane %v805_v12, 4  ;;  %v810_v47 = vrot.slane %v808_v15, 5  ;;  %v816_v14 = vrot.slane %v814_v35, 5 }
  0x63   : > { %5887 = vst [vmem:[#allocation66_spill] sm:$0xff] %v3941_v2  ;;  %v3948_v7 = vcombine.low %v3926_v59, %v3941_v2  ;;  %v3952_v63 = vsel %vm3436_vm2, %v832_v38, %v836_v46  ;;  %v845_v55 = vor.u32 %v844_v24, %v841_v40  ;;  %v820_v57 = vrot.slane %v818_v19, 4  ;;  %v3958_v40 = vld [vmem:[%s3404_s24 + $0xd8] sm:$0xf] }
  0x64   : > { %5888 = vst [vmem:[#allocation67_spill] sm:$0xff] %v3952_v63  ;;  %v811_v50 = vor.u32 %v810_v47, %v807_v45  ;;  %v873_v27 = vshrl.u32 %v377_v17, 16  ;;  %v876_v60 = vshll.u32 %v377_v17, 16  ;;  %v882_v44 = vshll.u32 %v378_v9, 16  ;;  %5889 = vst [vmem:[#allocation68_spill] sm:$0xff] %v3958_v40 }
  0x65   : > { %1439 = vrot.lane.b32.xlu0 %v3948_v7, %s3346_s25  ;;  %v846_v15 = vrot.slane %v845_v55, 4  ;;  %v821_v12 = vor.u32 %v820_v57, %v816_v14  ;;  %v886_v35 = vshrl.u32 %v378_v9, 16  ;;  %v892_v2 = vshll.u32 %v3944_v25, 16  ;;  %v3967_v47 = vld [vmem:[%s3404_s24 + $0xdc] sm:$0x1] }
  0x66   : > { %v812_v59 = vrot.slane %v811_v50, 4  ;;  %v875_v33 = vrot.slane %v873_v27, 4  ;;  %v878_v46 = vrot.slane %v876_v60, 5  ;;  %v884_v38 = vrot.slane %v882_v44, 5  ;;  %5890 = vst [vmem:[#allocation69_spill] sm:$0xff] %v3967_v47 }
  0x67   : > { %v3962_v45 = vsel %vm3436_vm2, %v846_v15, %v850_v18  ;;  %v822_v17 = vrot.slane %v821_v12, 4  ;;  %v888_v24 = vrot.slane %v886_v35, 4  ;;  %v3964_v19 = vrot.slane %v892_v2, 5  ;;  %v382_v15 = vld [vmem:[%s3404_s24 + $0xf4] sm:$0xf] }
  0x68   : > { %v3971_v50 = vcombine.low %v3952_v63, %v3962_v45  ;;  %v3975_v27 = vsel %vm3436_vm2, %v812_v59, %v816_v14  ;;  %v879_v9 = vor.u32 %v878_v46, %v875_v33  ;;  %v852_v55 = vshrl.u32 %v3898_v49, 16 }
  0x69   : > { %v3980_v57 = vsel %vm3436_vm2, %v822_v17, %v826_v61  ;;  %v889_v2 = vor.u32 %v888_v24, %v884_v38  ;;  %v858_v60 = vshll.u32 %v3958_v40, 16  ;;  %v862_v44 = vshrl.u32 %v3958_v40, 16  ;;  %v383_v61 = vld [vmem:[%s3404_s24 + $0xf8] sm:$0xf]  ;;  %v384_v40 = vld [vmem:[%s3404_s24 + $0xfc] sm:$0x1] }
  0x6a   : > { %5891 = vst [vmem:[#allocation70_spill] sm:$0xff] %v3971_v50  ;;  %5892 = vst [vmem:[#allocation71_spill] sm:$0xff] %v3980_v57  ;;  %1445 = vrot.lane.b32.xlu1 %v3971_v50, %s3346_s25  ;;  %v3989_v14 = vcombine.low %v3975_v27, %v3980_v57  ;;  %v880_v33 = vrot.slane %v879_v9, 4  ;;  %v854_v59 = vrot.slane %v852_v55, 4  ;;  %v868_v12 = vshll.u32 %v3967_v47, 16 }
  0x6b   : > { %v890_v35 = vrot.slane %v889_v2, 4  ;;  %v860_v46 = vrot.slane %v858_v60, 5  ;;  %v864_v17 = vrot.slane %v862_v44, 4  ;;  %v916_v57 = vshll.u32 %v382_v15, 16 }
  0x6c   : > { %1443 = vrot.lane.b32.xlu0 %v3989_v14, %s3346_s25  ;;  %v3997_v24 = vsel %vm3436_vm2, %v880_v33, %v884_v38  ;;  %v855_v50 = vor.u32 %v854_v59, %v850_v18  ;;  %v870_v49 = vrot.slane %v868_v12, 5  ;;  %v920_v2 = vshrl.u32 %v382_v15, 16 }
  0x6d   : > { %v4003_v9 = vsel %vm3436_vm2, %v890_v35, %v3964_v19  ;;  %v865_v55 = vor.u32 %v864_v17, %v860_v46  ;;  %v926_v60 = vshll.u32 %v383_v61, 16  ;;  %v918_v33 = vrot.slane %v916_v57, 5 }
  0x6e   : > { %5893 = vst [vmem:[#allocation72_spill] sm:$0xff] %v4003_v9  ;;  %v4007_v44 = vcombine.low %v3997_v24, %v4003_v9  ;;  %v856_v38 = vrot.slane %v855_v50, 4  ;;  %v930_v18 = vshrl.u32 %v383_v61, 16  ;;  %v922_v12 = vrot.slane %v920_v2, 4  ;;  %v380_v61 = vld [vmem:[%s3404_s24 + $0xec] sm:$0x1] }
  0x6f   : > { %v866_v59 = vrot.slane %v865_v55, 4  ;;  %v928_v47 = vrot.slane %v926_v60, 5  ;;  %v936_v63 = vshll.u32 %v384_v40, 16  ;;  %v4023_v55 = vld [vmem:[%s3404_s24 + $0xf0] sm:$0xf]  ;;  %v6007_v9 = vld [vmem:[#allocation17_spill] sm:$0xff] }
  0x70   : > { %5894 = vst [vmem:[#allocation73_spill] sm:$0xff] %v4007_v44  ;;  %1449 = vrot.lane.b32.xlu1 %v4007_v44, %s3346_s25  ;;  %v4013_v15 = vsel %vm3436_vm2, %v856_v38, %v860_v46  ;;  %v932_v35 = vrot.slane %v930_v18, 4  ;;  %v923_v57 = vor.u32 %v922_v12, %v918_v33  ;;  %v907_v12 = vshrl.u32 %v4023_v55, 16 }
  0x71   : > { %5895 = vst [vmem:[#allocation74_spill] sm:$0xff] %v4013_v15  ;;  %v4017_v17 = vsel %vm3436_vm2, %v866_v59, %v870_v49  ;;  %v938_v60 = vrot.slane %v936_v63, 5  ;;  %v896_v49 = vshrl.u32 %v3944_v25, 16  ;;  %v902_v59 = vshll.u32 %v380_v61, 16 }
  0x72   : > { %v4027_v40 = vcombine.low %v4013_v15, %v4017_v17  ;;  %v933_v2 = vor.u32 %v932_v35, %v928_v47  ;;  %v924_v38 = vrot.slane %v923_v57, 4  ;;  %v910_v50 = vshll.u32 %v4023_v55, 16 }
  0x73   : > { %v898_v15 = vrot.slane %v896_v49, 4  ;;  %v909_v25 = vrot.slane %v907_v12, 4  ;;  %v1015_v49 = vrot.slane %v3469_v53, 5  ;;  %v1009_v12 = vrot.slane %v3429_v21, 5 }
  0x74   : > { %1447 = vrot.lane.b32.xlu0 %v4027_v40, %s3346_s25  ;;  %v934_v18 = vrot.slane %v933_v2, 4  ;;  %v4038_v44 = vsel %vm3436_vm2, %v924_v38, %v928_v47  ;;  %v912_v35 = vrot.slane %v910_v50, 5  ;;  %v904_v2 = vrot.slane %v902_v59, 5 }
  0x75   : > { %5896 = vst [vmem:[#allocation75_spill] sm:$0xff] %v4038_v44  ;;  %v899_v61 = vor.u32 %v898_v15, %v3964_v19  ;;  %v1012_v38 = vrot.slane %v3444_v34, 5  ;;  %v2880_v19 = vrot.slane %v3426_v16, 9  ;;  %v1029_v53 = vrot.slane %v3415_v4, 5 }
  0x76   : > { %v4042_v63 = vsel %vm3436_vm2, %v934_v18, %v938_v60  ;;  %v913_v46 = vor.u32 %v912_v35, %v909_v25  ;;  %v2881_v60 = vrot.slane %v3421_v11, 9  ;;  %v1019_v18 = vrot.slane %v3407_v0, 5 }
  0x77   : > { %5897 = vst [vmem:[#allocation76_spill] sm:$0xff] %v4042_v63  ;;  %v4046_v57 = vcombine.low %v4038_v44, %v4042_v63  ;;  %v900_v50 = vrot.slane %v899_v61, 4  ;;  %v1014_v59 = vrot.slane %v1012_v38, 4  ;;  %v2882_v25 = vrot.slane %v3412_v3, 9 }
  0x78   : > { %v914_v15 = vrot.slane %v913_v46, 4  ;;  %v4068_v11 = vsel %vm4049_vm5, %v2881_v60, %v1019_v18  ;;  %v1011_v35 = vrot.slane %v1009_v12, 4  ;;  %v1021_v60 = vrot.slane %v1019_v18, 4 }
  0x79   : > { %5898 = vst [vmem:[#allocation77_spill] sm:$0xff] %v4046_v57  ;;  %1453 = vrot.lane.b32.xlu1 %v4046_v57, %s3346_s25  ;;  %v4064_v34 = vsel %vm3436_vm2, %v900_v50, %v904_v2  ;;  %v1016_v3 = vsel %vm4049_vm5, %v1014_v59, %v1015_v49  ;;  %v4090_v61 = vsel %vm4049_vm5, %v2882_v25, %v1029_v53  ;;  %v1031_v2 = vrot.slane %v1029_v53, 4  ;;  %v4097_v50 = vld [vmem:[%s3404_s24 + $0x18] sm:$0xf] }
  0x7a   : > { %5901 = vst [vmem:[#allocation78_spill] sm:$0xff] %v4064_v34  ;;  %v4073_v0 = vsel %vm3436_vm2, %v914_v15, %v918_v33  ;;  %v2947_v4 = vcombine.low %v1016_v3, %v4068_v11  ;;  %v1010_v33 = vsel %vm4049_vm5, %v2880_v19, %v1009_v12  ;;  %v1032_v49 = vrot.slane %v3458_v48, 5  ;;  %v3282_v19 = vld [vmem:[%s3404_s24 + $0x1c] sm:$0x1] }
  0x7b   : > { %5902 = vst [vmem:[#allocation79_spill] sm:$0xff] %v4073_v0  ;;  %v4081_v21 = vcombine.low %v4064_v34, %v4073_v0  ;;  %v1022_v15 = vrot.slane %v4097_v50, 5  ;;  %v1025_v59 = vrot.slane %v3282_v19, 5  ;;  %v1039_v12 = vrot.slane %v3472_v54, 5 }
  0x7c   : > { %v1013_v25 = vsel %vm4049_vm5, %v1011_v35, %v1012_v38  ;;  %v4106_v48 = vsel %vm4049_vm5, %v1031_v2, %v1032_v49  ;;  %v1042_v53 = vrot.slane %v3487_v5, 5  ;;  %v1045_v3 = vrot.slane %v3493_v13, 5 }
  0x7d   : > { %1451 = vrot.lane.b32.xlu0 %v4081_v21, %s3346_s25  ;;  %1529 = vrot.lane.b32.xlu1 %v2947_v4, %s3347_s26  ;;  %v2946_v18 = vcombine.low %v1010_v33, %v1013_v25  ;;  %v4112_v4 = vcombine.low %v4090_v61, %v4106_v48  ;;  %v4116_v19 = vsel %vm4049_vm5, %v1021_v60, %v1022_v15  ;;  %v1024_v54 = vrot.slane %v1022_v15, 4 }
  0x7e   : > { %v1041_v46 = vrot.slane %v1039_v12, 4  ;;  %v1044_v38 = vrot.slane %v1042_v53, 4  ;;  %v1034_v35 = vrot.slane %v1032_v49, 4  ;;  %v1035_v2 = vrot.slane %v3503_v23, 5 }
  0x7f   : > { %v4124_v5 = vsel %vm4049_vm5, %v1024_v54, %v1025_v59  ;;  %v2883_v13 = vrot.slane %v3508_v30, 9  ;;  %v1052_v33 = vrot.slane %v3517_v39, 5  ;;  %v1055_v60 = vrot.slane %v3531_v52, 5 }
  0x80   : > { %v2948_v49 = vcombine.low %v4116_v19, %v4124_v5  ;;  %v4133_v23 = vsel %vm4049_vm5, %v1041_v46, %v1042_v53  ;;  %v4137_v15 = vsel %vm4049_vm5, %v1044_v38, %v1045_v3  ;;  %v4141_v59 = vsel %vm4049_vm5, %v1034_v35, %v1035_v2 }
  0x81   : > { %1527 = vrot.lane.b32.xlu0 %v2946_v18, %s3347_s26  ;;  %1533 = vrot.lane.b32.xlu1 %v4112_v4, %s3347_s26  ;;  %v4145_v30 = vcombine.low %v4133_v23, %v4137_v15  ;;  %v4149_v39 = vsel %vm4049_vm5, %v2883_v13, %v1039_v12  ;;  %v1054_v52 = vrot.slane %v1052_v33, 4  ;;  %v2885_v46 = vrot.slane %v3534_v56, 9 }
  0x82   : > { %v4154_v25 = vcombine.low %v4141_v59, %v4149_v39  ;;  %v1059_v53 = vrot.slane %v3546_v8, 5  ;;  %v2884_v3 = vrot.slane %v3558_v20, 9  ;;  %v1049_v18 = vrot.slane %v3561_v22, 5 }
  0x83   : > { %v4164_v12 = vsel %vm4049_vm5, %v1054_v52, %v1055_v60  ;;  %v2886_v56 = vrot.slane %v3580_v42, 9  ;;  %v1069_v54 = vrot.slane %v3588_v51, 5  ;;  %v1072_v38 = vrot.slane %v3595_v62, 5 }
  0x84   : > { %v4171_v8 = vsel %vm4049_vm5, %v2885_v46, %v1059_v53  ;;  %v4175_v20 = vsel %vm4049_vm5, %v2884_v3, %v1049_v18  ;;  %v1051_v22 = vrot.slane %v1049_v18, 4  ;;  %v1061_v35 = vrot.slane %v1059_v53, 4 }
  0x85   : > { %1531 = vrot.lane.b32.xlu0 %v2948_v49, %s3347_s26  ;;  %1537 = vrot.lane.b32.xlu1 %v4145_v30, %s3347_s26  ;;  %v4179_v2 = vcombine.low %v4164_v12, %v4171_v8  ;;  %v4185_v51 = vsel %vm4049_vm5, %v2886_v56, %v1069_v54  ;;  %v1071_v62 = vrot.slane %v1069_v54, 4  ;;  %v1062_v60 = vrot.slane %v3613_v32, 5 }
  0x86   : > { %v4189_v13 = vsel %vm4049_vm5, %v1051_v22, %v1052_v33  ;;  %v1065_v49 = vrot.slane %v3620_v37, 5  ;;  %v1079_v52 = vrot.slane %v3634_v10, 5  ;;  %v1082_v37 = vrot.slane %v3643_v31, 5 }
  0x87   : > { %v4200_v46 = vcombine.low %v4175_v20, %v4189_v13  ;;  %v4206_v32 = vsel %vm4049_vm5, %v1071_v62, %v1072_v38  ;;  %v4215_v53 = vsel %vm4049_vm5, %v1061_v35, %v1062_v60  ;;  %v1064_v3 = vrot.slane %v1062_v60, 4 }
  0x88   : > { %5903 = vst [vmem:[#allocation80_spill] sm:$0xff] %v4206_v32  ;;  %v4211_v10 = vcombine.low %v4185_v51, %v4206_v32  ;;  %v1081_v18 = vrot.slane %v1079_v52, 4  ;;  %v1084_v54 = vrot.slane %v1082_v37, 4  ;;  %v1085_v22 = vrot.slane %v3657_v58, 5 }
  0x89   : > { %1535 = vrot.lane.b32.xlu0 %v4154_v25, %s3347_s26  ;;  %1541 = vrot.lane.b32.xlu1 %v4179_v2, %s3347_s26  ;;  %v1074_v62 = vrot.slane %v1072_v38, 4  ;;  %v4222_v31 = vsel %vm4049_vm5, %v1064_v3, %v1065_v49  ;;  %v1075_v35 = vrot.slane %v3670_v36, 5  ;;  %v2887_v60 = vrot.slane %v3682_v1, 9 }
  0x8a   : > { %v4226_v16 = vsel %vm4049_vm5, %v1081_v18, %v1082_v37  ;;  %v4236_v58 = vcombine.low %v4215_v53, %v4222_v31  ;;  %v4242_v49 = vsel %vm4049_vm5, %v1084_v54, %v1085_v22  ;;  %v1092_v36 = vrot.slane %v3696_v6, 5  ;;  %v5912_v6 = vld [vmem:[#allocation42_spill] sm:$0xff] }
  0x8b   : > { %5904 = vst [vmem:[#allocation81_spill] sm:$0xff] %v4226_v16  ;;  %5905 = vst [vmem:[#allocation82_spill] sm:$0xff] %v4242_v49  ;;  %v4247_v1 = vcombine.low %v4226_v16, %v4242_v49  ;;  %v4251_v37 = vsel %vm4049_vm5, %v1074_v62, %v1075_v35  ;;  %v4255_v3 = vsel %vm4049_vm5, %v2887_v60, %v1079_v52  ;;  %v1095_v18 = vrot.slane %v3705_v29, 5  ;;  %v5909_v35 = vld [vmem:[#allocation30_spill] sm:$0xff]  ;;  %v5911_v60 = vld [vmem:[#allocation39_spill] sm:$0xff] }
  0x8c   : > { %5907 = vst [vmem:[#allocation84_spill] sm:$0xff] %v4251_v37  ;;  %5908 = vst [vmem:[#allocation85_spill] sm:$0xff] %v4255_v3  ;;  %v1094_v22 = vrot.slane %v1092_v36, 4  ;;  %v2889_v38 = vrot.slane %v3712_v43, 9  ;;  %v1099_v56 = vrot.slane %v3722_v28, 5  ;;  %v2888_v62 = vrot.slane %v3732_v41, 9 }
  0x8d   : > { %1539 = vrot.lane.b32.xlu0 %v4200_v46, %s3347_s26  ;;  %1545 = vrot.lane.b32.xlu1 %v4211_v10, %s3347_s26  ;;  %5906 = vst [vmem:[#allocation83_spill] sm:$0xff] %v4247_v1  ;;  %v1089_v33 = vrot.slane %v5909_v35, 5  ;;  %v4272_v29 = vcombine.low %v4251_v37, %v4255_v3  ;;  %v1102_v41 = vrot.slane %v5911_v60, 5  ;;  %v1105_v35 = vrot.slane %v5912_v6, 5  ;;  %v5955_v37 = vld [vmem:[#allocation46_spill] sm:$0xff] }
  0x8e   : > { %v4276_v52 = vsel %vm4049_vm5, %v1094_v22, %v1095_v18  ;;  %v1100_v54 = vsel %vm4049_vm5, %v2889_v38, %v1099_v56  ;;  %v4306_v38 = vld [vmem:[%s3404_s24 + $0x14] sm:$0xf] }
  0x8f   : > { %5910 = vst [vmem:[#allocation30_spill] sm:$0xff] %v4276_v52  ;;  %v4284_v42 = vsel %vm4049_vm5, %v2888_v62, %v1089_v33  ;;  %v1091_v63 = vrot.slane %v1089_v33, 4  ;;  %v4287_v57 = vcombine.low %v4276_v52, %v1100_v54  ;;  %v1104_v22 = vrot.slane %v1102_v41, 4  ;;  %v4309_v62 = vld [vmem:[%s3404_s24 + $0x10] sm:$0xf] }
  0x90   : > { %5913 = vst [vmem:[#allocation39_spill] sm:$0xff] %v4284_v42 }
  0x91   : > { %1543 = vrot.lane.b32.xlu0 %v4236_v58, %s3347_s26  ;;  %1549 = vrot.lane.b32.xlu1 %v4247_v1, %s3347_s26  ;;  %v1101_v1 = vrot.slane %v1099_v56, 4  ;;  %5914 = vst [vmem:[#allocation42_spill] sm:$0xff] %v4287_v57  ;;  %v4293_v6 = vsel %vm4049_vm5, %v1091_v63, %v1092_v36  ;;  %v2970_v63 = vcombine.low %v4309_v62, %v4306_v38 }
  0x92   : > { %5915 = vst [vmem:[#allocation86_spill] sm:$0xff] %v4293_v6  ;;  %v4301_v33 = vcombine.low %v4284_v42, %v4293_v6  ;;  %v1106_v18 = vsel %vm4049_vm5, %v1104_v22, %v1105_v35  ;;  %v5919_v35 = vld [vmem:[#allocation3_spill] sm:$0xff] }
  0x93   : > { %v1103_v36 = vsel %vm4049_vm5, %v1101_v1, %v1102_v41  ;;  %v2982_v1 = vcombine.low %v3712_v43, %v3722_v28  ;;  %v5918_v41 = vld [vmem:[#allocation6_spill] sm:$0xff]  ;;  %v5922_v43 = vld [vmem:[#allocation4_spill] sm:$0xff]  ;;  %v5923_v28 = vld [vmem:[#allocation5_spill] sm:$0xff] }
  0x94   : > { %5916 = vst [vmem:[#allocation87_spill] sm:$0xff] %v4301_v33  ;;  %v4320_v56 = vcombine.low %v1103_v36, %v1106_v18  ;;  %v5920_v22 = vcombine.low %v5918_v41, %v5919_v35  ;;  %v5926_v41 = vld [vmem:[#allocation38_spill] sm:$0xff] }
  0x95   : > { %1547 = vrot.lane.b32.xlu0 %v4272_v29, %s3347_s26  ;;  %1553 = vrot.lane.b32.xlu1 %v4287_v57, %s3347_s26  ;;  %v3285_v57 = vld [vmem:[%s3404_s24 + $0x20] sm:$0xf] }
  0x96   : > { %5917 = vst [vmem:[#allocation88_spill] sm:$0xff] %v4320_v56  ;;  %v2971_v52 = vcombine.low %v4097_v50, %v3285_v57 }
  0x99   : > { %1551 = vrot.lane.b32.xlu0 %v4301_v33, %s3347_s26  ;;  %1602 = vrot.lane.b32.xlu1 %v2970_v63, %s3348_s27  ;;  %v5921_v63 = vld [vmem:[#allocation32_spill] sm:$0xff] }
  0x9a   : > { %v2983_v6 = vcombine.low %v5911_v60, %v5921_v63  ;;  %v3018_v60 = vcombine.low %v4068_v11, %v4116_v19  ;;  %v3262_v11 = vld [vmem:[%s5702_s2 + $0x20] ss:$0 sps:$4 sm:$0xff]   ;;  %v3030_v19 = vcombine.low %v1100_v54, %v1103_v36  ;;  %v4383_v36 = vld [vmem:[%s3404_s24 + $0x28] sm:$0xf] }
  0x9b   : > { %3191 = vmatprep.subr.msk.bf16.mxu0 %vm2470_vm6, %v3262_v11  ;;  %v2472_v54 = vsel %vm2470_vm6, %v3262_v11, 0  ;;  %3192 = vmatprep.subr.msk.bf16.mxu1 %vm2470_vm6, %v3262_v11 }
  0x9c   : > { %3124 = vmatpush3.bf16.msra.mxu0 %v2472_v54  ;;  %3186 = vmatpush3.bf16.msra.mxu1 %v2472_v54  ;;  %v5935_v54 = vld [vmem:[#allocation52_spill] sm:$0xff] }
  0x9d   : > { %1555 = vrot.lane.b32.xlu0 %v4320_v56, %s3347_s26  ;;  %1604 = vrot.lane.b32.xlu1 %v2971_v52, %s3348_s27  ;;  %v5925_v56 = vld [vmem:[#allocation53_spill] sm:$0xff]  ;;  %v5928_v52 = vld [vmem:[#allocation55_spill] sm:$0xff]  ;;  %v2891_v16 = vrot.slane %v5935_v54, 9 }
  0x9e   : > { %v3006_v35 = vcombine.low %v5926_v41, %v5925_v56  ;;  %v4365_v41 = vld [vmem:[%s3404_s24 + $0x24] sm:$0xf] }
  0xa1   : > { %1626 = vrot.lane.b32.xlu0 %v2982_v1, %s3348_s27  ;;  %1677 = vrot.lane.b32.xlu1 %v5920_v22, %s3349_s28  ;;  %v5924_v1 = vcombine.low %v5922_v43, %v5923_v28  ;;  %v4349_v22 = vpop.permute.xlu1 %1411  ;;  %v3019_v43 = vcombine.low %v4124_v5, %v4090_v61  ;;  %v2890_v28 = vrot.slane %v5921_v63, 9  ;;  %v4370_v61 = vpop.permute.xlu0 %1407 }
  0xa5   : > { %1628 = vrot.lane.b32.xlu0 %v2983_v6, %s3348_s27  ;;  %1679 = vrot.lane.b32.xlu1 %v5924_v1, %s3349_s28  ;;  %v5927_v6 = vld [vmem:[#allocation47_spill] sm:$0xff]  ;;  %v4372_v5 = vpop.permute.xlu1 %1413 }
  0xa6   : > { %v3007_v42 = vcombine.low %v5928_v52, %v5927_v6  ;;  %v5929_v1 = vld [vmem:[#allocation35_spill] sm:$0xff]  ;;  %v4368_v52 = vcombine.low %v3285_v57, %v4365_v41  ;;  %5931 = vst [vmem:[#allocation3_spill] sm:$0xff] %v4372_v5  ;;  %v6008_v5 = vld [vmem:[#allocation26_spill] sm:$0xff] }
  0xa7   : > { %v1109_v56 = vrot.slane %v5929_v1, 5 }
  0xa8   : > { %5930 = vst [vmem:[#allocation6_spill] sm:$0xff] %v4368_v52 }
  0xa9   : > { %1701 = vrot.lane.b32.xlu0 %v3006_v35, %s3349_s28  ;;  %1752 = vrot.lane.b32.xlu1 %v3018_v60, %s3350_s29  ;;  %v1110_v35 = vsel %vm4049_vm5, %v2890_v28, %v1109_v56  ;;  %v4386_v60 = vld [vmem:[%s3404_s24 + $0x30] sm:$0xf]  ;;  %v4395_v28 = vpop.permute.xlu0 %1409  ;;  %v4397_v11 = vpop.permute.xlu1 %1417 }
  0xaa   : > { %v3031_v57 = vcombine.low %v1106_v18, %v1110_v35  ;;  %v4390_v6 = vcombine.low %v4383_v36, %v4386_v60  ;;  %5933 = vst [vmem:[#allocation4_spill] sm:$0xff] %v4397_v11  ;;  %v4404_v18 = vcombine.low %v5921_v63, %v5929_v1  ;;  %v1111_v11 = vrot.slane %v1109_v56, 4 }
  0xac   : > { %5932 = vst [vmem:[#allocation32_spill] sm:$0xff] %v4390_v6 }
  0xad   : > { %1703 = vrot.lane.b32.xlu0 %v3007_v42, %s3349_s28  ;;  %1754 = vrot.lane.b32.xlu1 %v3019_v43, %s3350_s29  ;;  %v3263_v42 = vld [vmem:[%s5702_s2 + $0x18] sm:$0xff]   ;;  %v3264_v43 = vld [vmem:[%s5702_s2 + $0x10] sm:$0xff]   ;;  %v4417_v63 = vpop.permute.xlu0 %1415  ;;  %v4419_v33 = vpop.permute.xlu1 %1421 }
  0xae   : > { %3125 = vmatprep.subr.bf16.mxu0 %v3263_v42  ;;  %3182 = vmatprep.subr.bf16.mxu1 %v3263_v42  ;;  %5938 = vst [vmem:[#allocation53_spill] sm:$0xff] %v4417_v63  ;;  %5939 = vst [vmem:[#allocation38_spill] sm:$0xff] %v4419_v33 }
  0xaf   : > { %3126 = vmatpush3.bf16.msra.mxu0 %v3263_v42  ;;  %3187 = vmatpush3.bf16.msra.mxu1 %v3263_v42  ;;  %v5934_v42 = vld [vmem:[#allocation8_spill] sm:$0xff] }
  0xb0   : > { %3127 = vmatprep.subr.bf16.mxu0 %v3264_v43  ;;  %3183 = vmatprep.subr.bf16.mxu1 %v3264_v43 }
  0xb1   : > { %1776 = vrot.lane.b32.xlu0 %v3030_v19, %s3350_s29  ;;  %1806 = vrot.lane.b32.xlu1 %v4368_v52, %s3351_s8  ;;  %v3265_v19 = vld [vmem:[%s5702_s2 + $0x8] sm:$0xff]   ;;  %v4429_v33 = vpop.permute.xlu0 %1419  ;;  %v4431_v63 = vpop.permute.xlu1 %1425  ;;  %v3298_v52 = vld [vmem:[%s3404_s24 + $0x4] sm:$0xf] }
  0xb2   : > { %5941 = vst [vmem:[#allocation47_spill] sm:$0xff] %v4429_v33  ;;  %5942 = vst [vmem:[#allocation55_spill] sm:$0xff] %v4431_v63  ;;  %v5945_v33 = vld [vmem:[#allocation43_spill] sm:$0xff] }
  0xb3   : > { %3128 = vmatpush3.bf16.msra.mxu0 %v3264_v43  ;;  %3188 = vmatpush3.bf16.msra.mxu1 %v3264_v43  ;;  %v3266_v43 = vld [vmem:[%s5702_s2] sm:$0xff]   ;;  %v1119_v3 = vrot.slane %v5945_v33, 5 }
  0xb4   : > { %3129 = vmatprep.subr.bf16.mxu0 %v3265_v19  ;;  %3184 = vmatprep.subr.bf16.mxu1 %v3265_v19 }
  0xb5   : > { %1778 = vrot.lane.b32.xlu0 %v3031_v57, %s3350_s29  ;;  %1808 = vrot.lane.b32.xlu1 %v4390_v6, %s3351_s8  ;;  %v5936_v57 = vld [vmem:[#allocation36_spill] sm:$0xff] }
  0xb6   : > { %v4415_v49 = vcombine.low %v5936_v57, %v5935_v54  ;;  %v1112_v6 = vrot.slane %v5936_v57, 5 }
  0xb7   : > { %3130 = vmatpush3.bf16.msra.mxu0 %v3265_v19  ;;  %3189 = vmatpush3.bf16.msra.mxu1 %v3265_v19  ;;  %v5944_v19 = vld [vmem:[#allocation50_spill] sm:$0xff] }
  0xb8   : > { %5937 = vst [vmem:[#allocation5_spill] sm:$0xff] %v4415_v49  ;;  %3131 = vmatprep.subr.bf16.mxu0 %v3266_v43  ;;  %3185 = vmatprep.subr.bf16.mxu1 %v3266_v43  ;;  %v1113_v56 = vsel %vm4049_vm5, %v1111_v11, %v1112_v6 }
  0xb9   : > { %1830 = vrot.lane.b32.xlu0 %v4404_v18, %s3351_s8  ;;  %1860 = vrot.lane.b32.xlu1 %v5934_v42, %s3352_s13  ;;  %v5940_v42 = vld [vmem:[#allocation14_spill] sm:$0xff] }
  0xbb   : > { %3132 = vmatpush3.bf16.msra.mxu0 %v3266_v43  ;;  %3190 = vmatpush3.bf16.msra.mxu1 %v3266_v43  ;;  %v4446_v43 = vpop.permute.xlu0 %1423 }
  0xbc   : > { %5946 = vst [vmem:[#allocation35_spill] sm:$0xff] %v4446_v43  ;;  %v1121_v43 = vrot.slane %v1119_v3, 4 }
  0xbd   : > { %1832 = vrot.lane.b32.xlu0 %v4415_v49, %s3351_s8  ;;  %1862 = vrot.lane.b32.xlu1 %v5940_v42, %s3352_s13  ;;  %v1115_v42 = vrot.slane %v5944_v19, 5  ;;  %v1114_v49 = vrot.slane %v1112_v6, 4  ;;  %v1120_v6 = vsel %vm4049_vm5, %v2891_v16, %v1119_v3  ;;  %v2972_v16 = vcombine.low %v4365_v41, %v4383_v36  ;;  %v5951_v41 = vld [vmem:[#allocation12_spill] sm:$0xff]  ;;  %v5952_v36 = vld [vmem:[#allocation7_spill] sm:$0xff] }
  0xbf   : > { %v1116_v11 = vsel %vm4049_vm5, %v1114_v49, %v1115_v42  ;;  %v2985_v49 = vcombine.low %v5935_v54, %v5945_v33  ;;  %v5949_v42 = vld [vmem:[#allocation65_spill] sm:$0xff]  ;;  %v2996_v54 = vcombine.low %v5952_v36, %v5951_v41 }
  0xc0   : > { %v3032_v44 = vcombine.low %v1113_v56, %v1116_v11 }
  0xc1   : > { %1884 = vrot.lane.b32.xlu0 %v5943_v26, %s3352_s13  ;;  %1914 = vrot.lane.b32.xlu1 %v4112_v4, %s3353_s20  ;;  %v2961_v26 = vcombine.low %v1110_v35, %v1113_v56  ;;  %v4448_v4 = vpop.permute.xlu1 %1429  ;;  %v4460_v35 = vpop.permute.xlu0 %1427  ;;  %v4511_v56 = vcombine.low %v5945_v33, %v5955_v37 }
  0xc2   : > { %5947 = vst [vmem:[#allocation8_spill] sm:$0xff] %v4448_v4  ;;  %5948 = vst [vmem:[#allocation52_spill] sm:$0xff] %v4460_v35 }
  0xc3   : > { %5962 = vst [vmem:[#allocation50_spill] sm:$0xff] %v4511_v56 }
  0xc5   : > { %1886 = vrot.lane.b32.xlu0 %v3948_v7, %s3352_s13  ;;  %1916 = vrot.lane.b32.xlu1 %v4154_v25, %s3353_s20  ;;  %v4456_v7 = vcombine.low %v1116_v11, %v1120_v6  ;;  %v2984_v25 = vcombine.low %v5929_v1, %v5936_v57  ;;  %v4462_v19 = vpop.permute.xlu1 %1433  ;;  %v3289_v1 = vld [vmem:[%s3404_s24 + $0x34] sm:$0xf]  ;;  %v5965_v11 = vcombine.low %v4149_v39, %v4133_v23 }
  0xc6   : > { %v2973_v57 = vcombine.low %v4386_v60, %v3289_v1  ;;  %v4477_v35 = vpop.permute.xlu0 %1431  ;;  %v1122_v60 = vrot.slane %v5955_v37, 5 }
  0xc8   : > { %v1123_v41 = vsel %vm4049_vm5, %v1121_v43, %v1122_v60  ;;  %v1124_v39 = vrot.slane %v1122_v60, 4 }
  0xc9   : > { %1938 = vrot.lane.b32.xlu0 %v2961_v26, %s3353_s20  ;;  %1557 = vrot.lane.b32.xlu1 %v2961_v26, %s3347_s26  ;;  %v5950_v26 = vld [vmem:[#allocation49_spill] sm:$0xff]  ;;  %v4479_v63 = vpop.permute.xlu1 %1437  ;;  %v3033_v36 = vcombine.low %v1120_v6, %v1123_v41  ;;  %v5967_v6 = vld [vmem:[#allocation63_spill] sm:$0xff] }
  0xca   : > { %v3008_v4 = vcombine.low %v5950_v26, %v5949_v42  ;;  %v5958_v26 = vld [vmem:[#allocation13_spill] sm:$0xff] }
  0xcd   : > { %1940 = vrot.lane.b32.xlu0 %v4456_v7, %s3353_s20  ;;  %1630 = vrot.lane.b32.xlu1 %v2984_v25, %s3348_s27  ;;  %v5953_v25 = vld [vmem:[#allocation60_spill] sm:$0xff] }
  0xce   : > { %v4488_v32 = vpop.permute.xlu0 %1435 }
  0xd1   : > { %1606 = vrot.lane.b32.xlu0 %v2972_v16, %s3348_s27  ;;  %1632 = vrot.lane.b32.xlu1 %v2985_v49, %s3348_s27  ;;  %v5954_v16 = vld [vmem:[#allocation66_spill] sm:$0xff] }
  0xd2   : > { %v3009_v49 = vcombine.low %v5954_v16, %v5953_v25  ;;  %v4490_v42 = vpop.permute.xlu1 %1441  ;;  %v5968_v16 = vld [vmem:[#allocation61_spill] sm:$0xff] }
  0xd3   : > { %5956 = vst [vmem:[#allocation36_spill] sm:$0xff] %v4490_v42  ;;  %v4528_v33 = vcombine.low %v5968_v16, %v5967_v6 }
  0xd5   : > { %1608 = vrot.lane.b32.xlu0 %v2973_v57, %s3348_s27  ;;  %1705 = vrot.lane.b32.xlu1 %v3008_v4, %s3349_s28  ;;  %v5957_v57 = vld [vmem:[#allocation9_spill] sm:$0xff]  ;;  %5969 = vst [vmem:[#allocation12_spill] sm:$0xff] %v4528_v33 }
  0xd6   : > { %v2997_v4 = vcombine.low %v5958_v26, %v5957_v57  ;;  %v5972_v57 = vld [vmem:[#allocation48_spill] sm:$0xff] }
  0xd7   : > { %v4500_v3 = vpop.permute.xlu0 %1439  ;;  %v1125_v26 = vrot.slane %v5972_v57, 5 }
  0xd8   : > { %5959 = vst [vmem:[#allocation14_spill] sm:$0xff] %v4500_v3 }
  0xd9   : > { %1681 = vrot.lane.b32.xlu0 %v2996_v54, %s3349_s28  ;;  %1707 = vrot.lane.b32.xlu1 %v3009_v49, %s3349_s28  ;;  %v5961_v54 = vcombine.low %v4106_v48, %v4141_v59  ;;  %v3290_v48 = vld [vmem:[%s3404_s24 + $0x38] sm:$0xf] }
  0xda   : > { %v4524_v59 = vcombine.low %v3289_v1, %v3290_v48  ;;  %v1129_v1 = vrot.slane %v5967_v6, 5 }
  0xdc   : > { %v4502_v25 = vpop.permute.xlu1 %1445  ;;  %5966 = vst [vmem:[#allocation49_spill] sm:$0xff] %v4524_v59  ;;  %v1131_v60 = vrot.slane %v1129_v1, 4 }
  0xdd   : > { %1683 = vrot.lane.b32.xlu0 %v2997_v4, %s3349_s28  ;;  %1780 = vrot.lane.b32.xlu1 %v3032_v44, %s3350_s29  ;;  %5960 = vst [vmem:[#allocation51_spill] sm:$0xff] %v4502_v25  ;;  %v3291_v4 = vld [vmem:[%s3404_s24 + $0x40] sm:$0xf] }
  0xde   : > { %v4513_v43 = vpop.permute.xlu0 %1443 }
  0xdf   : > { %5963 = vst [vmem:[#allocation43_spill] sm:$0xff] %v4513_v43  ;;  %v5977_v43 = vld [vmem:[#allocation11_spill] sm:$0xff] }
  0xe1   : > { %1756 = vrot.lane.b32.xlu0 %v5961_v54, %s3350_s29  ;;  %1782 = vrot.lane.b32.xlu1 %v3033_v36, %s3350_s29  ;;  %v3292_v36 = vld [vmem:[%s3404_s24 + $0x44] sm:$0xf] }
  0xe2   : > { %v4515_v44 = vpop.permute.xlu1 %1449  ;;  %v4542_v54 = vcombine.low %v3291_v4, %v3292_v36 }
  0xe3   : > { %5964 = vst [vmem:[#allocation65_spill] sm:$0xff] %v4515_v44  ;;  %v1126_v44 = vsel %vm4049_vm5, %v1124_v39, %v1125_v26 }
  0xe4   : > { %5973 = vst [vmem:[#allocation66_spill] sm:$0xff] %v4542_v54 }
  0xe5   : > { %1758 = vrot.lane.b32.xlu0 %v5965_v11, %s3350_s29  ;;  %1834 = vrot.lane.b32.xlu1 %v4511_v56, %s3351_s8  ;;  %v5974_v11 = vld [vmem:[#allocation64_spill] sm:$0xff] }
  0xe6   : > { %v4532_v49 = vpop.permute.xlu0 %1447 }
  0xe7   : > { %5970 = vst [vmem:[#allocation7_spill] sm:$0xff] %v4532_v49  ;;  %v5975_v49 = vld [vmem:[#allocation54_spill] sm:$0xff] }
  0xe8   : > { %v1132_v57 = vrot.slane %v5975_v49, 5 }
  0xe9   : > { %1810 = vrot.lane.b32.xlu0 %v4524_v59, %s3351_s8  ;;  %1836 = vrot.lane.b32.xlu1 %v4528_v33, %s3351_s8 }
  0xea   : > { %v1133_v39 = vsel %vm4049_vm5, %v1131_v60, %v1132_v57 }
  0xeb   : > { %v4536_v23 = vpop.permute.xlu1 %1453 }
  0xec   : > { %5971 = vst [vmem:[#allocation60_spill] sm:$0xff] %v4536_v23  ;;  %v2892_v23 = vrot.slane %v5968_v16, 9 }
  0xed   : > { %1812 = vrot.lane.b32.xlu0 %v4542_v54, %s3351_s8  ;;  %1888 = vrot.lane.b32.xlu1 %v5974_v11, %s3352_s13  ;;  %v2963_v54 = vcombine.low %v1123_v41, %v1126_v44 }
  0xee   : > { %v1130_v11 = vsel %vm4049_vm5, %v2892_v23, %v1129_v1 }
  0xef   : > { %v4552_v25 = vpop.permute.xlu0 %1451  ;;  %v4554_v33 = vpop.permute.xlu1 %1529 }
  0xf0   : > { %5976 = vst [vmem:[#allocation46_spill] sm:$0xff] %v4552_v25  ;;  %v5979_v25 = vld [vmem:[#allocation20_spill] sm:$0xff] }
  0xf1   : > { %1864 = vrot.lane.b32.xlu0 %v5977_v43, %s3352_s13  ;;  %1890 = vrot.lane.b32.xlu1 %v3989_v14, %s3352_s13  ;;  %v4571_v43 = vcombine.low %v1130_v11, %v1133_v39 }
  0xf3   : > { %v4564_v26 = vpop.permute.xlu0 %1527  ;;  %v4566_v56 = vpop.permute.xlu1 %1533 }
  0xf4   : > { %5978 = vst [vmem:[#allocation9_spill] sm:$0xff] %v4566_v56  ;;  %v3297_v56 = vld [vmem:[%s3404_s24] sm:$0xf] }
  0xf5   : > { %1866 = vrot.lane.b32.xlu0 %v5979_v25, %s3352_s13  ;;  %1942 = vrot.lane.b32.xlu1 %v2963_v54, %s3353_s20  ;;  %v2986_v25 = vcombine.low %v5955_v37, %v5968_v16  ;;  %v3293_v37 = vld [vmem:[%s3404_s24 + $0x48] sm:$0xf] }
  0xf6   : > { %v2975_v16 = vcombine.low %v3292_v36, %v3293_v37 }
  0xf7   : > { %v4573_v42 = vpop.permute.xlu0 %1531  ;;  %v4575_v14 = vpop.permute.xlu1 %1537 }
  0xf8   : > { %5980 = vst [vmem:[#allocation13_spill] sm:$0xff] %v4575_v14 }
  0xf9   : > { %1918 = vrot.lane.b32.xlu0 %v4145_v30, %s3353_s20  ;;  %1944 = vrot.lane.b32.xlu1 %v4571_v43, %s3353_s20  ;;  %v2974_v30 = vcombine.low %v3290_v48, %v3291_v4  ;;  %v5989_v48 = vld [vmem:[#allocation18_spill] sm:$0xff] }
  0xfb   : > { %v4581_v41 = vpop.permute.xlu0 %1535  ;;  %v4583_v23 = vpop.permute.xlu1 %1541 }
  0xfc   : > { %5981 = vst [vmem:[#allocation63_spill] sm:$0xff] %v4581_v41  ;;  %5982 = vst [vmem:[#allocation61_spill] sm:$0xff] %v4583_v23  ;;  %v2987_v23 = vcombine.low %v5967_v6, %v5975_v49  ;;  %v5990_v6 = vld [vmem:[#allocation10_spill] sm:$0xff] }
  0xfd   : > { %1920 = vrot.lane.b32.xlu0 %v4200_v46, %s3353_s20  ;;  %1561 = vrot.lane.b32.xlu1 %v2963_v54, %s3347_s26  ;;  %v5987_v54 = vld [vmem:[#allocation62_spill] sm:$0xff]  ;;  %v2998_v4 = vcombine.low %v5990_v6, %v5989_v48 }
  0xfe   : > { %v5997_v6 = vld [vmem:[#allocation58_spill] sm:$0xff] }
  0xff   : > { %v4590_v1 = vpop.permute.xlu0 %1539  ;;  %v4592_v60 = vpop.permute.xlu1 %1545 }
 0x100   : > { %5983 = vst [vmem:[#allocation48_spill] sm:$0xff] %v4590_v1  ;;  %5984 = vst [vmem:[#allocation64_spill] sm:$0xff] %v4592_v60  ;;  %v3010_v60 = vcombine.low %v5987_v54, %v3975_v27  ;;  %v5993_v1 = vld [vmem:[#allocation56_spill] sm:$0xff]  ;;  %v3034_v54 = vcombine.low %v1126_v44, %v1130_v11 }
 0x101   : > { %1559 = vrot.lane.b32.xlu0 %v4456_v7, %s3347_s26  ;;  %1634 = vrot.lane.b32.xlu1 %v2986_v25, %s3348_s27  ;;  %v1135_v36 = vrot.slane %v5993_v1, 5 }
 0x103   : > { %v4599_v14 = vpop.permute.xlu0 %1543  ;;  %v4601_v46 = vpop.permute.xlu1 %1549 }
 0x104   : > { %5985 = vst [vmem:[#allocation54_spill] sm:$0xff] %v4599_v14  ;;  %5986 = vst [vmem:[#allocation11_spill] sm:$0xff] %v4601_v46  ;;  %v5991_v46 = vld [vmem:[#allocation67_spill] sm:$0xff] }
 0x105   : > { %1610 = vrot.lane.b32.xlu0 %v2974_v30, %s3348_s27  ;;  %1636 = vrot.lane.b32.xlu1 %v2987_v23, %s3348_s27  ;;  %v5992_v30 = vld [vmem:[#allocation71_spill] sm:$0xff]  ;;  %v1134_v23 = vrot.slane %v1132_v57, 4 }
 0x106   : > { %v3011_v14 = vcombine.low %v5992_v30, %v5991_v46  ;;  %v5999_v30 = vcombine.low %v4189_v13, %v4164_v12  ;;  %v2893_v12 = vrot.slane %v5997_v6, 9 }
 0x107   : > { %v4608_v7 = vpop.permute.xlu0 %1547  ;;  %v4610_v25 = vpop.permute.xlu1 %1553  ;;  %v1136_v48 = vsel %vm4049_vm5, %v1134_v23, %v1135_v36  ;;  %v6002_v23 = vld [vmem:[#allocation59_spill] sm:$0xff] }
 0x108   : > { %5988 = vst [vmem:[#allocation20_spill] sm:$0xff] %v4608_v7  ;;  %v3035_v1 = vcombine.low %v1133_v39, %v1136_v48  ;;  %v1139_v13 = vrot.slane %v6002_v23, 5 }
 0x109   : > { %1612 = vrot.lane.b32.xlu0 %v2975_v16, %s3348_s27  ;;  %1709 = vrot.lane.b32.xlu1 %v3010_v60, %s3349_s28  ;;  %v5994_v16 = vld [vmem:[#allocation15_spill] sm:$0xff] }
 0x10a   : > { %v5995_v60 = vld [vmem:[#allocation19_spill] sm:$0xff]  ;;  %v1141_v59 = vrot.slane %v1139_v13, 4 }
 0x10b   : > { %v4619_v41 = vpop.permute.xlu0 %1551  ;;  %v4621_v27 = vpop.permute.xlu1 %1602  ;;  %v2999_v7 = vcombine.low %v5995_v60, %v5994_v16  ;;  %v4678_v60 = vld [vmem:[%s3404_s24 + $0x54] sm:$0xf] }
 0x10d   : > { %1685 = vrot.lane.b32.xlu0 %v2998_v4, %s3349_s28  ;;  %1711 = vrot.lane.b32.xlu1 %v3011_v14, %s3349_s28  ;;  %v5996_v14 = vcombine.low %v4137_v15, %v4175_v20  ;;  %v4646_v4 = vcombine.low %v5975_v49, %v5997_v6  ;;  %v4659_v15 = vld [vmem:[%s3404_s24 + $0x50] sm:$0xf]  ;;  %v6005_v6 = vld [vmem:[#allocation70_spill] sm:$0xff] }
 0x10e   : > { %v4662_v20 = vcombine.low %v3293_v37, %v4659_v15  ;;  %v6001_v49 = vld [vmem:[#allocation68_spill] sm:$0xff] }
 0x10f   : > { %v4629_v46 = vpop.permute.xlu0 %1555  ;;  %v4631_v57 = vpop.permute.xlu1 %1604  ;;  %5998 = vst [vmem:[#allocation62_spill] sm:$0xff] %v4646_v4  ;;  %v4666_v36 = vcombine.low %v6002_v23, %v6001_v49  ;;  %v1142_v37 = vrot.slane %v6001_v49, 5  ;;  %v6006_v23 = vld [vmem:[#allocation69_spill] sm:$0xff] }
 0x110   : > { %6000 = vst [vmem:[#allocation18_spill] sm:$0xff] %v4662_v20 }
 0x111   : > { %1687 = vrot.lane.b32.xlu0 %v2999_v7, %s3349_s28  ;;  %1784 = vrot.lane.b32.xlu1 %v3034_v54, %s3350_s29  ;;  %6003 = vst [vmem:[#allocation10_spill] sm:$0xff] %v4666_v36  ;;  %v1144_v3 = vrot.slane %v1142_v37, 4 }
 0x113   : > { %v4635_v44 = vpop.permute.xlu0 %1626  ;;  %v4637_v11 = vpop.permute.xlu1 %1677 }
 0x115   : > { %1760 = vrot.lane.b32.xlu0 %v5996_v14, %s3350_s29  ;;  %1786 = vrot.lane.b32.xlu1 %v3035_v1, %s3350_s29  ;;  %v4681_v1 = vld [vmem:[%s3404_s24 + $0x58] sm:$0xf] }
 0x116   : > { %v4685_v14 = vcombine.low %v4678_v60, %v4681_v1 }
 0x117   : > { %v4648_v39 = vpop.permute.xlu0 %1628  ;;  %v4650_v7 = vpop.permute.xlu1 %1679 }
 0x118   : > { %6004 = vst [vmem:[#allocation67_spill] sm:$0xff] %v4685_v14 }
 0x119   : > { %1762 = vrot.lane.b32.xlu0 %v5999_v30, %s3350_s29  ;;  %1838 = vrot.lane.b32.xlu1 %v4646_v4, %s3351_s8  ;;  %v4698_v4 = vsel %vm4049_vm5, %v2893_v12, %v1139_v13 }
 0x11b   : > { %v4668_v54 = vpop.permute.xlu0 %1701  ;;  %v1753_v16 = vpop.permute.xlu1 %1752 }
 0x11d   : > { %1814 = vrot.lane.b32.xlu0 %v4662_v20, %s3351_s8  ;;  %1840 = vrot.lane.b32.xlu1 %v4666_v36, %s3351_s8  ;;  %v1145_v36 = vrot.slane %v6006_v23, 5  ;;  %v4709_v23 = vsel %vm4049_vm5, %v1141_v59, %v1142_v37 }
 0x11f   : > { %v4687_v30 = vpop.permute.xlu0 %1703  ;;  %v4689_v20 = vpop.permute.xlu1 %1754  ;;  %v4713_v12 = vsel %vm4049_vm5, %v1144_v3, %v1145_v36 }
 0x121   : > { %1816 = vrot.lane.b32.xlu0 %v4685_v14, %s3351_s8  ;;  %1892 = vrot.lane.b32.xlu1 %v6005_v6, %s3352_s13  ;;  %v2965_v6 = vcombine.low %v1136_v48, %v4698_v4  ;;  %v3299_v48 = vld [vmem:[%s3404_s24 + $0x8] sm:$0xf] }
 0x122   : > { %v2899_v36 = vcombine.low %v3299_v48, %v4309_v62  ;;  %v4748_v48 = vld [vmem:[%s3404_s24 + $0x84] sm:$0xf] }
 0x123   : > { %v4700_v0 = vpop.permute.xlu0 %1776  ;;  %v1807_v34 = vpop.permute.xlu1 %1806  ;;  %6009 = vst [vmem:[#allocation71_spill] sm:$0xff] %v4748_v48 }
 0x125   : > { %1868 = vrot.lane.b32.xlu0 %v6007_v9, %s3352_s13  ;;  %1894 = vrot.lane.b32.xlu1 %v4027_v40, %s3352_s13  ;;  %v2898_v9 = vcombine.low %v3297_v56, %v3298_v52  ;;  %v4724_v40 = vcombine.low %v4709_v23, %v4713_v12 }
 0x127   : > { %v4715_v13 = vpop.permute.xlu0 %1778  ;;  %v1809_v14 = vpop.permute.xlu1 %1808  ;;  %v1965_v52 = vsel %vm1962_vm7, %v2898_v9, %v4370_v61  ;;  %v1968_v61 = vsel %vm1962_vm7, %v2899_v36, %v4395_v28  ;;  %v4745_v9 = vld [vmem:[%s3404_s24 + $0x80] sm:$0xf]  ;;  %v3302_v28 = vld [vmem:[%s3404_s24 + $0xd0] sm:$0xf] }
 0x129   : > { %1870 = vrot.lane.b32.xlu0 %v6008_v5, %s3352_s13  ;;  %1946 = vrot.lane.b32.xlu1 %v2965_v6, %s3353_s20  ;;  %v2037_v5 = vsel %vm2035_vm8, %v1965_v52, %v4564_v26  ;;  %v4752_v26 = vcombine.low %v4745_v9, %v4748_v48  ;;  %v2039_v52 = vsel %vm2035_vm8, %v1968_v61, %v4554_v33 }
 0x12a   : > { %v2086_v62 = vsel %vm2084_vm9, %v2037_v5, %v4621_v27 }
 0x12b   : > { %v4726_v59 = vpop.permute.xlu0 %1830  ;;  %v1861_v3 = vpop.permute.xlu1 %1860 }
 0x12d   : > { %1922 = vrot.lane.b32.xlu0 %v4179_v2, %s3353_s20  ;;  %1948 = vrot.lane.b32.xlu1 %v4724_v40, %s3353_s20  ;;  %v2135_v2 = vsel %vm2133_vm10, %v2086_v62, %v4637_v11  ;;  %v3303_v11 = vld [vmem:[%s3404_s24 + $0xd4] sm:$0xf]  ;;  %v2088_v62 = vsel %vm2084_vm9, %v2039_v52, %v4631_v57  ;;  %v2001_v57 = vsel %vm1962_vm7, %v4752_v26, %v4477_v35 }
 0x12e   : > { %v2184_v27 = vsel %vm2182_vm11, %v2135_v2, %v1753_v16  ;;  %v2988_v36 = vcombine.low %v3302_v28, %v3303_v11  ;;  %v2137_v33 = vsel %vm2133_vm10, %v2088_v62, %v4650_v7 }
 0x12f   : > { %v1833_v56 = vpop.permute.xlu0 %1832  ;;  %v1863_v37 = vpop.permute.xlu1 %1862  ;;  %v2233_v5 = vsel %vm2231_vm12, %v2184_v27, %v1807_v34  ;;  %v2976_v34 = vcombine.low %v4659_v15, %v4678_v60  ;;  %v3306_v27 = vld [vmem:[%s3404_s24 + $0xe0] sm:$0xf]  ;;  %v2061_v15 = vsel %vm2035_vm8, %v2001_v57, %v4619_v41  ;;  %v6012_v57 = vld [vmem:[#allocation16_spill] sm:$0xff] }
 0x130   : > { %v2282_v16 = vsel %vm2280_vm13, %v2233_v5, %v1861_v3  ;;  %v2186_v3 = vsel %vm2182_vm11, %v2137_v33, %v4689_v20  ;;  %v2989_v7 = vcombine.low %v6001_v49, %v3306_v27  ;;  %v2110_v35 = vsel %vm2084_vm9, %v2061_v15, %v4635_v44  ;;  %v3307_v44 = vld [vmem:[%s3404_s24 + $0x60] sm:$0xf] }
 0x131   : > { %1924 = vrot.lane.b32.xlu0 %v4236_v58, %s3353_s20  ;;  %1565 = vrot.lane.b32.xlu1 %v2965_v6, %s3347_s26  ;;  %v4767_v58 = vld [vmem:[%s3404_s24 + $0x88] sm:$0xf]  ;;  %v3305_v6 = vld [vmem:[%s3404_s24 + $0x90] sm:$0xf]  ;;  %v2235_v60 = vsel %vm2231_vm12, %v2186_v3, %v1809_v14  ;;  %v2159_v11 = vsel %vm2133_vm10, %v2110_v35, %v4668_v54  ;;  %v2977_v14 = vcombine.low %v4681_v1, %v3307_v44  ;;  %v2894_v33 = vrot.slane %v3306_v27, 9 }
 0x132   : > { %v4771_v28 = vcombine.low %v4767_v58, %v3305_v6  ;;  %v2284_v20 = vsel %vm2280_vm13, %v2235_v60, %v1863_v37  ;;  %v2208_v49 = vsel %vm2182_vm11, %v2159_v11, %v4700_v0 }
 0x133   : > { %v1885_v2 = vpop.permute.xlu0 %1884  ;;  %v1915_v48 = vpop.permute.xlu1 %1914  ;;  %v2257_v54 = vsel %vm2231_vm12, %v2208_v49, %v4726_v59 }
 0x134   : > { %v2331_v61 = vsel %vm2329_vm14, %v2282_v16, %v1915_v48  ;;  %v2004_v41 = vsel %vm1962_vm7, %v4771_v28, %v4462_v19  ;;  %v2306_v0 = vsel %vm2280_vm13, %v2257_v54, %v1885_v2 }
 0x135   : > { %1563 = vrot.lane.b32.xlu0 %v4571_v43, %s3347_s26  ;;  %1638 = vrot.lane.b32.xlu1 %v2988_v36, %s3348_s27  ;;  %v2063_v37 = vsel %vm2035_vm8, %v2004_v41, %v4610_v25 }
 0x136   : > { %3133 = vmatprep.mubr.msk.bf16.mxu0 %vm2421_vm15, %v2331_v61  ;;  %v2112_v19 = vsel %vm2084_vm9, %v2063_v37, %v4648_v39  ;;  %v6010_v39 = vld [vmem:[#allocation74_spill] sm:$0xff]  ;;  %v4889_v37 = vld [vmem:[%s3404_s24 + $0xe8] sm:$0xf] }
 0x137   : > { %v1887_v48 = vpop.permute.xlu0 %1886  ;;  %v1917_v43 = vpop.permute.xlu1 %1916  ;;  %v2161_v1 = vsel %vm2133_vm10, %v2112_v19, %v4687_v30  ;;  %v6011_v16 = vcombine.low %v3962_v45, %v6010_v39  ;;  %v6015_v45 = vcombine.low %v4017_v17, %v3997_v24 }
 0x138   : > { %v2333_v36 = vsel %vm2329_vm14, %v2284_v20, %v1917_v43  ;;  %v2210_v25 = vsel %vm2182_vm11, %v2161_v1, %v4715_v13  ;;  %v6016_v20 = vld [vmem:[#allocation25_spill] sm:$0xff] }
 0x139   : > { %1614 = vrot.lane.b32.xlu0 %v2976_v34, %s3348_s27  ;;  %1640 = vrot.lane.b32.xlu1 %v2989_v7, %s3348_s27  ;;  %v2259_v59 = vsel %vm2231_vm12, %v2210_v25, %v1833_v56  ;;  %v4833_v34 = vld [vmem:[%s3404_s24 + $0xe4] sm:$0xf]  ;;  %v6013_v56 = vld [vmem:[#allocation24_spill] sm:$0xff]  ;;  %v3036_v7 = vcombine.low %v4698_v4, %v4709_v23  ;;  %v6019_v23 = vcombine.low %v4171_v8, %v4215_v53 }
 0x13a   : > { %3134 = vmatmul.mubr.msk.bf16.vlgmr.msra.gmra.mxu0 %vm2421_vm15, %v2333_v36  ;;  %v2308_v2 = vsel %vm2280_vm13, %v2259_v59, %v1887_v48  ;;  %v1149_v13 = vrot.slane %v4833_v34, 5  ;;  %v6014_v3 = vcombine.low %v6012_v57, %v6013_v56  ;;  %v6017_v48 = vld [vmem:[#allocation21_spill] sm:$0xff]  ;;  %v4872_v41 = vcombine.low %v3306_v27, %v4833_v34  ;;  %v4881_v8 = vld [vmem:[%s3404_s24 + $0x64] sm:$0xf] }
 0x13b   : > { %v1939_v52 = vpop.permute.xlu0 %1938  ;;  %v4815_v5 = vpop.permute.xlu1 %1557  ;;  %v6018_v43 = vcombine.low %v6016_v20, %v6017_v48  ;;  %v4884_v53 = vcombine.low %v3307_v44, %v4881_v8  ;;  %v4893_v27 = vcombine.low %v4889_v37, %v4023_v55  ;;  %v3316_v20 = vld [vmem:[%s3404_s24 + $0x94] sm:$0xf]  ;;  %v3317_v48 = vld [vmem:[%s3404_s24 + $0x98] sm:$0xf] }
 0x13c   : > { %v2355_v62 = vsel %vm2329_vm14, %v2306_v0, %v1939_v52  ;;  %v1150_v35 = vsel %vm4049_vm5, %v2894_v33, %v1149_v13  ;;  %v1151_v55 = vrot.slane %v1149_v13, 4  ;;  %v1152_v0 = vrot.slane %v4889_v37, 5  ;;  %v3313_v52 = vld [vmem:[%s3404_s24 + $0xec] sm:$0x1]  ;;  %v4926_v33 = vld [vmem:[%s3404_s24 + $0xf4] sm:$0xf] }
 0x13d   : > { %1616 = vrot.lane.b32.xlu0 %v2977_v14, %s3348_s27  ;;  %3157 = vmatprep.mubr.msk.bf16.mxu1 %vm2421_vm15, %v2355_v62  ;;  %v3037_v24 = vcombine.low %v4713_v12, %v1150_v35  ;;  %v6020_v12 = vcombine.low %v4222_v31, %v4185_v51  ;;  %v4900_v51 = vld [vmem:[%s3404_s24 + $0x68] sm:$0xf]  ;;  %v4903_v31 = vld [vmem:[%s3404_s24 + $0x70] sm:$0xf]  ;;  %v1155_v1 = vrot.slane %v3313_v52, 5  ;;  %v6021_v62 = vld [vmem:[#allocation73_spill] sm:$0xff] }
 0x13e   : > { %1713 = vrot.lane.b32.xlu1 %v6011_v16, %s3349_s28  ;;  %v4907_v44 = vcombine.low %v4900_v51, %v4903_v31  ;;  %v4919_v39 = vsel %vm4049_vm5, %v1151_v55, %v1152_v0  ;;  %v1154_v16 = vrot.slane %v1152_v0, 4  ;;  %v1159_v13 = vrot.slane %v4926_v33, 5 }
 0x13f   : > { %v1941_v6 = vpop.permute.xlu0 %1940  ;;  %v4830_v30 = vpop.permute.xlu1 %1630  ;;  %v2967_v57 = vcombine.low %v1150_v35, %v4919_v39 }
 0x140   : > { %v2357_v61 = vsel %vm2329_vm14, %v2308_v2, %v1941_v6  ;;  %v4922_v2 = vld [vmem:[%s3404_s24 + $0xf0] sm:$0xf] }
 0x141   : > { %1689 = vrot.lane.b32.xlu0 %v6014_v3, %s3349_s28  ;;  %3158 = vmatmul.mubr.msk.bf16.vlgmr.msra.gmra.mxu1 %vm2421_vm15, %v2357_v61  ;;  %v2895_v6 = vrot.slane %v4922_v2, 9  ;;  %v6022_v61 = vld [vmem:[#allocation23_spill] sm:$0xff] }
 0x142   : > { %1715 = vrot.lane.b32.xlu1 %v6015_v45, %s3349_s28  ;;  %v4936_v45 = vsel %vm4049_vm5, %v1154_v16, %v1155_v1  ;;  %v6025_v16 = vld [vmem:[#allocation3_spill] sm:$0xff] }
 0x143   : > { %v4848_v15 = vpop.permute.xlu0 %1606  ;;  %v4850_v60 = vpop.permute.xlu1 %1632 }
 0x145   : > { %1691 = vrot.lane.b32.xlu0 %v6018_v43, %s3349_s28  ;;  %v4946_v43 = vcombine.low %v3316_v20, %v3317_v48 }
 0x146   : > { %1788 = vrot.lane.b32.xlu1 %v3036_v7, %s3350_s29  ;;  %v4942_v7 = vsel %vm4049_vm5, %v2895_v6, %v1159_v13  ;;  %v6026_v6 = vld [vmem:[#allocation6_spill] sm:$0xff] }
 0x147   : > { %v4860_v17 = vpop.permute.xlu0 %1608  ;;  %v1706_v4 = vpop.permute.xlu1 %1705  ;;  %v4953_v35 = vcombine.low %v4936_v45, %v4942_v7  ;;  %v2007_v55 = vsel %vm1962_vm7, %v4946_v43, %v4488_v32 }
 0x148   : > { %v2065_v0 = vsel %vm2035_vm8, %v2007_v55, %v4629_v46 }
 0x149   : > { %1764 = vrot.lane.b32.xlu0 %v6019_v23, %s3350_s29  ;;  %v2114_v52 = vsel %vm2084_vm9, %v2065_v0, %v4830_v30 }
 0x14a   : > { %1790 = vrot.lane.b32.xlu1 %v3037_v24, %s3350_s29 }
 0x14b   : > { %v4867_v11 = vpop.permute.xlu0 %1681  ;;  %v4869_v36 = vpop.permute.xlu1 %1707 }
 0x14d   : > { %1766 = vrot.lane.b32.xlu0 %v6020_v12, %s3350_s29  ;;  %v2900_v12 = vcombine.low %v4306_v38, %v4097_v50  ;;  %v2163_v50 = vsel %vm2133_vm10, %v2114_v52, %v1706_v4 }
 0x14e   : > { %1842 = vrot.lane.b32.xlu1 %v4872_v41, %s3351_s8 }
 0x14f   : > { %v4886_v49 = vpop.permute.xlu0 %1683  ;;  %v1781_v14 = vpop.permute.xlu1 %1780  ;;  %v1971_v32 = vsel %vm1962_vm7, %v2900_v12, %v4349_v22  ;;  %v2990_v22 = vcombine.low %v4833_v34, %v4889_v37 }
 0x150   : > { %v2212_v38 = vsel %vm2182_vm11, %v2163_v50, %v1781_v14  ;;  %v2041_v46 = vsel %vm2035_vm8, %v1971_v32, %v4573_v42  ;;  %v1161_v32 = vrot.slane %v1159_v13, 4  ;;  %v3038_v13 = vcombine.low %v4919_v39, %v4936_v45 }
 0x151   : > { %1818 = vrot.lane.b32.xlu0 %v4884_v53, %s3351_s8 }
 0x152   : > { %1844 = vrot.lane.b32.xlu1 %v4893_v27, %s3351_s8 }
 0x153   : > { %v1757_v54 = vpop.permute.xlu0 %1756  ;;  %v1783_v19 = vpop.permute.xlu1 %1782 }
 0x155   : > { %1820 = vrot.lane.b32.xlu0 %v4907_v44, %s3351_s8 }
 0x156   : > { %1896 = vrot.lane.b32.xlu1 %v6021_v62, %s3352_s13 }
 0x157   : > { %v4915_v25 = vpop.permute.xlu0 %1758  ;;  %v1835_v59 = vpop.permute.xlu1 %1834 }
 0x158   : > { %v2261_v4 = vsel %vm2231_vm12, %v2212_v38, %v1835_v59 }
 0x159   : > { %1872 = vrot.lane.b32.xlu0 %v6022_v61, %s3352_s13  ;;  %v2978_v61 = vcombine.low %v4881_v8, %v4900_v51 }
 0x15a   : > { %1898 = vrot.lane.b32.xlu1 %v4081_v21, %s3352_s13  ;;  %v6023_v21 = vld [vmem:[#allocation37_spill] sm:$0xff] }
 0x15b   : > { %v1811_v56 = vpop.permute.xlu0 %1810  ;;  %v1837_v3 = vpop.permute.xlu1 %1836 }
 0x15d   : > { %1874 = vrot.lane.b32.xlu0 %v6023_v21, %s3352_s13 }
 0x15e   : > { %1950 = vrot.lane.b32.xlu1 %v2967_v57, %s3353_s20 }
 0x15f   : > { %v1813_v24 = vpop.permute.xlu0 %1812  ;;  %v1889_v23 = vpop.permute.xlu1 %1888 }
 0x161   : > { %1926 = vrot.lane.b32.xlu0 %v4211_v10, %s3353_s20  ;;  %v2010_v10 = vsel %vm1962_vm7, %v4404_v18, %v4479_v63  ;;  %v2090_v18 = vsel %vm2084_vm9, %v2041_v46, %v4848_v15  ;;  %v5068_v46 = vld [vmem:[%s5045_s5 + $0x4] sm:$0xf] }
 0x162   : > { %1952 = vrot.lane.b32.xlu1 %v4953_v35, %s3353_s20  ;;  %v2067_v30 = vsel %vm2035_vm8, %v2010_v10, %v4815_v5  ;;  %v1974_v5 = vsel %vm1962_vm7, %v6026_v6, %v6025_v16  ;;  %v2139_v59 = vsel %vm2133_vm10, %v2090_v18, %v4867_v11  ;;  %v6027_v11 = vld [vmem:[#allocation9_spill] sm:$0xff]  ;;  %v1177_v16 = vshll.u32 %v5068_v46, 16 }
 0x163   : > { %v1865_v1 = vpop.permute.xlu0 %1864  ;;  %v1891_v62 = vpop.permute.xlu1 %1890  ;;  %v2116_v63 = vsel %vm2084_vm9, %v2067_v30, %v4850_v60  ;;  %v2188_v15 = vsel %vm2182_vm11, %v2139_v59, %v1757_v54  ;;  %v2991_v54 = vcombine.low %v4922_v2, %v4926_v33  ;;  %v5064_v10 = vld [vmem:[%s3404_s24 + $0xf8] sm:$0xf]  ;;  %v6031_v30 = vld [vmem:[#allocation22_spill] sm:$0xff] }
 0x164   : > { %v2165_v34 = vsel %vm2133_vm10, %v2116_v63, %v4869_v36  ;;  %v2043_v36 = vsel %vm2035_vm8, %v1974_v5, %v6027_v11  ;;  %v1162_v38 = vrot.slane %v5064_v10, 5  ;;  %v6034_v63 = vld [vmem:[#allocation79_spill] sm:$0xff]  ;;  %v1179_v11 = vrot.slane %v1177_v16, 5 }
 0x165   : > { %1928 = vrot.lane.b32.xlu0 %v4272_v29, %s3353_s20  ;;  %v2310_v29 = vsel %vm2280_vm13, %v2261_v4, %v1889_v23  ;;  %v2214_v60 = vsel %vm2182_vm11, %v2165_v34, %v1783_v19  ;;  %v6032_v4 = vld [vmem:[#allocation31_spill] sm:$0xff]  ;;  %v1181_v34 = vshrl.u32 %v5068_v46, 16 }
 0x166   : > { %1569 = vrot.lane.b32.xlu1 %v2967_v57, %s3347_s26  ;;  %v2237_v57 = vsel %vm2231_vm12, %v2188_v15, %v1811_v56  ;;  %v2263_v20 = vsel %vm2231_vm12, %v2214_v60, %v1837_v3  ;;  %v1163_v59 = vsel %vm4049_vm5, %v1161_v32, %v1162_v38  ;;  %v6038_v15 = vld [vmem:[#allocation27_spill] sm:$0xff] }
 0x167   : > { %v1867_v14 = vpop.permute.xlu0 %1866  ;;  %v1943_v42 = vpop.permute.xlu1 %1942  ;;  %v2286_v8 = vsel %vm2280_vm13, %v2237_v57, %v1865_v1  ;;  %v2312_v51 = vsel %vm2280_vm13, %v2263_v20, %v1891_v62  ;;  %v5055_v1 = vld [vmem:[%s5045_s5] sm:$0xf]  ;;  %v3039_v39 = vcombine.low %v4942_v7, %v1163_v59  ;;  %v1183_v20 = vrot.slane %v1181_v34, 4 }
 0x168   : > { %v2359_v37 = vsel %vm2329_vm14, %v2310_v29, %v1943_v42  ;;  %v1168_v18 = vshrl.u32 %v5055_v1, 16  ;;  %v6035_v29 = vld [vmem:[#allocation75_spill] sm:$0xff]  ;;  %v1171_v42 = vshll.u32 %v5055_v1, 16 }
 0x169   : > { %1567 = vrot.lane.b32.xlu0 %v4724_v40, %s3347_s26  ;;  %3161 = vmatprep.mubr.msk.bf16.mxu1 %vm2421_vm15, %v2359_v37  ;;  %v2092_v40 = vsel %vm2084_vm9, %v2043_v36, %v4860_v17  ;;  %v3318_v17 = vld [vmem:[%s3404_s24 + $0x74] sm:$0xf]  ;;  %v6037_v37 = vld [vmem:[#allocation33_spill] sm:$0xff] }
 0x16a   : > { %1642 = vrot.lane.b32.xlu1 %v2990_v22, %s3348_s27  ;;  %v2141_v56 = vsel %vm2133_vm10, %v2092_v40, %v4886_v49  ;;  %v2979_v23 = vcombine.low %v4903_v31, %v3318_v17  ;;  %v6033_v22 = vcombine.low %v6031_v30, %v6032_v4  ;;  %v6039_v60 = vcombine.low %v6037_v37, %v6038_v15  ;;  %v6040_v40 = vld [vmem:[#allocation80_spill] sm:$0xff]  ;;  %v3321_v30 = vld [vmem:[%s3404_s24 + $0xfc] sm:$0x1] }
 0x16b   : > { %v1919_v19 = vpop.permute.xlu0 %1918  ;;  %v1945_v48 = vpop.permute.xlu1 %1944  ;;  %v2190_v2 = vsel %vm2182_vm11, %v2141_v56, %v4915_v25  ;;  %v6028_v25 = vld [vmem:[#allocation72_spill] sm:$0xff]  ;;  %v1170_v45 = vrot.slane %v1168_v18, 4  ;;  %v1184_v56 = vor.u32 %v1183_v20, %v1179_v11  ;;  %v1165_v4 = vrot.slane %v3321_v30, 5 }
 0x16c   : > { %v2335_v21 = vsel %vm2329_vm14, %v2286_v8, %v1919_v19  ;;  %v2361_v3 = vsel %vm2329_vm14, %v2312_v51, %v1945_v48  ;;  %v2239_v12 = vsel %vm2231_vm12, %v2190_v2, %v1813_v24  ;;  %v6029_v24 = vld [vmem:[#allocation78_spill] sm:$0xff]  ;;  %v6041_v8 = vld [vmem:[#allocation84_spill] sm:$0xff]  ;;  %v6043_v2 = vld [vmem:[#allocation85_spill] sm:$0xff] }
 0x16d   : > { %1618 = vrot.lane.b32.xlu0 %v2978_v61, %s3348_s27  ;;  %3137 = vmatprep.mubr.msk.bf16.mxu0 %vm2421_vm15, %v2335_v21  ;;  %v2288_v49 = vsel %vm2280_vm13, %v2239_v12, %v1867_v14  ;;  %v6030_v52 = vcombine.low %v6028_v25, %v6029_v24  ;;  %v6036_v14 = vcombine.low %v6034_v63, %v6035_v29  ;;  %v1173_v61 = vrot.slane %v1171_v42, 5  ;;  %v6047_v42 = vld [vmem:[#allocation77_spill] sm:$0xff] }
 0x16e   : > { %1644 = vrot.lane.b32.xlu1 %v2991_v54, %s3348_s27  ;;  %3162 = vmatmul.mubr.msk.bf16.gmra.mxu1 %vm2421_vm15, %v2361_v3  ;;  %v5101_v54 = vld [vmem:[%s5045_s5 + $0x8] sm:$0xf]  ;;  %v6042_v51 = vcombine.low %v6040_v40, %v6041_v8  ;;  %v5115_v3 = vcombine.low %v4926_v33, %v5064_v10  ;;  %v6049_v8 = vld [vmem:[#allocation45_spill] sm:$0xff] }
 0x16f   : > { %v1921_v55 = vpop.permute.xlu0 %1920  ;;  %v5040_v0 = vpop.permute.xlu1 %1561  ;;  %v1174_v19 = vor.u32 %v1173_v61, %v1170_v45  ;;  %v1187_v21 = vshll.u32 %v5101_v54, 16 }
 0x170   : > { %v2337_v31 = vsel %vm2329_vm14, %v2288_v49, %v1921_v55  ;;  %v3042_v49 = vcombine.low %v5055_v1, %v5068_v46 }
 0x171   : > { %1620 = vrot.lane.b32.xlu0 %v2979_v23, %s3348_s27  ;;  %3138 = vmatmul.mubr.msk.bf16.gmra.mxu0 %vm2421_vm15, %v2337_v31  ;;  %v6044_v23 = vld [vmem:[#allocation81_spill] sm:$0xff]  ;;  %v1175_v55 = vrot.slane %v1174_v19, 4  ;;  %v5133_v32 = vrot.slane %v1187_v21, 5  ;;  %v6050_v21 = vld [vmem:[#allocation14_spill] sm:$0xff] }
 0x172   : > { %1717 = vrot.lane.b32.xlu1 %v6030_v52, %s3349_s28  ;;  %v6045_v12 = vcombine.low %v6043_v2, %v6044_v23  ;;  %v5126_v31 = vld [vmem:[%s3404_s24 + $0x78] sm:$0xf]  ;;  %v1185_v52 = vrot.slane %v1184_v56, 4  ;;  %s3193_s24 = smul.u32 24, %s6111_s19 }
 0x173   : > { %v5057_v62 = vpop.permute.xlu0 %1559  ;;  %v5059_v50 = vpop.permute.xlu1 %1634  ;;  %v5129_v25 = vcombine.low %v3318_v17, %v5126_v31  ;;  %v5141_v18 = vsel %vm3436_vm2, %v1175_v55, %v1179_v11  ;;  %v6051_v2 = vld [vmem:[#allocation5_spill] sm:$0xff] }
 0x174   : > { %v5146_v29 = vsel %vm3436_vm2, %v1185_v52, %v5133_v32  ;;  %v2013_v23 = vsel %vm1962_vm7, %v6051_v2, %v6050_v21  ;;  %s5438_s6 = scalar_lea.vmem %s5704_s4, %s3193_s24 }
 0x175   : > { %1693 = vrot.lane.b32.xlu0 %v6033_v22, %s3349_s28  ;;  %v3045_v16 = vcombine.low %v5141_v18, %v5146_v29 }
 0x176   : > { %1719 = vrot.lane.b32.xlu1 %v6036_v14, %s3349_s28  ;;  %v1164_v14 = vrot.slane %v1162_v38, 4  ;;  %v2896_v38 = vrot.slane %v5055_v1, 9 }
 0x177   : > { %v5083_v6 = vpop.permute.xlu0 %1610  ;;  %v5085_v5 = vpop.permute.xlu1 %1636 }
 0x178   : > { %v5159_v15 = vsel %vm4049_vm5, %v1164_v14, %v1165_v4  ;;  %v6053_v14 = vld [vmem:[#allocation53_spill] sm:$0xff] }
 0x179   : > { %1695 = vrot.lane.b32.xlu0 %v6039_v60, %s3349_s28  ;;  %v2969_v45 = vcombine.low %v1163_v59, %v5159_v15 }
 0x17a   : > { %1792 = vrot.lane.b32.xlu1 %v3038_v13, %s3350_s29  ;;  %v1207_v13 = vrot.slane %v5068_v46, 5 }
 0x17b   : > { %v5096_v36 = vpop.permute.xlu0 %1612  ;;  %v5098_v57 = vpop.permute.xlu1 %1709 }
 0x17c   : > { %v1209_v60 = vrot.slane %v1207_v13, 4  ;;  %v5169_v20 = vsel %vm4049_vm5, %v2896_v38, %v1207_v13  ;;  %v6054_v13 = vld [vmem:[#allocation32_spill] sm:$0xff]  ;;  %v5199_v38 = vld [vmem:[%s5045_s5 + $0xc] sm:$0x1] }
 0x17d   : > { %1768 = vrot.lane.b32.xlu0 %v6042_v51, %s3350_s29  ;;  %v1191_v51 = vshrl.u32 %v5101_v54, 16 }
 0x17e   : > { %1794 = vrot.lane.b32.xlu1 %v3039_v39, %s3350_s29  ;;  %v1210_v39 = vrot.slane %v5101_v54, 5 }
 0x17f   : > { %v5108_v7 = vpop.permute.xlu0 %1685  ;;  %v5110_v48 = vpop.permute.xlu1 %1711  ;;  %v1193_v55 = vrot.slane %v1191_v51, 4 }
 0x180   : > { %v5175_v40 = vsel %vm4049_vm5, %v1209_v60, %v1210_v39  ;;  %v6055_v60 = vld [vmem:[#allocation4_spill] sm:$0xff] }
 0x181   : > { %1770 = vrot.lane.b32.xlu0 %v6045_v12, %s3350_s29  ;;  %v3048_v59 = vcombine.low %v5169_v20, %v5175_v40  ;;  %v6052_v12 = vld [vmem:[#allocation83_spill] sm:$0xff] }
 0x182   : > { %1846 = vrot.lane.b32.xlu1 %v5115_v3, %s3351_s8 }
 0x183   : > { %v5131_v24 = vpop.permute.xlu0 %1687  ;;  %v1785_v33 = vpop.permute.xlu1 %1784 }
 0x185   : > { %1822 = vrot.lane.b32.xlu0 %v5129_v25, %s3351_s8 }
 0x186   : > { %1848 = vrot.lane.b32.xlu1 %v3042_v49, %s3351_s8  ;;  %v2069_v49 = vsel %vm2035_vm8, %v2013_v23, %v5057_v62  ;;  %v6060_v23 = vld [vmem:[#allocation87_spill] sm:$0xff] }
 0x187   : > { %v1761_v63 = vpop.permute.xlu0 %1760  ;;  %v1787_v17 = vpop.permute.xlu1 %1786  ;;  %v2118_v52 = vsel %vm2084_vm9, %v2069_v49, %v5059_v50  ;;  %v6059_v50 = vld [vmem:[#allocation63_spill] sm:$0xff]  ;;  %v2992_v49 = vcombine.low %v5064_v10, %v5055_v1 }
 0x189   : > { %1824 = vrot.lane.b32.xlu0 %v4752_v26, %s3351_s8  ;;  %v6048_v26 = vld [vmem:[#allocation29_spill] sm:$0xff] }
 0x18a   : > { %1900 = vrot.lane.b32.xlu1 %v6047_v42, %s3352_s13  ;;  %v1977_v42 = vsel %vm1962_vm7, %v6054_v13, %v6053_v14 }
 0x18b   : > { %v5155_v34 = vpop.permute.xlu0 %1762  ;;  %v1839_v37 = vpop.permute.xlu1 %1838  ;;  %v2045_v21 = vsel %vm2035_vm8, %v1977_v42, %v6059_v50 }
 0x18c   : > { %v2094_v14 = vsel %vm2084_vm9, %v2045_v21, %v5083_v6  ;;  %v5270_v21 = vld [vmem:[%s5045_s5 + $0x10] sm:$0xf] }
 0x18d   : > { %1876 = vrot.lane.b32.xlu0 %v6048_v26, %s3352_s13  ;;  %v6056_v26 = vld [vmem:[#allocation49_spill] sm:$0xff]  ;;  %v2143_v1 = vsel %vm2133_vm10, %v2094_v14, %v5108_v7 }
 0x18e   : > { %1902 = vrot.lane.b32.xlu1 %v3045_v16, %s3352_s13  ;;  %v2167_v16 = vsel %vm2133_vm10, %v2118_v52, %v5098_v57  ;;  %v1980_v62 = vsel %vm1962_vm7, %v6056_v26, %v6055_v60  ;;  %v1194_v52 = vor.u32 %v1193_v55, %v5133_v32  ;;  %v2192_v32 = vsel %vm2182_vm11, %v2143_v1, %v1761_v63  ;;  %v5287_v14 = vld [vmem:[%s5045_s5 + $0x18] sm:$0xf] }
 0x18f   : > { %v1815_v61 = vpop.permute.xlu0 %1814  ;;  %v1841_v11 = vpop.permute.xlu1 %1840  ;;  %v2216_v2 = vsel %vm2182_vm11, %v2167_v16, %v1785_v33 }
 0x190   : > { %v2241_v55 = vsel %vm2231_vm12, %v2192_v32, %v1815_v61  ;;  %v1195_v63 = vrot.slane %v1194_v52, 4  ;;  %v390_v52 = vld [vmem:[%s5045_s5 + $0x14] sm:$0xf] }
 0x191   : > { %1878 = vrot.lane.b32.xlu0 %v6049_v8, %s3352_s13  ;;  %v6057_v8 = vld [vmem:[#allocation36_spill] sm:$0xff] }
 0x192   : > { %1954 = vrot.lane.b32.xlu1 %v2969_v45, %s3353_s20  ;;  %v6067_v32 = vld [vmem:[#allocation44_spill] sm:$0xff] }
 0x193   : > { %v1817_v19 = vpop.permute.xlu0 %1816  ;;  %v1893_v56 = vpop.permute.xlu1 %1892 }
 0x195   : > { %1930 = vrot.lane.b32.xlu0 %v6052_v12, %s3353_s20  ;;  %v2265_v12 = vsel %vm2231_vm12, %v2216_v2, %v1839_v37  ;;  %v6061_v37 = vld [vmem:[#allocation13_spill] sm:$0xff]  ;;  %v1213_v2 = vrot.slane %v5199_v38, 5 }
 0x196   : > { %1956 = vrot.lane.b32.xlu1 %v3048_v59, %s3353_s20  ;;  %v6058_v59 = vld [vmem:[#allocation50_spill] sm:$0xff]  ;;  %v2314_v13 = vsel %vm2280_vm13, %v2265_v12, %v1893_v56  ;;  %v2980_v56 = vcombine.low %v5126_v31, %v4745_v9  ;;  %v1216_v12 = vshrl.u32 %v5270_v21, 16 }
 0x197   : > { %v1869_v30 = vpop.permute.xlu0 %1868  ;;  %v1895_v4 = vpop.permute.xlu1 %1894  ;;  %v2016_v51 = vsel %vm1962_vm7, %v6058_v59, %v6057_v8 }
 0x198   : > { %v2071_v57 = vsel %vm2035_vm8, %v2016_v51, %v5040_v0  ;;  %v1197_v0 = vshll.u32 %v5199_v38, 16  ;;  %v1218_v1 = vrot.slane %v1216_v12, 4 }
 0x199   : > { %1932 = vrot.lane.b32.xlu0 %v6060_v23, %s3353_s20  ;;  %v2120_v33 = vsel %vm2084_vm9, %v2071_v57, %v5085_v5 }
 0x19a   : > { %1573 = vrot.lane.b32.xlu1 %v2969_v45, %s3347_s26  ;;  %v2047_v45 = vsel %vm2035_vm8, %v1980_v62, %v6061_v37  ;;  %v2169_v10 = vsel %vm2133_vm10, %v2120_v33, %v5110_v48  ;;  %v2993_v48 = vcombine.low %v5068_v46, %v5101_v54  ;;  %v1199_v26 = vrot.slane %v1197_v0, 5  ;;  %v6064_v33 = vld [vmem:[#allocation28_spill] sm:$0xff] }
 0x19b   : > { %v1871_v42 = vpop.permute.xlu0 %1870  ;;  %v1947_v16 = vpop.permute.xlu1 %1946  ;;  %v2218_v5 = vsel %vm2182_vm11, %v2169_v10, %v1787_v17  ;;  %v2096_v17 = vsel %vm2084_vm9, %v2047_v45, %v5096_v36  ;;  %v6062_v36 = vld [vmem:[#allocation71_spill] sm:$0xff]  ;;  %v1239_v45 = vshrl.u32 %v5287_v14, 16 }
 0x19c   : > { %v2363_v6 = vsel %vm2329_vm14, %v2314_v13, %v1947_v16  ;;  %v2267_v7 = vsel %vm2231_vm12, %v2218_v5, %v1841_v11  ;;  %v2145_v61 = vsel %vm2133_vm10, %v2096_v17, %v5131_v24  ;;  %v1200_v50 = vsel %vm3436_vm2, %v1195_v63, %v1199_v26  ;;  %v6065_v13 = vld [vmem:[#allocation41_spill] sm:$0xff] }
 0x19d   : > { %1571 = vrot.lane.b32.xlu0 %v4953_v35, %s3347_s26  ;;  %3165 = vmatprep.mubr.msk.bf16.mxu1 %vm2421_vm15, %v2363_v6  ;;  %v2290_v35 = vsel %vm2280_vm13, %v2241_v55, %v1869_v30  ;;  %v2316_v60 = vsel %vm2280_vm13, %v2267_v7, %v1895_v4  ;;  %v2194_v46 = vsel %vm2182_vm11, %v2145_v61, %v5155_v34  ;;  %v6063_v4 = vld [vmem:[#allocation76_spill] sm:$0xff]  ;;  %v1225_v16 = vshll.u32 %v390_v52, 16 }
 0x19e   : > { %1646 = vrot.lane.b32.xlu1 %v2992_v49, %s3348_s27  ;;  %v2981_v30 = vcombine.low %v6062_v36, %v4767_v58  ;;  %v3016_v8 = vcombine.low %v6063_v4, %v5141_v18  ;;  %v2243_v24 = vsel %vm2231_vm12, %v2194_v46, %v1817_v19  ;;  %v3017_v18 = vcombine.low %v5146_v29, %v1200_v50  ;;  %v6073_v4 = vld [vmem:[#allocation86_spill] sm:$0xff] }
 0x19f   : > { %v1923_v9 = vpop.permute.xlu0 %1922  ;;  %v1949_v31 = vpop.permute.xlu1 %1948  ;;  %v2292_v59 = vsel %vm2280_vm13, %v2243_v24, %v1871_v42  ;;  %v1212_v19 = vrot.slane %v1210_v39, 4  ;;  %v1219_v49 = vshll.u32 %v5270_v21, 16  ;;  %v6066_v29 = vcombine.low %v6064_v33, %v6065_v13 }
 0x1a0   : > { %v2339_v11 = vsel %vm2329_vm14, %v2290_v35, %v1923_v9  ;;  %v2365_v62 = vsel %vm2329_vm14, %v2316_v60, %v1949_v31  ;;  %v3040_v39 = vcombine.low %v5159_v15, %v5169_v20  ;;  %v1229_v42 = vshrl.u32 %v390_v52, 16  ;;  %v6068_v15 = vld [vmem:[#allocation34_spill] sm:$0xff]  ;;  %v392_v60 = vld [vmem:[%s5045_s5 + $0x1c] sm:$0x1]  ;;  %v6071_v31 = vld [vmem:[#allocation39_spill] sm:$0xff] }
 0x1a1   : > { %1622 = vrot.lane.b32.xlu0 %v2980_v56, %s3348_s27  ;;  %3141 = vmatprep.mubr.msk.bf16.mxu0 %vm2421_vm15, %v2339_v11  ;;  %v5298_v38 = vsel %vm4049_vm5, %v1212_v19, %v1213_v2  ;;  %v1221_v10 = vrot.slane %v1219_v49, 5  ;;  %v1235_v6 = vshll.u32 %v5287_v14, 16  ;;  %v6069_v20 = vcombine.low %v6067_v32, %v6068_v15  ;;  %v6070_v9 = vld [vmem:[#allocation82_spill] sm:$0xff] }
 0x1a2   : > { %1648 = vrot.lane.b32.xlu1 %v2993_v48, %s3348_s27  ;;  %3166 = vmatmul.mubr.msk.bf16.gmra.mxu1 %vm2421_vm15, %v2365_v62  ;;  %v3041_v5 = vcombine.low %v5175_v40, %v5298_v38  ;;  %v1227_v56 = vrot.slane %v1225_v16, 5  ;;  %v1231_v55 = vrot.slane %v1229_v42, 4  ;;  %v1241_v17 = vrot.slane %v1239_v45, 4 }
 0x1a3   : > { %v1925_v34 = vpop.permute.xlu0 %1924  ;;  %v5264_v51 = vpop.permute.xlu1 %1565  ;;  %v1222_v48 = vor.u32 %v1221_v10, %v1218_v1  ;;  %v1237_v63 = vrot.slane %v1235_v6, 5  ;;  %v6072_v26 = vcombine.low %v6070_v9, %v6071_v31  ;;  %v3043_v61 = vcombine.low %v5101_v54, %v5270_v21 }
 0x1a4   : > { %v2341_v58 = vsel %vm2329_vm14, %v2292_v59, %v1925_v34  ;;  %v1232_v40 = vor.u32 %v1231_v55, %v1227_v56  ;;  %v1245_v36 = vshll.u32 %v392_v60, 16  ;;  %v3044_v59 = vcombine.low %v390_v52, %v5287_v14 }
 0x1a5   : > { %1624 = vrot.lane.b32.xlu0 %v2981_v30, %s3348_s27  ;;  %3142 = vmatmul.mubr.msk.bf16.gmra.mxu0 %vm2421_vm15, %v2341_v58  ;;  %v1223_v62 = vrot.slane %v1222_v48, 4  ;;  %v1242_v46 = vor.u32 %v1241_v17, %v1237_v63  ;;  %v1258_v42 = vrot.slane %v5287_v14, 5  ;;  %v1261_v22 = vrot.slane %v392_v60, 5  ;;  %v6078_v48 = vld [vmem:[#allocation42_spill] sm:$0xff] }
 0x1a6   : > { %1721 = vrot.lane.b32.xlu1 %v3016_v8, %s3349_s28  ;;  %v6074_v8 = vld [vmem:[#allocation30_spill] sm:$0xff]  ;;  %v1233_v34 = vrot.slane %v1232_v40, 4  ;;  %v1247_v19 = vrot.slane %v1245_v36, 5  ;;  %v6084_v36 = vld [vmem:[#allocation51_spill] sm:$0xff] }
 0x1a7   : > { %v5279_v23 = vpop.permute.xlu0 %1563  ;;  %v5281_v57 = vpop.permute.xlu1 %1638  ;;  %v6075_v24 = vcombine.low %v6073_v4, %v6074_v8  ;;  %v1228_v54 = vsel %vm3436_vm2, %v1223_v62, %v1227_v56  ;;  %v1260_v10 = vrot.slane %v1258_v42, 4  ;;  %v6085_v4 = vld [vmem:[#allocation62_spill] sm:$0xff] }
 0x1a8   : > { %v3046_v12 = vcombine.low %v1200_v50, %v1228_v54  ;;  %v1238_v49 = vsel %vm3436_vm2, %v1233_v34, %v1237_v63  ;;  %v6080_v63 = vld [vmem:[#allocation12_spill] sm:$0xff]  ;;  %v2022_v8 = vsel %vm1962_vm7, %v6085_v4, %v6084_v36 }
 0x1a9   : > { %1697 = vrot.lane.b32.xlu0 %v6066_v29, %s3349_s28  ;;  %v2897_v29 = vrot.slane %v5270_v21, 9  ;;  %v6076_v21 = vld [vmem:[#allocation40_spill] sm:$0xff]  ;;  %v1262_v32 = vsel %vm4049_vm5, %v1260_v10, %v1261_v22 }
 0x1aa   : > { %1723 = vrot.lane.b32.xlu1 %v3017_v18, %s3349_s28  ;;  %v1243_v18 = vrot.slane %v1242_v46, 4  ;;  %v6083_v46 = vld [vmem:[#allocation88_spill] sm:$0xff] }
 0x1ab   : > { %v5300_v0 = vpop.permute.xlu0 %1614  ;;  %v5302_v37 = vpop.permute.xlu1 %1640 }
 0x1ac   : > { %v1248_v13 = vsel %vm3436_vm2, %v1243_v18, %v1247_v19 }
 0x1ad   : > { %1699 = vrot.lane.b32.xlu0 %v6069_v20, %s3349_s28  ;;  %v6077_v20 = vld [vmem:[#allocation57_spill] sm:$0xff] }
 0x1ae   : > { %1796 = vrot.lane.b32.xlu1 %v3040_v39, %s3350_s29  ;;  %v1255_v39 = vrot.slane %v390_v52, 5 }
 0x1af   : > { %v5313_v7 = vpop.permute.xlu0 %1616 }
 0x1b0   : > { %v1714_v35 = vpop.permute.xlu1 %1713  ;;  %v1256_v45 = vsel %vm4049_vm5, %v2897_v29, %v1255_v39  ;;  %v1257_v1 = vrot.slane %v1255_v39, 4 }
 0x1b1   : > { %1772 = vrot.lane.b32.xlu0 %v6072_v26, %s3350_s29  ;;  %v3049_v52 = vcombine.low %v5298_v38, %v1256_v45  ;;  %v6079_v38 = vld [vmem:[#allocation43_spill] sm:$0xff] }
 0x1b2   : > { %1798 = vrot.lane.b32.xlu1 %v3041_v5, %s3350_s29  ;;  %v2019_v17 = vsel %vm1962_vm7, %v6080_v63, %v6079_v38  ;;  %v6081_v26 = vld [vmem:[#allocation47_spill] sm:$0xff] }
 0x1b3   : > { %v5323_v11 = vpop.permute.xlu0 %1689  ;;  %v2073_v47 = vsel %vm2035_vm8, %v2019_v17, %v5279_v23 }
 0x1b4   : > { %v5325_v30 = vpop.permute.xlu1 %1715  ;;  %v2122_v9 = vsel %vm2084_vm9, %v2073_v47, %v5281_v57  ;;  %v2075_v57 = vsel %vm2035_vm8, %v2022_v8, %v5264_v51 }
 0x1b5   : > { %1774 = vrot.lane.b32.xlu0 %v6075_v24, %s3350_s29  ;;  %v2171_v62 = vsel %vm2133_vm10, %v2122_v9, %v1714_v35  ;;  %v6086_v24 = vld [vmem:[#allocation48_spill] sm:$0xff]  ;;  %v2124_v18 = vsel %vm2084_vm9, %v2075_v57, %v5302_v37 }
 0x1b6   : > { %1850 = vrot.lane.b32.xlu1 %v3043_v61, %s3351_s8  ;;  %v6082_v61 = vld [vmem:[#allocation66_spill] sm:$0xff]  ;;  %v2173_v51 = vsel %vm2133_vm10, %v2124_v18, %v5325_v30 }
 0x1b7   : > { %v5333_v58 = vpop.permute.xlu0 %1691  ;;  %v1983_v40 = vsel %vm1962_vm7, %v6082_v61, %v6081_v26 }
 0x1b8   : > { %v1789_v2 = vpop.permute.xlu1 %1788  ;;  %v2049_v23 = vsel %vm2035_vm8, %v1983_v40, %v6086_v24  ;;  %v5433_v40 = vld [vmem:[%s5703_s3] ss:$0 sm:$0xff] }
 0x1b9   : > { %1826 = vrot.lane.b32.xlu0 %v4771_v28, %s3351_s8  ;;  %v3047_v28 = vcombine.low %v1238_v49, %v1248_v13  ;;  %v2098_v34 = vsel %vm2084_vm9, %v2049_v23, %v5300_v0  ;;  %v6087_v13 = vld [vmem:[#allocation38_spill] sm:$0xff]  ;;  %v6090_v23 = vld [vmem:[#allocation7_spill] sm:$0xff] }
 0x1ba   : > { %1852 = vrot.lane.b32.xlu1 %v3044_v59, %s3351_s8  ;;  %v2220_v59 = vsel %vm2182_vm11, %v2171_v62, %v1789_v2  ;;  %v2147_v19 = vsel %vm2133_vm10, %v2098_v34, %v5323_v11  ;;  %v6088_v2 = vld [vmem:[#allocation18_spill] sm:$0xff] }
 0x1bb   : > { %v1765_v33 = vpop.permute.xlu0 %1764  ;;  %v1986_v29 = vsel %vm1962_vm7, %v6088_v2, %v6087_v13  ;;  %v6092_v13 = vld [vmem:[#allocation35_spill] sm:$0xff] }
 0x1bc   : > { %v1791_v16 = vpop.permute.xlu1 %1790  ;;  %v2196_v0 = vsel %vm2182_vm11, %v2147_v19, %v1765_v33  ;;  %v6093_v2 = vld [vmem:[#allocation67_spill] sm:$0xff] }
 0x1bd   : > { %1828 = vrot.lane.b32.xlu0 %v4946_v43, %s3351_s8  ;;  %v1259_v43 = vsel %vm4049_vm5, %v1257_v1, %v1258_v42  ;;  %v6089_v42 = vld [vmem:[#allocation61_spill] sm:$0xff] }
 0x1be   : > { %1904 = vrot.lane.b32.xlu1 %v3046_v12, %s3352_s13  ;;  %v3050_v5 = vcombine.low %v1259_v43, %v1262_v32  ;;  %v2051_v37 = vsel %vm2035_vm8, %v1986_v29, %v6089_v42  ;;  %v1989_v29 = vsel %vm1962_vm7, %v6093_v2, %v6092_v13  ;;  %v6094_v42 = vld [vmem:[#allocation65_spill] sm:$0xff] }
 0x1bf   : > { %v1767_v50 = vpop.permute.xlu0 %1766  ;;  %v2100_v45 = vsel %vm2084_vm9, %v2051_v37, %v5313_v7  ;;  %v2028_v37 = vsel %vm1962_vm7, %v4872_v41, %v6094_v42 }
 0x1c0   : > { %v1843_v6 = vpop.permute.xlu1 %1842  ;;  %v2149_v33 = vsel %vm2133_vm10, %v2100_v45, %v5333_v58 }
 0x1c1   : > { %1880 = vrot.lane.b32.xlu0 %v6076_v21, %s3352_s13  ;;  %v2269_v35 = vsel %vm2231_vm12, %v2220_v59, %v1843_v6  ;;  %v2198_v21 = vsel %vm2182_vm11, %v2149_v33, %v1767_v50  ;;  %v6091_v59 = vld [vmem:[#allocation10_spill] sm:$0xff] }
 0x1c2   : > { %1906 = vrot.lane.b32.xlu1 %v3047_v28, %s3352_s13  ;;  %v2222_v28 = vsel %vm2182_vm11, %v2173_v51, %v1791_v16  ;;  %v2025_v57 = vsel %vm1962_vm7, %v6091_v59, %v6090_v23 }
 0x1c3   : > { %v1819_v14 = vpop.permute.xlu0 %1818 }
 0x1c4   : > { %v1845_v15 = vpop.permute.xlu1 %1844  ;;  %v2245_v11 = vsel %vm2231_vm12, %v2196_v0, %v1819_v14 }
 0x1c5   : > { %1882 = vrot.lane.b32.xlu0 %v6077_v20, %s3352_s13  ;;  %v2271_v1 = vsel %vm2231_vm12, %v2222_v28, %v1845_v15  ;;  %v6095_v28 = vld [vmem:[#allocation54_spill] sm:$0xff] }
 0x1c6   : > { %1958 = vrot.lane.b32.xlu1 %v3049_v52, %s3353_s20 }
 0x1c7   : > { %v1821_v56 = vpop.permute.xlu0 %1820 }
 0x1c8   : > { %v1897_v55 = vpop.permute.xlu1 %1896  ;;  %v2247_v7 = vsel %vm2231_vm12, %v2198_v21, %v1821_v56 }
 0x1c9   : > { %1934 = vrot.lane.b32.xlu0 %v6078_v48, %s3353_s20  ;;  %v2318_v12 = vsel %vm2280_vm13, %v2269_v35, %v1897_v55 }
 0x1ca   : > { %1960 = vrot.lane.b32.xlu1 %v3050_v5, %s3353_s20 }
 0x1cb   : > { %v1873_v60 = vpop.permute.xlu0 %1872 }
 0x1cc   : > { %v1899_v31 = vpop.permute.xlu1 %1898  ;;  %v2294_v30 = vsel %vm2280_vm13, %v2245_v11, %v1873_v60  ;;  %v2053_v11 = vsel %vm2035_vm8, %v1989_v29, %v6095_v28 }
 0x1cd   : > { %1936 = vrot.lane.b32.xlu0 %v6083_v46, %s3353_s20  ;;  %v2320_v22 = vsel %vm2280_vm13, %v2271_v1, %v1899_v31 }
 0x1cf   : > { %v1875_v54 = vpop.permute.xlu0 %1874 }
 0x1d0   : > { %v1951_v49 = vpop.permute.xlu1 %1950  ;;  %v2296_v14 = vsel %vm2280_vm13, %v2247_v7, %v1875_v54 }
 0x1d1   : > { %v2367_v39 = vsel %vm2329_vm14, %v2318_v12, %v1951_v49 }
 0x1d2   : > { %3169 = vmatprep.mubr.msk.bf16.mxu1 %vm2421_vm15, %v2367_v39 }
 0x1d3   : > { %v1927_v10 = vpop.permute.xlu0 %1926 }
 0x1d4   : > { %v2343_v6 = vsel %vm2329_vm14, %v2294_v30, %v1927_v10  ;;  %v1953_v16 = vpop.permute.xlu1 %1952 }
 0x1d5   : > { %3145 = vmatprep.mubr.msk.bf16.mxu0 %vm2421_vm15, %v2343_v6  ;;  %v2369_v52 = vsel %vm2329_vm14, %v2320_v22, %v1953_v16 }
 0x1d6   : > { %3170 = vmatmul.mubr.msk.bf16.gmra.mxu1 %vm2421_vm15, %v2369_v52 }
 0x1d7   : > { %v1929_v43 = vpop.permute.xlu0 %1928 }
 0x1d8   : > { %v2345_v58 = vsel %vm2329_vm14, %v2296_v14, %v1929_v43  ;;  %v1570_v32 = vpop.permute.xlu1 %1569  ;;  %v6096_v14 = vld [vmem:[#allocation55_spill] sm:$0xff] }
 0x1d9   : > { %3146 = vmatmul.mubr.msk.bf16.gmra.mxu0 %vm2421_vm15, %v2345_v58  ;;  %v2079_v30 = vsel %vm2035_vm8, %v2028_v37, %v1570_v32  ;;  %v1992_v43 = vsel %vm1962_vm7, %v4884_v53, %v6096_v14 }
 0x1db   : > { %v1568_v15 = vpop.permute.xlu0 %1567 }
 0x1dc   : > { %v1643_v50 = vpop.permute.xlu1 %1642  ;;  %v2077_v35 = vsel %vm2035_vm8, %v2025_v57, %v1568_v15 }
 0x1dd   : > { %v2126_v19 = vsel %vm2084_vm9, %v2077_v35, %v1643_v50 }
 0x1df   : > { %v1619_v20 = vpop.permute.xlu0 %1618 }
 0x1e0   : > { %v1645_v5 = vpop.permute.xlu1 %1644  ;;  %v2102_v10 = vsel %vm2084_vm9, %v2053_v11, %v1619_v20  ;;  %v6097_v20 = vld [vmem:[#allocation64_spill] sm:$0xff] }
 0x1e1   : > { %v2128_v41 = vsel %vm2084_vm9, %v2079_v30, %v1645_v5  ;;  %v2055_v5 = vsel %vm2035_vm8, %v1992_v43, %v6097_v20 }
 0x1e3   : > { %v5422_v55 = vpop.permute.xlu0 %1620 }
 0x1e4   : > { %v1718_v48 = vpop.permute.xlu1 %1717  ;;  %v2104_v53 = vsel %vm2084_vm9, %v2055_v5, %v5422_v55 }
 0x1e5   : > { %v2175_v51 = vsel %vm2133_vm10, %v2126_v19, %v1718_v48 }
 0x1e7   : > { %v1694_v56 = vpop.permute.xlu0 %1693 }
 0x1e8   : > { %v1720_v38 = vpop.permute.xlu1 %1719  ;;  %v2151_v16 = vsel %vm2133_vm10, %v2102_v10, %v1694_v56 }
 0x1e9   : > { %v2177_v58 = vsel %vm2133_vm10, %v2128_v41, %v1720_v38 }
 0x1eb   : > { %v5424_v63 = vpop.permute.xlu0 %1695 }
 0x1ec   : > { %v1793_v17 = vpop.permute.xlu1 %1792 }
 0x1ed   : > { %v2224_v45 = vsel %vm2182_vm11, %v2175_v51, %v1793_v17 }
 0x1ef   : > { %v1769_v47 = vpop.permute.xlu0 %1768 }
 0x1f0   : > { %v1795_v60 = vpop.permute.xlu1 %1794  ;;  %v2200_v32 = vsel %vm2182_vm11, %v2151_v16, %v1769_v47 }
 0x1f1   : > { %v2226_v48 = vsel %vm2182_vm11, %v2177_v58, %v1795_v60  ;;  %v2153_v60 = vsel %vm2133_vm10, %v2104_v53, %v5424_v63 }
 0x1f3   : > { %v5428_v9 = vpop.permute.xlu0 %1770 }
 0x1f4   : > { %v1847_v31 = vpop.permute.xlu1 %1846  ;;  %v2202_v55 = vsel %vm2182_vm11, %v2153_v60, %v5428_v9 }
 0x1f5   : > { %v2273_v33 = vsel %vm2231_vm12, %v2224_v45, %v1847_v31 }
 0x1f7   : > { %v1823_v26 = vpop.permute.xlu0 %1822 }
 0x1f8   : > { %v1849_v61 = vpop.permute.xlu1 %1848  ;;  %v2249_v56 = vsel %vm2231_vm12, %v2200_v32, %v1823_v26  ;;  %v6099_v32 = vld [vmem:[#allocation52_spill] sm:$0xff] }
 0x1f9   : > { %v2275_v38 = vsel %vm2231_vm12, %v2226_v48, %v1849_v61  ;;  %v6100_v48 = vld [vmem:[#allocation60_spill] sm:$0xff] }
 0x1fa   : > { %v3135_v62 = vpop.f32.mrf.mxu0 }
 0x1fb   : > { %v1825_v46 = vpop.permute.xlu0 %1824  ;;  %v2517_v36 = vadd.f32 %v3135_v62, %v5433_v40 }
 0x1fc   : > { %v1901_v4 = vpop.permute.xlu1 %1900  ;;  %v2508_v8 = vpop.f32.mrf.mxu0 }
 0x1fd   : > { %2701 = vst.msk [vmem:[%s5438_s6 + $0x10] sm:$0xff] %vm2035_vm8, %v2517_v36  ;;  %v2509_v24 = vadd.f32 %v5433_v40, %v2508_v8  ;;  %v2322_v21 = vsel %vm2280_vm13, %v2273_v33, %v1901_v4  ;;  %v6098_v33 = vld [vmem:[#allocation46_spill] sm:$0xff] }
 0x1fe   : > { %v3136_v34 = vpop.f32.mrf.mxu0 }
 0x1ff   : > { %2699 = vst.msk [vmem:[%s5438_s6] sm:$0xff] %vm2035_vm8, %v2509_v24  ;;  %v1877_v54 = vpop.permute.xlu0 %1876  ;;  %v2520_v18 = vadd.f32 %v3136_v34, %v5433_v40  ;;  %v2251_v24 = vsel %vm2231_vm12, %v2202_v55, %v1825_v46 }
 0x200   : > { %v1903_v12 = vpop.permute.xlu1 %1902  ;;  %v2511_v49 = vpop.f32.mrf.mxu0  ;;  %v2298_v47 = vsel %vm2280_vm13, %v2249_v56, %v1877_v54  ;;  %v2034_v56 = vsel %vm1962_vm7, %v5115_v3, %v6100_v48 }
 0x201   : > { %2702 = vst.msk [vmem:[%s5438_s6 + $0x18] sm:$0xff] %vm2035_vm8, %v2520_v18  ;;  %v3159_v0 = vpop.f32.mrf.mxu1  ;;  %v2512_v39 = vadd.f32 %v5433_v40, %v2511_v49  ;;  %v2324_v26 = vsel %vm2280_vm13, %v2275_v38, %v1903_v12 }
 0x202   : > { %v2613_v1 = vadd.f32 %v3159_v0, %v5433_v40 }
 0x203   : > { %2700 = vst.msk [vmem:[%s5438_s6 + $0x8] sm:$0xff] %vm2035_vm8, %v2512_v39  ;;  %v2604_v22 = vpop.f32.mrf.mxu1  ;;  %v1879_v6 = vpop.permute.xlu0 %1878 }
 0x204   : > { %2725 = vst.msk [vmem:[%s5438_s6 + $0xd0] sm:$0xff] %vm2035_vm8, %v2613_v1  ;;  %v2605_v52 = vadd.f32 %v5433_v40, %v2604_v22  ;;  %v1955_v7 = vpop.permute.xlu1 %1954  ;;  %v2300_v63 = vsel %vm2280_vm13, %v2251_v24, %v1879_v6  ;;  %v2031_v22 = vsel %vm1962_vm7, %v4893_v27, %v6098_v33 }
 0x205   : > { %v3160_v15 = vpop.f32.mrf.mxu1  ;;  %v2371_v50 = vsel %vm2329_vm14, %v2322_v21, %v1955_v7 }
 0x206   : > { %2723 = vst.msk [vmem:[%s5438_s6 + $0xc0] sm:$0xff] %vm2035_vm8, %v2605_v52  ;;  %v2616_v17 = vadd.f32 %v3160_v15, %v5433_v40  ;;  %3173 = vmatprep.mubr.msk.bf16.mxu1 %vm2421_vm15, %v2371_v50  ;;  %v1995_v15 = vsel %vm1962_vm7, %v4907_v44, %v6099_v32 }
 0x207   : > { %v2607_v31 = vpop.f32.mrf.mxu1  ;;  %v1931_v62 = vpop.permute.xlu0 %1930 }
 0x208   : > { %2726 = vst.msk [vmem:[%s5438_s6 + $0xd8] sm:$0xff] %vm2035_vm8, %v2616_v17  ;;  %v2608_v36 = vadd.f32 %v5433_v40, %v2607_v31  ;;  %v2347_v4 = vsel %vm2329_vm14, %v2298_v47, %v1931_v62  ;;  %v1957_v8 = vpop.permute.xlu1 %1956  ;;  %v6101_v17 = vld [vmem:[#allocation20_spill] sm:$0xff] }
 0x209   : > { %3149 = vmatprep.mubr.msk.bf16.mxu0 %vm2421_vm15, %v2347_v4  ;;  %v2373_v61 = vsel %vm2329_vm14, %v2324_v26, %v1957_v8  ;;  %v2057_v53 = vsel %vm2035_vm8, %v1995_v15, %v6101_v17 }
 0x20a   : > { %2724 = vst.msk [vmem:[%s5438_s6 + $0xc8] sm:$0xff] %vm2035_vm8, %v2608_v36  ;;  %3174 = vmatmul.mubr.msk.bf16.gmra.mxu1 %vm2421_vm15, %v2373_v61  ;;  %v6102_v61 = vld [vmem:[#allocation8_spill] sm:$0xff] }
 0x20b   : > { %v1933_v23 = vpop.permute.xlu0 %1932  ;;  %v1998_v24 = vsel %vm1962_vm7, %v5129_v25, %v6102_v61 }
 0x20c   : > { %v2349_v59 = vsel %vm2329_vm14, %v2300_v63, %v1933_v23  ;;  %v1574_v57 = vpop.permute.xlu1 %1573 }
 0x20d   : > { %3150 = vmatmul.mubr.msk.bf16.gmra.mxu0 %vm2421_vm15, %v2349_v59  ;;  %v2083_v47 = vsel %vm2035_vm8, %v2034_v56, %v1574_v57  ;;  %v6103_v57 = vld [vmem:[#allocation11_spill] sm:$0xff] }
 0x20f   : > { %v1572_v34 = vpop.permute.xlu0 %1571 }
 0x210   : > { %v1647_v9 = vpop.permute.xlu1 %1646  ;;  %v2081_v16 = vsel %vm2035_vm8, %v2031_v22, %v1572_v34  ;;  %v2059_v34 = vsel %vm2035_vm8, %v1998_v24, %v6103_v57 }
 0x211   : > { %v2130_v14 = vsel %vm2084_vm9, %v2081_v16, %v1647_v9 }
 0x213   : > { %v1623_v35 = vpop.permute.xlu0 %1622 }
 0x214   : > { %v1649_v54 = vpop.permute.xlu1 %1648  ;;  %v2106_v31 = vsel %vm2084_vm9, %v2057_v53, %v1623_v35 }
 0x215   : > { %v2132_v26 = vsel %vm2084_vm9, %v2083_v47, %v1649_v54 }
 0x217   : > { %v5513_v18 = vpop.permute.xlu0 %1624 }
 0x218   : > { %v1722_v19 = vpop.permute.xlu1 %1721  ;;  %v2108_v25 = vsel %vm2084_vm9, %v2059_v34, %v5513_v18 }
 0x219   : > { %v2179_v50 = vsel %vm2133_vm10, %v2130_v14, %v1722_v19 }
 0x21b   : > { %v1698_v46 = vpop.permute.xlu0 %1697 }
 0x21c   : > { %v1724_v12 = vpop.permute.xlu1 %1723  ;;  %v2155_v36 = vsel %vm2133_vm10, %v2106_v31, %v1698_v46 }
 0x21d   : > { %v2181_v63 = vsel %vm2133_vm10, %v2132_v26, %v1724_v12 }
 0x21f   : > { %v5515_v49 = vpop.permute.xlu0 %1699 }
 0x220   : > { %v1797_v13 = vpop.permute.xlu1 %1796  ;;  %v2157_v12 = vsel %vm2133_vm10, %v2108_v25, %v5515_v49 }
 0x221   : > { %v2228_v38 = vsel %vm2182_vm11, %v2179_v50, %v1797_v13 }
 0x223   : > { %v1773_v2 = vpop.permute.xlu0 %1772 }
 0x224   : > { %v1799_v29 = vpop.permute.xlu1 %1798  ;;  %v2204_v23 = vsel %vm2182_vm11, %v2155_v36, %v1773_v2 }
 0x225   : > { %v2230_v9 = vsel %vm2182_vm11, %v2181_v63, %v1799_v29 }
 0x227   : > { %v5517_v51 = vpop.permute.xlu0 %1774 }
 0x228   : > { %v1851_v0 = vpop.permute.xlu1 %1850 }
 0x229   : > { %v2277_v62 = vsel %vm2231_vm12, %v2228_v38, %v1851_v0  ;;  %v2206_v0 = vsel %vm2182_vm11, %v2157_v12, %v5517_v51 }
 0x22b   : > { %v1827_v39 = vpop.permute.xlu0 %1826 }
 0x22c   : > { %v1853_v42 = vpop.permute.xlu1 %1852  ;;  %v2253_v35 = vsel %vm2231_vm12, %v2204_v23, %v1827_v39 }
 0x22d   : > { %v2279_v54 = vsel %vm2231_vm12, %v2230_v9, %v1853_v42 }
 0x22e   : > { %v3163_v37 = vpop.f32.mrf.mxu1 }
 0x22f   : > { %v5519_v28 = vpop.permute.xlu0 %1828  ;;  %v2629_v11 = vadd.f32 %v3163_v37, %v5433_v40 }
 0x230   : > { %v1905_v45 = vpop.permute.xlu1 %1904  ;;  %v2620_v1 = vpop.f32.mrf.mxu1  ;;  %v2255_v39 = vsel %vm2231_vm12, %v2206_v0, %v5519_v28 }
 0x231   : > { %v3139_v30 = vpop.f32.mrf.mxu0  ;;  %2729 = vst.msk [vmem:[%s5438_s6 + $0xf0] sm:$0xff] %vm2035_vm8, %v2629_v11  ;;  %v2621_v10 = vadd.f32 %v5433_v40, %v2620_v1  ;;  %v2326_v4 = vsel %vm2280_vm13, %v2277_v62, %v1905_v45 }
 0x232   : > { %v2533_v6 = vadd.f32 %v3139_v30, %v5433_v40  ;;  %v3164_v41 = vpop.f32.mrf.mxu1 }
 0x233   : > { %v2524_v21 = vpop.f32.mrf.mxu0  ;;  %2727 = vst.msk [vmem:[%s5438_s6 + $0xe0] sm:$0xff] %vm2035_vm8, %v2621_v10  ;;  %v1881_v52 = vpop.permute.xlu0 %1880  ;;  %v2632_v7 = vadd.f32 %v3164_v41, %v5433_v40 }
 0x234   : > { %2705 = vst.msk [vmem:[%s5438_s6 + $0x30] sm:$0xff] %vm2035_vm8, %v2533_v6  ;;  %v2525_v43 = vadd.f32 %v5433_v40, %v2524_v21  ;;  %v1907_v27 = vpop.permute.xlu1 %1906  ;;  %v2623_v58 = vpop.f32.mrf.mxu1  ;;  %v2302_v19 = vsel %vm2280_vm13, %v2253_v35, %v1881_v52 }
 0x235   : > { %v3140_v20 = vpop.f32.mrf.mxu0  ;;  %2730 = vst.msk [vmem:[%s5438_s6 + $0xf8] sm:$0xff] %vm2035_vm8, %v2632_v7  ;;  %v2624_v5 = vadd.f32 %v5433_v40, %v2623_v58  ;;  %v2328_v13 = vsel %vm2280_vm13, %v2279_v54, %v1907_v27 }
 0x236   : > { %2703 = vst.msk [vmem:[%s5438_s6 + $0x20] sm:$0xff] %vm2035_vm8, %v2525_v43  ;;  %v2536_v44 = vadd.f32 %v3140_v20, %v5433_v40 }
 0x237   : > { %v2527_v60 = vpop.f32.mrf.mxu0  ;;  %2728 = vst.msk [vmem:[%s5438_s6 + $0xe8] sm:$0xff] %vm2035_vm8, %v2624_v5  ;;  %v1883_v3 = vpop.permute.xlu0 %1882 }
 0x238   : > { %2706 = vst.msk [vmem:[%s5438_s6 + $0x38] sm:$0xff] %vm2035_vm8, %v2536_v44  ;;  %v2528_v8 = vadd.f32 %v5433_v40, %v2527_v60  ;;  %v1959_v55 = vpop.permute.xlu1 %1958  ;;  %v2304_v49 = vsel %vm2280_vm13, %v2255_v39, %v1883_v3 }
 0x239   : > { %v2375_v59 = vsel %vm2329_vm14, %v2326_v4, %v1959_v55 }
 0x23a   : > { %2704 = vst.msk [vmem:[%s5438_s6 + $0x28] sm:$0xff] %vm2035_vm8, %v2528_v8  ;;  %3177 = vmatprep.mubr.msk.bf16.mxu1 %vm2421_vm15, %v2375_v59 }
 0x23b   : > { %v1935_v46 = vpop.permute.xlu0 %1934 }
 0x23c   : > { %v2351_v2 = vsel %vm2329_vm14, %v2302_v19, %v1935_v46  ;;  %v1961_v29 = vpop.permute.xlu1 %1960 }
 0x23d   : > { %3153 = vmatprep.mubr.msk.bf16.mxu0 %vm2421_vm15, %v2351_v2  ;;  %v2377_v18 = vsel %vm2329_vm14, %v2328_v13, %v1961_v29 }
 0x23e   : > { %3178 = vmatmul.mubr.msk.bf16.gmra.mxu1 %vm2421_vm15, %v2377_v18 }
 0x23f   : > { %v1937_v42 = vpop.permute.xlu0 %1936 }
 0x240   : > { %v2353_v37 = vsel %vm2329_vm14, %v2304_v49, %v1937_v42 }
 0x241   : > { %3154 = vmatmul.mubr.msk.bf16.gmra.mxu0 %vm2421_vm15, %v2353_v37 }
 0x262   : > { %v3167_v51 = vpop.f32.mrf.mxu1 }
 0x263   : > { %v2645_v11 = vadd.f32 %v3167_v51, %v5433_v40 }
 0x264   : > { %v2636_v45 = vpop.f32.mrf.mxu1 }
 0x265   : > { %v3143_v1 = vpop.f32.mrf.mxu0  ;;  %2733 = vst.msk [vmem:[%s5438_s6 + $0x110] sm:$0xff] %vm2035_vm8, %v2645_v11  ;;  %v2637_v28 = vadd.f32 %v5433_v40, %v2636_v45 }
 0x266   : > { %v2549_v30 = vadd.f32 %v3143_v1, %v5433_v40  ;;  %v3168_v10 = vpop.f32.mrf.mxu1 }
 0x267   : > { %v2540_v33 = vpop.f32.mrf.mxu0  ;;  %2731 = vst.msk [vmem:[%s5438_s6 + $0x100] sm:$0xff] %vm2035_vm8, %v2637_v28  ;;  %v2648_v22 = vadd.f32 %v3168_v10, %v5433_v40 }
 0x268   : > { %2709 = vst.msk [vmem:[%s5438_s6 + $0x50] sm:$0xff] %vm2035_vm8, %v2549_v30  ;;  %v2541_v6 = vadd.f32 %v5433_v40, %v2540_v33  ;;  %v2639_v41 = vpop.f32.mrf.mxu1 }
 0x269   : > { %v3144_v16 = vpop.f32.mrf.mxu0  ;;  %2734 = vst.msk [vmem:[%s5438_s6 + $0x118] sm:$0xff] %vm2035_vm8, %v2648_v22  ;;  %v2640_v21 = vadd.f32 %v5433_v40, %v2639_v41 }
 0x26a   : > { %2707 = vst.msk [vmem:[%s5438_s6 + $0x40] sm:$0xff] %vm2035_vm8, %v2541_v6  ;;  %v2552_v52 = vadd.f32 %v3144_v16, %v5433_v40 }
 0x26b   : > { %v2543_v7 = vpop.f32.mrf.mxu0  ;;  %2732 = vst.msk [vmem:[%s5438_s6 + $0x108] sm:$0xff] %vm2035_vm8, %v2640_v21 }
 0x26c   : > { %2710 = vst.msk [vmem:[%s5438_s6 + $0x58] sm:$0xff] %vm2035_vm8, %v2552_v52  ;;  %v2544_v14 = vadd.f32 %v5433_v40, %v2543_v7 }
 0x26e   : > { %2708 = vst.msk [vmem:[%s5438_s6 + $0x48] sm:$0xff] %vm2035_vm8, %v2544_v14 }
 0x296   : > { %v3171_v43 = vpop.f32.mrf.mxu1 }
 0x297   : > { %v2661_v27 = vadd.f32 %v3171_v43, %v5433_v40 }
 0x298   : > { %v2652_v58 = vpop.f32.mrf.mxu1 }
 0x299   : > { %v3147_v32 = vpop.f32.mrf.mxu0  ;;  %2737 = vst.msk [vmem:[%s5438_s6 + $0x130] sm:$0xff] %vm2035_vm8, %v2661_v27  ;;  %v2653_v15 = vadd.f32 %v5433_v40, %v2652_v58 }
 0x29a   : > { %v2565_v50 = vadd.f32 %v3147_v32, %v5433_v40  ;;  %v3172_v20 = vpop.f32.mrf.mxu1 }
 0x29b   : > { %v2556_v5 = vpop.f32.mrf.mxu0  ;;  %2735 = vst.msk [vmem:[%s5438_s6 + $0x120] sm:$0xff] %vm2035_vm8, %v2653_v15  ;;  %v2664_v48 = vadd.f32 %v3172_v20, %v5433_v40 }
 0x29c   : > { %2713 = vst.msk [vmem:[%s5438_s6 + $0x70] sm:$0xff] %vm2035_vm8, %v2565_v50  ;;  %v2557_v56 = vadd.f32 %v5433_v40, %v2556_v5  ;;  %v2655_v17 = vpop.f32.mrf.mxu1 }
 0x29d   : > { %v3148_v53 = vpop.f32.mrf.mxu0  ;;  %2738 = vst.msk [vmem:[%s5438_s6 + $0x138] sm:$0xff] %vm2035_vm8, %v2664_v48  ;;  %v2656_v38 = vadd.f32 %v5433_v40, %v2655_v17 }
 0x29e   : > { %2711 = vst.msk [vmem:[%s5438_s6 + $0x60] sm:$0xff] %vm2035_vm8, %v2557_v56  ;;  %v2568_v44 = vadd.f32 %v3148_v53, %v5433_v40 }
 0x29f   : > { %v2559_v47 = vpop.f32.mrf.mxu0  ;;  %2736 = vst.msk [vmem:[%s5438_s6 + $0x128] sm:$0xff] %vm2035_vm8, %v2656_v38 }
 0x2a0   : > { %2714 = vst.msk [vmem:[%s5438_s6 + $0x78] sm:$0xff] %vm2035_vm8, %v2568_v44  ;;  %v2560_v31 = vadd.f32 %v5433_v40, %v2559_v47 }
 0x2a2   : > { %2712 = vst.msk [vmem:[%s5438_s6 + $0x68] sm:$0xff] %vm2035_vm8, %v2560_v31 }
 0x2ca   : > { %v3175_v62 = vpop.f32.mrf.mxu1 }
 0x2cb   : > { %v2677_v60 = vadd.f32 %v3175_v62, %v5433_v40 }
 0x2cc   : > { %v2668_v3 = vpop.f32.mrf.mxu1 }
 0x2cd   : > { %v3151_v26 = vpop.f32.mrf.mxu0  ;;  %2741 = vst.msk [vmem:[%s5438_s6 + $0x150] sm:$0xff] %vm2035_vm8, %v2677_v60  ;;  %v2669_v36 = vadd.f32 %v5433_v40, %v2668_v3 }
 0x2ce   : > { %v2581_v4 = vadd.f32 %v3151_v26, %v5433_v40  ;;  %v3176_v8 = vpop.f32.mrf.mxu1 }
 0x2cf   : > { %v2572_v55 = vpop.f32.mrf.mxu0  ;;  %2739 = vst.msk [vmem:[%s5438_s6 + $0x140] sm:$0xff] %vm2035_vm8, %v2669_v36  ;;  %v2680_v61 = vadd.f32 %v3176_v8, %v5433_v40 }
 0x2d0   : > { %2717 = vst.msk [vmem:[%s5438_s6 + $0x90] sm:$0xff] %vm2035_vm8, %v2581_v4  ;;  %v2573_v24 = vadd.f32 %v5433_v40, %v2572_v55  ;;  %v2671_v63 = vpop.f32.mrf.mxu1 }
 0x2d1   : > { %v3152_v23 = vpop.f32.mrf.mxu0  ;;  %2742 = vst.msk [vmem:[%s5438_s6 + $0x158] sm:$0xff] %vm2035_vm8, %v2680_v61  ;;  %v2672_v59 = vadd.f32 %v5433_v40, %v2671_v63 }
 0x2d2   : > { %2715 = vst.msk [vmem:[%s5438_s6 + $0x80] sm:$0xff] %vm2035_vm8, %v2573_v24  ;;  %v2584_v57 = vadd.f32 %v3152_v23, %v5433_v40 }
 0x2d3   : > { %v2575_v34 = vpop.f32.mrf.mxu0  ;;  %2740 = vst.msk [vmem:[%s5438_s6 + $0x148] sm:$0xff] %vm2035_vm8, %v2672_v59 }
 0x2d4   : > { %2718 = vst.msk [vmem:[%s5438_s6 + $0x98] sm:$0xff] %vm2035_vm8, %v2584_v57  ;;  %v2576_v9 = vadd.f32 %v5433_v40, %v2575_v34 }
 0x2d6   : > { %2716 = vst.msk [vmem:[%s5438_s6 + $0x88] sm:$0xff] %vm2035_vm8, %v2576_v9 }
 0x2fe   : > { %v3179_v35 = vpop.f32.mrf.mxu1 }
 0x2ff   : > { %v2693_v25 = vadd.f32 %v3179_v35, %v5433_v40 }
 0x300   : > { %v2684_v54 = vpop.f32.mrf.mxu1 }
 0x301   : > { %v3155_v19 = vpop.f32.mrf.mxu0  ;;  %2745 = vst.msk [vmem:[%s5438_s6 + $0x170] sm:$0xff] %vm2035_vm8, %v2693_v25  ;;  %v2685_v46 = vadd.f32 %v5433_v40, %v2684_v54 }
 0x302   : > { %v2597_v12 = vadd.f32 %v3155_v19, %v5433_v40  ;;  %v3180_v13 = vpop.f32.mrf.mxu1 }
 0x303   : > { %v2588_v2 = vpop.f32.mrf.mxu0  ;;  %2743 = vst.msk [vmem:[%s5438_s6 + $0x160] sm:$0xff] %vm2035_vm8, %v2685_v46  ;;  %v2696_v29 = vadd.f32 %v3180_v13, %v5433_v40 }
 0x304   : > { %2721 = vst.msk [vmem:[%s5438_s6 + $0xb0] sm:$0xff] %vm2035_vm8, %v2597_v12  ;;  %v2589_v0 = vadd.f32 %v5433_v40, %v2588_v2  ;;  %v2687_v18 = vpop.f32.mrf.mxu1 }
 0x305   : > { %v3156_v39 = vpop.f32.mrf.mxu0  ;;  %2746 = vst.msk [vmem:[%s5438_s6 + $0x178] sm:$0xff] %vm2035_vm8, %v2696_v29  ;;  %v2688_v49 = vadd.f32 %v5433_v40, %v2687_v18 }
 0x306   : > { %2719 = vst.msk [vmem:[%s5438_s6 + $0xa0] sm:$0xff] %vm2035_vm8, %v2589_v0  ;;  %v2600_v42 = vadd.f32 %v3156_v39, %v5433_v40 }
 0x307   : > { %v2591_v37 = vpop.f32.mrf.mxu0  ;;  %2744 = vst.msk [vmem:[%s5438_s6 + $0x168] sm:$0xff] %vm2035_vm8, %v2688_v49 }
 0x308   : > { %2722 = vst.msk [vmem:[%s5438_s6 + $0xb8] sm:$0xff] %vm2035_vm8, %v2600_v42  ;;  %v2592_v51 = vadd.f32 %v5433_v40, %v2591_v37 }
 0x30a   : > { %2720 = vst.msk [vmem:[%s5438_s6 + $0xa8] sm:$0xff] %vm2035_vm8, %v2592_v51 }
 0x30b PF: > { %s14_s17 = sadd.s32 1, %s3344_s17   ;;  %s6104_s15 = smov %s3340_s16 }
 0x30c   : > { %p11_p7 = scmp.ge.s32.totalorder %s14_s17, 5   ;;  %s6105_s16 = smov %s6107_s18 }
 0x30e   :  { %13 = sbr.rel (!%p11_p7) target bundleno = 2 (0x2), region = 69 }

</bundles_post_ra>
